<compile_context>
chip_gen: v7x
topology: tpu7x:2x2x1
jax: 0.10.0
libtpu: 0.0.40
codegen_flags: <defaults>
</compile_context>

<pallas_src>
import functools

import jax
import jax.numpy as jnp
from jax.experimental import pallas as pl
from jax.experimental.pallas import tpu as pltpu

NEG_SLOPE = 0.05


def _lrelu(v):
    return jnp.where(v >= 0.0, v, NEG_SLOPE * v)


def fdadb_kernel(x_ref, mask_ref, w3_ref, b3_ref, w1_ref, b1_ref,
                 wd1t_ref, bd1_ref, wd2_ref, bd2_ref, out_ref, tap_ref,
                 *, H, W, B):
    """Processes B images per grid step.

    x_ref    : (B, C, H*W)  f32   input images, channels on sublanes
    mask_ref : (9, 1, H*W)  f32   precomputed boundary masks per 3x3 tap
    w3_ref   : (7, C, 9*C)  bf16  fused 3x3 weights, K = tap*C + c_in
    b3_ref   : (7, C, 1)    f32
    w1_ref   : (4, C, C)    bf16  1x1 weights (c1_d, c2_d, c3_d, c5)
    b1_ref   : (4, C, 1)    f32
    wd1t_ref : (C, Cr)      f32   esa.conv_du[0] weight, transposed
    bd1_ref  : (1, Cr)      f32
    wd2_ref  : (C, Cr)      f32   esa.conv_du[2] weight
    bd2_ref  : (C, 1)       f32
    out_ref  : (B, C, H*W)  f32
    tap_ref  : (9*C, H*W)   bf16  scratch: stacked conv taps (reused by all convs)
    """
    C = x_ref.shape[1]
    HW = H * W

    shifts = [dy * W + dx for dy in (-1, 0, 1) for dx in (-1, 0, 1)]

    def conv3x3(v, idx):
        # Build the (9C, HW) tap stack once, then a single K=9C MXU matmul.
        for k, s in enumerate(shifts):
            if s == 0:
                tap = v
            else:
                tap = pltpu.roll(v, (-s) % HW, axis=1) * mask_ref[k]
            tap_ref[k * C:(k + 1) * C, :] = tap.astype(jnp.bfloat16)
        acc = jnp.dot(w3_ref[idx], tap_ref[...],
                      preferred_element_type=jnp.float32)
        return acc + b3_ref[idx]

    def conv1x1(v, idx):
        return jnp.dot(w1_ref[idx], v.astype(jnp.bfloat16),
                       preferred_element_type=jnp.float32) + b1_ref[idx]

    def esa(v):
        # CCALayer1: (stdv_channels + avg_pool) -> 1x1 -> ReLU -> 1x1 -> sigmoid
        inv_hw = 1.0 / HW
        mean = jnp.sum(v, axis=1, keepdims=True) * inv_hw              # (C, 1)
        var = jnp.sum((v - mean) ** 2, axis=1, keepdims=True) * inv_hw
        y = jnp.sqrt(var) + mean                                       # (C, 1)
        t = jnp.sum(wd1t_ref[...] * y, axis=0, keepdims=True) + bd1_ref[...]
        t = jnp.maximum(t, 0.0)                                        # (1, Cr)
        s = jnp.sum(wd2_ref[...] * t, axis=1, keepdims=True) + bd2_ref[...]
        s = 1.0 / (1.0 + jnp.exp(-s))                                  # (C, 1)
        return v * s

    for b in range(B):                       # static inner loop over images
        x = x_ref[b]                         # (C, HW) f32

        # distil_1 / c1_d / c1_r
        y1 = _lrelu(conv3x3(x, 0))
        fused = _lrelu(conv1x1(x - y1, 0))   # eager distilled accumulation
        r = y1 - _lrelu(conv3x3(y1, 1))

        # distil_2 / c2_d / c2_r
        y2 = _lrelu(conv3x3(r, 2))
        fused = fused + _lrelu(conv1x1(r - y2, 1))
        r = y2 - _lrelu(conv3x3(y2, 3))

        # distil_3 / c3_d / c3_r
        y3 = _lrelu(conv3x3(r, 4))
        fused = fused + _lrelu(conv1x1(r - y3, 2))
        r = y3 - _lrelu(conv3x3(y3, 5))

        # c4 / c5 / esa / residual (x re-read so it is not live across the convs)
        fused = fused + _lrelu(conv3x3(r, 6))
        gated = esa(conv1x1(fused, 3))
        out_ref[b] = (x_ref[b] + gated).astype(out_ref.dtype)


def _choose_block_batch(N, C, HW):
    """Images per grid step: amortize per-step overhead + DMA, keep >= 2 grid
    steps when possible (v7x has 2 TensorCores), bound block I/O and unroll."""
    max_b = max(1, min(8, (8 << 20) // (4 * C * HW * 4)))
    best = 1
    for b in range(1, N + 1):
        if N % b != 0 or b > max_b:
            continue
        if b > 1 and N // b < 2:
            continue
        best = b
    return best


def fdadb_forward(x_nchw, params):
    """x_nchw: (N, C, H, W) float32.  params: dict of stacked conv params."""
    N, C, H, W = x_nchw.shape
    HW = H * W
    assert C % 8 == 0 and HW % 128 == 0, "kernel needs C%8==0 and (H*W)%128==0"
    Cr = params["wd1"].shape[0]
    B = _choose_block_batch(N, C, HW)

    x_flat = x_nchw.reshape(N, C, HW)                    # free (no data movement)

    # 3x3 weights: (7,Cout,Cin,3,3) -> (7,Cout,3,3,Cin) -> (7,Cout,9*Cin) so the
    # fused K axis is tap-major (k = 3*(dy+1)+(dx+1)) then Cin, matching the
    # kernel's tap-stack layout.  bf16 operands -> single MXU pass per conv.
    w3f = jnp.transpose(params["w3"], (0, 1, 3, 4, 2)).reshape(7, C, 9 * C)
    w3f = w3f.astype(jnp.bfloat16)
    b3 = params["b3"].reshape(7, C, 1).astype(jnp.float32)
    w1 = params["w1"].astype(jnp.bfloat16)               # (4, C, C)
    b1 = params["b1"].reshape(4, C, 1).astype(jnp.float32)
    wd1t = jnp.transpose(params["wd1"], (1, 0)).astype(jnp.float32)   # (C, Cr)
    bd1 = params["bd1"].reshape(1, Cr).astype(jnp.float32)
    wd2 = params["wd2"].reshape(C, Cr).astype(jnp.float32)
    bd2 = params["bd2"].reshape(C, 1).astype(jnp.float32)

    # Per-tap boundary masks: computed once here, constant across the grid.
    pos = jnp.arange(HW, dtype=jnp.int32)
    hh, ww = pos // W, pos % W
    masks = jnp.stack([
        ((hh + dy >= 0) & (hh + dy < H) & (ww + dx >= 0) & (ww + dx < W))
        for dy in (-1, 0, 1) for dx in (-1, 0, 1)
    ]).astype(jnp.float32).reshape(9, 1, HW)

    kernel = functools.partial(fdadb_kernel, H=H, W=W, B=B)

    # Advisory cost estimate for XLA's scheduler.
    matmul_flops = 2 * N * HW * C * (9 * C * 7 + C * 4)
    cost = pl.CostEstimate(
        flops=int(matmul_flops + 40 * N * C * HW),
        transcendentals=int(3 * N * C),
        bytes_accessed=int(2 * N * C * HW * 4 + w3f.size * 2 + w1.size * 2
                           + masks.size * 4),
    )

    # VMEM budget: double-buffered I/O blocks + weights + tap scratch + ~10
    # live f32 (C,HW) intermediates per image, with 2x headroom.
    est = (2 * 2 * B * C * HW * 4
           + 2 * (w3f.size * 2 + w1.size * 2
                  + (b3.size + b1.size + wd1t.size + bd1.size + wd2.size
                     + bd2.size + masks.size) * 4)
           + 9 * C * HW * 2
           + 10 * C * HW * 4)
    vmem_limit = int(min(64 << 20, max(8 << 20, 2 * est)))

    out_flat = pl.pallas_call(
        kernel,
        out_shape=jax.ShapeDtypeStruct((N, C, HW), x_nchw.dtype),
        grid_spec=pltpu.PrefetchScalarGridSpec(
            num_scalar_prefetch=0,
            grid=(N // B,),
            # TODO(synk): for SR-scale H*W, add a second grid axis tiling HW in
            # multiples of W (with 1-row halos for the 3x3 taps) so whole-image
            # blocks do not overflow v7x's 64 MiB VMEM.
            in_specs=[
                pl.BlockSpec((B, C, HW), lambda n: (n, 0, 0)),
                pl.BlockSpec((9, 1, HW), lambda n: (0, 0, 0)),
                pl.BlockSpec((7, C, 9 * C), lambda n: (0, 0, 0)),
                pl.BlockSpec((7, C, 1), lambda n: (0, 0, 0)),
                pl.BlockSpec((4, C, C), lambda n: (0, 0, 0)),
                pl.BlockSpec((4, C, 1), lambda n: (0, 0, 0)),
                pl.BlockSpec((C, Cr), lambda n: (0, 0)),
                pl.BlockSpec((1, Cr), lambda n: (0, 0)),
                pl.BlockSpec((C, Cr), lambda n: (0, 0)),
                pl.BlockSpec((C, 1), lambda n: (0, 0)),
            ],
            out_specs=pl.BlockSpec((B, C, HW), lambda n: (n, 0, 0)),
            scratch_shapes=[pltpu.VMEM((9 * C, HW), jnp.bfloat16)],
        ),
        compiler_params=pltpu.CompilerParams(
            dimension_semantics=("parallel",),   # batch axis -> both TCs on v7x
            vmem_limit_bytes=vmem_limit,
        ),
        cost_estimate=cost,
    )(x_flat, masks, w3f, b3, w1, b1, wd1t, bd1, wd2, bd2)

    return out_flat.reshape(N, C, H, W)


# ----------------------------- pure-JAX reference ---------------------------
def _conv2d_nchw(x, w, b, pad, bf16_operands):
    if bf16_operands:
        x = x.astype(jnp.bfloat16)
        w = w.astype(jnp.bfloat16)
        prec = None
    else:
        prec = jax.lax.Precision.HIGHEST
    y = jax.lax.conv_general_dilated(
        x, w, window_strides=(1, 1),
        padding=[(pad, pad), (pad, pad)],
        dimension_numbers=("NCHW", "OIHW", "NCHW"),
        preferred_element_type=jnp.float32,
        precision=prec)
    return y + b[None, :, None, None]


def fdadb_reference(x, params, bf16_matmuls=False):
    w3, b3 = params["w3"], params["b3"]
    w1, b1 = params["w1"], params["b1"]
    conv3 = lambda v, i: _conv2d_nchw(v, w3[i], b3[i], 1, bf16_matmuls)
    conv1 = lambda v, i: _conv2d_nchw(v, w1[i][:, :, None, None], b1[i], 0,
                                      bf16_matmuls)

    def cca(v, i):                       # CCALayer
        y = _lrelu(conv3(v, i))
        return v - y, y

    def fdab(v, i):                      # FDAB, de_split_rate=1
        return v - _lrelu(conv3(v, i))

    dist1, rem1 = cca(x, 0)
    d1 = _lrelu(conv1(dist1, 0))
    r1 = fdab(rem1, 1)
    dist2, rem2 = cca(r1, 2)
    d2 = _lrelu(conv1(dist2, 1))
    r2 = fdab(rem2, 3)
    dist3, rem3 = cca(r2, 4)
    d3 = _lrelu(conv1(dist3, 2))
    r3 = fdab(rem3, 5)
    r4 = _lrelu(conv3(r3, 6))
    out = d1 + d2 + d3 + r4
    c5o = conv1(out, 3)

    # CCALayer1 (esa) — f32 in both reference and kernel
    mean = jnp.mean(c5o, axis=(2, 3), keepdims=True)
    var = jnp.mean((c5o - mean) ** 2, axis=(2, 3), keepdims=True)
    y = jnp.sqrt(var) + mean                                       # (N, C, 1, 1)
    z = jnp.einsum("rc,nc->nr", params["wd1"], y[:, :, 0, 0]) + params["bd1"]
    z = jnp.maximum(z, 0.0)
    s = jnp.einsum("cr,nr->nc", params["wd2"], z) + params["bd2"]
    s = 1.0 / (1.0 + jnp.exp(-s))
    return x + c5o * s[:, :, None, None]


if __name__ == "__main__":
    # FDADB(in_channels=16): smallest channel count compatible with
    # CCALayer1's reduction=16 squeeze (C // 16 >= 1).
    N, C, H, W = 2, 16, 16, 16
    Cr = C // 16

    key = jax.random.PRNGKey(0)
    ks = jax.random.split(key, 9)
    x = jax.random.normal(ks[0], (N, C, H, W), dtype=jnp.float32)
    params = {
        "w3": 0.1 * jax.random.normal(ks[1], (7, C, C, 3, 3), jnp.float32),
        "b3": 0.1 * jax.random.normal(ks[2], (7, C), jnp.float32),
        "w1": 0.1 * jax.random.normal(ks[3], (4, C, C), jnp.float32),
        "b1": 0.1 * jax.random.normal(ks[4], (4, C), jnp.float32),
        "wd1": 0.1 * jax.random.normal(ks[5], (Cr, C), jnp.float32),
        "bd1": 0.1 * jax.random.normal(ks[6], (Cr,), jnp.float32),
        "wd2": 0.1 * jax.random.normal(ks[7], (C, Cr), jnp.float32),
        "bd2": 0.1 * jax.random.normal(ks[8], (C,), jnp.float32),
    }

    out = jax.block_until_ready(fdadb_forward(x, params))
    assert out.shape == (N, C, H, W)

    # Strict check vs a reference that uses the same matmul precision as the
    # kernel (bf16 operands, f32 accumulation) -> only summation-order diffs.
    ref_matched = fdadb_reference(x, params, bf16_matmuls=True)
    err_matched = float(jnp.max(jnp.abs(out - ref_matched)))
    assert err_matched < 5e-3, \
        "mismatch vs matched-precision reference, max abs err = %e" % err_matched

    # Sanity check vs the full-f32 reference: bounds the bf16-matmul deviation.
    ref_f32 = fdadb_reference(x, params, bf16_matmuls=False)
    err_f32 = float(jnp.max(jnp.abs(out - ref_f32)))
    assert err_f32 < 1.5e-1, \
        "bf16-matmul deviation vs f32 reference too large: %e" % err_f32

    print("KERNEL_OK")
</pallas_src>

<mosaic_0001>
module attributes {stable_mosaic.version = 11 : i64} {
  func.func @fdadb_kernel(%arg0: i32, %arg1: memref<1x16x256xf32, #tpu.memory_space<vmem>>, %arg2: memref<9x1x256xf32, #tpu.memory_space<vmem>>, %arg3: memref<7x16x144xbf16, #tpu.memory_space<vmem>>, %arg4: memref<7x16x1xf32, #tpu.memory_space<vmem>>, %arg5: memref<4x16x16xbf16, #tpu.memory_space<vmem>>, %arg6: memref<4x16x1xf32, #tpu.memory_space<vmem>>, %arg7: memref<16x1xf32, #tpu.memory_space<vmem>>, %arg8: memref<1x1xf32, #tpu.memory_space<vmem>>, %arg9: memref<16x1xf32, #tpu.memory_space<vmem>>, %arg10: memref<16x1xf32, #tpu.memory_space<vmem>>, %arg11: memref<1x16x256xf32, #tpu.memory_space<vmem>>, %arg12: memref<144x256xbf16, #tpu.memory_space<vmem>>) attributes {dimension_semantics = [#tpu.dimension_semantics<parallel>], iteration_bounds = array<i64: 2>, scalar_prefetch = 0 : i64, scratch_operands = 1 : i64, tpu.core_type = #tpu.core_type<tc>, window_params = [{transform_indices = @transform_0, window_bounds = array<i64: 1, 16, 256>}, {pipeline_mode = #tpu.pipeline_mode<synchronous>, transform_indices = @transform_1, window_bounds = array<i64: 9, 1, 256>}, {pipeline_mode = #tpu.pipeline_mode<synchronous>, transform_indices = @transform_2, window_bounds = array<i64: 7, 16, 144>}, {pipeline_mode = #tpu.pipeline_mode<synchronous>, transform_indices = @transform_3, window_bounds = array<i64: 7, 16, 1>}, {pipeline_mode = #tpu.pipeline_mode<synchronous>, transform_indices = @transform_4, window_bounds = array<i64: 4, 16, 16>}, {pipeline_mode = #tpu.pipeline_mode<synchronous>, transform_indices = @transform_5, window_bounds = array<i64: 4, 16, 1>}, {pipeline_mode = #tpu.pipeline_mode<synchronous>, transform_indices = @transform_6, window_bounds = array<i64: 16, 1>}, {pipeline_mode = #tpu.pipeline_mode<synchronous>, transform_indices = @transform_7, window_bounds = array<i64: 1, 1>}, {pipeline_mode = #tpu.pipeline_mode<synchronous>, transform_indices = @transform_8, window_bounds = array<i64: 16, 1>}, {pipeline_mode = #tpu.pipeline_mode<synchronous>, transform_indices = @transform_9, window_bounds = array<i64: 16, 1>}, {transform_indices = @transform_10, window_bounds = array<i64: 1, 16, 256>}]} {
    %c0 = arith.constant 0 : index
    %c0_0 = arith.constant 0 : index
    %c0_1 = arith.constant 0 : index
    %0 = vector.load %arg1[%c0, %c0_0, %c0_1] : memref<1x16x256xf32, #tpu.memory_space<vmem>>, vector<1x16x256xf32>
    %1 = vector.shape_cast %0 : vector<1x16x256xf32> to vector<16x256xf32>
    %c17_i32 = arith.constant 17 : i32
    %2 = tpu.dynamic_rotate %1 by %c17_i32 dim 1 : vector<16x256xf32>, i32 -> vector<16x256xf32>
    %c0_2 = arith.constant 0 : index
    %c0_3 = arith.constant 0 : index
    %c0_4 = arith.constant 0 : index
    %3 = vector.load %arg2[%c0_2, %c0_3, %c0_4] : memref<9x1x256xf32, #tpu.memory_space<vmem>>, vector<1x1x256xf32>
    %4 = vector.shape_cast %3 : vector<1x1x256xf32> to vector<1x256xf32>
    %5 = vector.broadcast %4 : vector<1x256xf32> to vector<16x256xf32>
    %6 = arith.mulf %2, %5 : vector<16x256xf32>
    %7 = arith.truncf %6 : vector<16x256xf32> to vector<16x256xbf16>
    %c0_5 = arith.constant 0 : index
    %c0_6 = arith.constant 0 : index
    %8 = vector.load %arg12[%c0_5, %c0_6] : memref<144x256xbf16, #tpu.memory_space<vmem>>, vector<16x256xbf16>
    tpu.vector_store %arg12[%c0_5, %c0_6], %7 {strides = array<i32>} : memref<144x256xbf16, #tpu.memory_space<vmem>>, vector<16x256xbf16>,
    %c16_i32 = arith.constant 16 : i32
    %9 = tpu.dynamic_rotate %1 by %c16_i32 dim 1 : vector<16x256xf32>, i32 -> vector<16x256xf32>
    %c1 = arith.constant 1 : index
    %c0_7 = arith.constant 0 : index
    %c0_8 = arith.constant 0 : index
    %10 = vector.load %arg2[%c1, %c0_7, %c0_8] : memref<9x1x256xf32, #tpu.memory_space<vmem>>, vector<1x1x256xf32>
    %11 = vector.shape_cast %10 : vector<1x1x256xf32> to vector<1x256xf32>
    %12 = vector.broadcast %11 : vector<1x256xf32> to vector<16x256xf32>
    %13 = arith.mulf %9, %12 : vector<16x256xf32>
    %14 = arith.truncf %13 : vector<16x256xf32> to vector<16x256xbf16>
    %c16 = arith.constant 16 : index
    %c0_9 = arith.constant 0 : index
    %15 = vector.load %arg12[%c16, %c0_9] : memref<144x256xbf16, #tpu.memory_space<vmem>>, vector<16x256xbf16>
    tpu.vector_store %arg12[%c16, %c0_9], %14 {strides = array<i32>} : memref<144x256xbf16, #tpu.memory_space<vmem>>, vector<16x256xbf16>,
    %c15_i32 = arith.constant 15 : i32
    %16 = tpu.dynamic_rotate %1 by %c15_i32 dim 1 : vector<16x256xf32>, i32 -> vector<16x256xf32>
    %c2 = arith.constant 2 : index
    %c0_10 = arith.constant 0 : index
    %c0_11 = arith.constant 0 : index
    %17 = vector.load %arg2[%c2, %c0_10, %c0_11] : memref<9x1x256xf32, #tpu.memory_space<vmem>>, vector<1x1x256xf32>
    %18 = vector.shape_cast %17 : vector<1x1x256xf32> to vector<1x256xf32>
    %19 = vector.broadcast %18 : vector<1x256xf32> to vector<16x256xf32>
    %20 = arith.mulf %16, %19 : vector<16x256xf32>
    %21 = arith.truncf %20 : vector<16x256xf32> to vector<16x256xbf16>
    %c32 = arith.constant 32 : index
    %c0_12 = arith.constant 0 : index
    %22 = vector.load %arg12[%c32, %c0_12] : memref<144x256xbf16, #tpu.memory_space<vmem>>, vector<16x256xbf16>
    tpu.vector_store %arg12[%c32, %c0_12], %21 {strides = array<i32>} : memref<144x256xbf16, #tpu.memory_space<vmem>>, vector<16x256xbf16>,
    %c1_i32 = arith.constant 1 : i32
    %23 = tpu.dynamic_rotate %1 by %c1_i32 dim 1 : vector<16x256xf32>, i32 -> vector<16x256xf32>
    %c3 = arith.constant 3 : index
    %c0_13 = arith.constant 0 : index
    %c0_14 = arith.constant 0 : index
    %24 = vector.load %arg2[%c3, %c0_13, %c0_14] : memref<9x1x256xf32, #tpu.memory_space<vmem>>, vector<1x1x256xf32>
    %25 = vector.shape_cast %24 : vector<1x1x256xf32> to vector<1x256xf32>
    %26 = vector.broadcast %25 : vector<1x256xf32> to vector<16x256xf32>
    %27 = arith.mulf %23, %26 : vector<16x256xf32>
    %28 = arith.truncf %27 : vector<16x256xf32> to vector<16x256xbf16>
    %c48 = arith.constant 48 : index
    %c0_15 = arith.constant 0 : index
    %29 = vector.load %arg12[%c48, %c0_15] : memref<144x256xbf16, #tpu.memory_space<vmem>>, vector<16x256xbf16>
    tpu.vector_store %arg12[%c48, %c0_15], %28 {strides = array<i32>} : memref<144x256xbf16, #tpu.memory_space<vmem>>, vector<16x256xbf16>,
    %30 = arith.truncf %1 : vector<16x256xf32> to vector<16x256xbf16>
    %c64 = arith.constant 64 : index
    %c0_16 = arith.constant 0 : index
    %31 = vector.load %arg12[%c64, %c0_16] : memref<144x256xbf16, #tpu.memory_space<vmem>>, vector<16x256xbf16>
    tpu.vector_store %arg12[%c64, %c0_16], %30 {strides = array<i32>} : memref<144x256xbf16, #tpu.memory_space<vmem>>, vector<16x256xbf16>,
    %c255_i32 = arith.constant 255 : i32
    %32 = tpu.dynamic_rotate %1 by %c255_i32 dim 1 : vector<16x256xf32>, i32 -> vector<16x256xf32>
    %c5 = arith.constant 5 : index
    %c0_17 = arith.constant 0 : index
    %c0_18 = arith.constant 0 : index
    %33 = vector.load %arg2[%c5, %c0_17, %c0_18] : memref<9x1x256xf32, #tpu.memory_space<vmem>>, vector<1x1x256xf32>
    %34 = vector.shape_cast %33 : vector<1x1x256xf32> to vector<1x256xf32>
    %35 = vector.broadcast %34 : vector<1x256xf32> to vector<16x256xf32>
    %36 = arith.mulf %32, %35 : vector<16x256xf32>
    %37 = arith.truncf %36 : vector<16x256xf32> to vector<16x256xbf16>
    %c80 = arith.constant 80 : index
    %c0_19 = arith.constant 0 : index
    %38 = vector.load %arg12[%c80, %c0_19] : memref<144x256xbf16, #tpu.memory_space<vmem>>, vector<16x256xbf16>
    tpu.vector_store %arg12[%c80, %c0_19], %37 {strides = array<i32>} : memref<144x256xbf16, #tpu.memory_space<vmem>>, vector<16x256xbf16>,
    %c241_i32 = arith.constant 241 : i32
    %39 = tpu.dynamic_rotate %1 by %c241_i32 dim 1 : vector<16x256xf32>, i32 -> vector<16x256xf32>
    %c6 = arith.constant 6 : index
    %c0_20 = arith.constant 0 : index
    %c0_21 = arith.constant 0 : index
    %40 = vector.load %arg2[%c6, %c0_20, %c0_21] : memref<9x1x256xf32, #tpu.memory_space<vmem>>, vector<1x1x256xf32>
    %41 = vector.shape_cast %40 : vector<1x1x256xf32> to vector<1x256xf32>
    %42 = vector.broadcast %41 : vector<1x256xf32> to vector<16x256xf32>
    %43 = arith.mulf %39, %42 : vector<16x256xf32>
    %44 = arith.truncf %43 : vector<16x256xf32> to vector<16x256xbf16>
    %c96 = arith.constant 96 : index
    %c0_22 = arith.constant 0 : index
    %45 = vector.load %arg12[%c96, %c0_22] : memref<144x256xbf16, #tpu.memory_space<vmem>>, vector<16x256xbf16>
    tpu.vector_store %arg12[%c96, %c0_22], %44 {strides = array<i32>} : memref<144x256xbf16, #tpu.memory_space<vmem>>, vector<16x256xbf16>,
    %c240_i32 = arith.constant 240 : i32
    %46 = tpu.dynamic_rotate %1 by %c240_i32 dim 1 : vector<16x256xf32>, i32 -> vector<16x256xf32>
    %c7 = arith.constant 7 : index
    %c0_23 = arith.constant 0 : index
    %c0_24 = arith.constant 0 : index
    %47 = vector.load %arg2[%c7, %c0_23, %c0_24] : memref<9x1x256xf32, #tpu.memory_space<vmem>>, vector<1x1x256xf32>
    %48 = vector.shape_cast %47 : vector<1x1x256xf32> to vector<1x256xf32>
    %49 = vector.broadcast %48 : vector<1x256xf32> to vector<16x256xf32>
    %50 = arith.mulf %46, %49 : vector<16x256xf32>
    %51 = arith.truncf %50 : vector<16x256xf32> to vector<16x256xbf16>
    %c112 = arith.constant 112 : index
    %c0_25 = arith.constant 0 : index
    %52 = vector.load %arg12[%c112, %c0_25] : memref<144x256xbf16, #tpu.memory_space<vmem>>, vector<16x256xbf16>
    tpu.vector_store %arg12[%c112, %c0_25], %51 {strides = array<i32>} : memref<144x256xbf16, #tpu.memory_space<vmem>>, vector<16x256xbf16>,
    %c239_i32 = arith.constant 239 : i32
    %53 = tpu.dynamic_rotate %1 by %c239_i32 dim 1 : vector<16x256xf32>, i32 -> vector<16x256xf32>
    %c8 = arith.constant 8 : index
    %c0_26 = arith.constant 0 : index
    %c0_27 = arith.constant 0 : index
    %54 = vector.load %arg2[%c8, %c0_26, %c0_27] : memref<9x1x256xf32, #tpu.memory_space<vmem>>, vector<1x1x256xf32>
    %55 = vector.shape_cast %54 : vector<1x1x256xf32> to vector<1x256xf32>
    %56 = vector.broadcast %55 : vector<1x256xf32> to vector<16x256xf32>
    %57 = arith.mulf %53, %56 : vector<16x256xf32>
    %58 = arith.truncf %57 : vector<16x256xf32> to vector<16x256xbf16>
    %c128 = arith.constant 128 : index
    %c0_28 = arith.constant 0 : index
    %59 = vector.load %arg12[%c128, %c0_28] : memref<144x256xbf16, #tpu.memory_space<vmem>>, vector<16x256xbf16>
    tpu.vector_store %arg12[%c128, %c0_28], %58 {strides = array<i32>} : memref<144x256xbf16, #tpu.memory_space<vmem>>, vector<16x256xbf16>,
    %c0_29 = arith.constant 0 : index
    %c0_30 = arith.constant 0 : index
    %c0_31 = arith.constant 0 : index
    %60 = vector.load %arg3[%c0_29, %c0_30, %c0_31] : memref<7x16x144xbf16, #tpu.memory_space<vmem>>, vector<1x16x144xbf16>
    %61 = vector.shape_cast %60 : vector<1x16x144xbf16> to vector<16x144xbf16>
    %c0_32 = arith.constant 0 : index
    %c0_33 = arith.constant 0 : index
    %62 = vector.load %arg12[%c0_32, %c0_33] : memref<144x256xbf16, #tpu.memory_space<vmem>>, vector<144x256xbf16>
    %cst = arith.constant dense<0.000000e+00> : vector<16x256xf32>
    %63 = tpu.matmul %61, %62, %cst {dimension_numbers = #tpu.dot_dimension_numbers<[1], [0], [0], [1], [0, 0, 1, 1], [], []>} : vector<16x144xbf16>, vector<144x256xbf16>, vector<16x256xf32> -> vector<16x256xf32>
    %c0_34 = arith.constant 0 : index
    %c0_35 = arith.constant 0 : index
    %c0_36 = arith.constant 0 : index
    %64 = vector.load %arg4[%c0_34, %c0_35, %c0_36] : memref<7x16x1xf32, #tpu.memory_space<vmem>>, vector<1x16x1xf32>
    %65 = vector.shape_cast %64 : vector<1x16x1xf32> to vector<16x1xf32>
    %66 = vector.broadcast %65 : vector<16x1xf32> to vector<16x256xf32>
    %67 = arith.addf %63, %66 : vector<16x256xf32>
    %cst_37 = arith.constant 0.000000e+00 : f32
    %68 = vector.broadcast %cst_37 : f32 to vector<16x256xf32>
    %69 = arith.cmpf oge, %67, %68 : vector<16x256xf32>
    %cst_38 = arith.constant 5.000000e-02 : f32
    %70 = vector.broadcast %cst_38 : f32 to vector<16x256xf32>
    %71 = arith.mulf %70, %67 : vector<16x256xf32>
    %72 = arith.select %69, %67, %71 : vector<16x256xi1>, vector<16x256xf32>
    %73 = arith.subf %1, %72 : vector<16x256xf32>
    %c0_39 = arith.constant 0 : index
    %c0_40 = arith.constant 0 : index
    %c0_41 = arith.constant 0 : index
    %74 = vector.load %arg5[%c0_39, %c0_40, %c0_41] : memref<4x16x16xbf16, #tpu.memory_space<vmem>>, vector<1x16x16xbf16>
    %75 = vector.shape_cast %74 : vector<1x16x16xbf16> to vector<16x16xbf16>
    %76 = arith.truncf %73 : vector<16x256xf32> to vector<16x256xbf16>
    %cst_42 = arith.constant dense<0.000000e+00> : vector<16x256xf32>
    %77 = tpu.matmul %75, %76, %cst_42 {dimension_numbers = #tpu.dot_dimension_numbers<[1], [0], [0], [1], [0, 0, 1, 1], [], []>} : vector<16x16xbf16>, vector<16x256xbf16>, vector<16x256xf32> -> vector<16x256xf32>
    %c0_43 = arith.constant 0 : index
    %c0_44 = arith.constant 0 : index
    %c0_45 = arith.constant 0 : index
    %78 = vector.load %arg6[%c0_43, %c0_44, %c0_45] : memref<4x16x1xf32, #tpu.memory_space<vmem>>, vector<1x16x1xf32>
    %79 = vector.shape_cast %78 : vector<1x16x1xf32> to vector<16x1xf32>
    %80 = vector.broadcast %79 : vector<16x1xf32> to vector<16x256xf32>
    %81 = arith.addf %77, %80 : vector<16x256xf32>
    %cst_46 = arith.constant 0.000000e+00 : f32
    %82 = vector.broadcast %cst_46 : f32 to vector<16x256xf32>
    %83 = arith.cmpf oge, %81, %82 : vector<16x256xf32>
    %cst_47 = arith.constant 5.000000e-02 : f32
    %84 = vector.broadcast %cst_47 : f32 to vector<16x256xf32>
    %85 = arith.mulf %84, %81 : vector<16x256xf32>
    %86 = arith.select %83, %81, %85 : vector<16x256xi1>, vector<16x256xf32>
    %c17_i32_48 = arith.constant 17 : i32
    %87 = tpu.dynamic_rotate %72 by %c17_i32_48 dim 1 : vector<16x256xf32>, i32 -> vector<16x256xf32>
    %c0_49 = arith.constant 0 : index
    %c0_50 = arith.constant 0 : index
    %c0_51 = arith.constant 0 : index
    %88 = vector.load %arg2[%c0_49, %c0_50, %c0_51] : memref<9x1x256xf32, #tpu.memory_space<vmem>>, vector<1x1x256xf32>
    %89 = vector.shape_cast %88 : vector<1x1x256xf32> to vector<1x256xf32>
    %90 = vector.broadcast %89 : vector<1x256xf32> to vector<16x256xf32>
    %91 = arith.mulf %87, %90 : vector<16x256xf32>
    %92 = arith.truncf %91 : vector<16x256xf32> to vector<16x256xbf16>
    %c0_52 = arith.constant 0 : index
    %c0_53 = arith.constant 0 : index
    %93 = vector.load %arg12[%c0_52, %c0_53] : memref<144x256xbf16, #tpu.memory_space<vmem>>, vector<16x256xbf16>
    tpu.vector_store %arg12[%c0_52, %c0_53], %92 {strides = array<i32>} : memref<144x256xbf16, #tpu.memory_space<vmem>>, vector<16x256xbf16>,
    %c16_i32_54 = arith.constant 16 : i32
    %94 = tpu.dynamic_rotate %72 by %c16_i32_54 dim 1 : vector<16x256xf32>, i32 -> vector<16x256xf32>
    %c1_55 = arith.constant 1 : index
    %c0_56 = arith.constant 0 : index
    %c0_57 = arith.constant 0 : index
    %95 = vector.load %arg2[%c1_55, %c0_56, %c0_57] : memref<9x1x256xf32, #tpu.memory_space<vmem>>, vector<1x1x256xf32>
    %96 = vector.shape_cast %95 : vector<1x1x256xf32> to vector<1x256xf32>
    %97 = vector.broadcast %96 : vector<1x256xf32> to vector<16x256xf32>
    %98 = arith.mulf %94, %97 : vector<16x256xf32>
    %99 = arith.truncf %98 : vector<16x256xf32> to vector<16x256xbf16>
    %c16_58 = arith.constant 16 : index
    %c0_59 = arith.constant 0 : index
    %100 = vector.load %arg12[%c16_58, %c0_59] : memref<144x256xbf16, #tpu.memory_space<vmem>>, vector<16x256xbf16>
    tpu.vector_store %arg12[%c16_58, %c0_59], %99 {strides = array<i32>} : memref<144x256xbf16, #tpu.memory_space<vmem>>, vector<16x256xbf16>,
    %c15_i32_60 = arith.constant 15 : i32
    %101 = tpu.dynamic_rotate %72 by %c15_i32_60 dim 1 : vector<16x256xf32>, i32 -> vector<16x256xf32>
    %c2_61 = arith.constant 2 : index
    %c0_62 = arith.constant 0 : index
    %c0_63 = arith.constant 0 : index
    %102 = vector.load %arg2[%c2_61, %c0_62, %c0_63] : memref<9x1x256xf32, #tpu.memory_space<vmem>>, vector<1x1x256xf32>
    %103 = vector.shape_cast %102 : vector<1x1x256xf32> to vector<1x256xf32>
    %104 = vector.broadcast %103 : vector<1x256xf32> to vector<16x256xf32>
    %105 = arith.mulf %101, %104 : vector<16x256xf32>
    %106 = arith.truncf %105 : vector<16x256xf32> to vector<16x256xbf16>
    %c32_64 = arith.constant 32 : index
    %c0_65 = arith.constant 0 : index
    %107 = vector.load %arg12[%c32_64, %c0_65] : memref<144x256xbf16, #tpu.memory_space<vmem>>, vector<16x256xbf16>
    tpu.vector_store %arg12[%c32_64, %c0_65], %106 {strides = array<i32>} : memref<144x256xbf16, #tpu.memory_space<vmem>>, vector<16x256xbf16>,
    %c1_i32_66 = arith.constant 1 : i32
    %108 = tpu.dynamic_rotate %72 by %c1_i32_66 dim 1 : vector<16x256xf32>, i32 -> vector<16x256xf32>
    %c3_67 = arith.constant 3 : index
    %c0_68 = arith.constant 0 : index
    %c0_69 = arith.constant 0 : index
    %109 = vector.load %arg2[%c3_67, %c0_68, %c0_69] : memref<9x1x256xf32, #tpu.memory_space<vmem>>, vector<1x1x256xf32>
    %110 = vector.shape_cast %109 : vector<1x1x256xf32> to vector<1x256xf32>
    %111 = vector.broadcast %110 : vector<1x256xf32> to vector<16x256xf32>
    %112 = arith.mulf %108, %111 : vector<16x256xf32>
    %113 = arith.truncf %112 : vector<16x256xf32> to vector<16x256xbf16>
    %c48_70 = arith.constant 48 : index
    %c0_71 = arith.constant 0 : index
    %114 = vector.load %arg12[%c48_70, %c0_71] : memref<144x256xbf16, #tpu.memory_space<vmem>>, vector<16x256xbf16>
    tpu.vector_store %arg12[%c48_70, %c0_71], %113 {strides = array<i32>} : memref<144x256xbf16, #tpu.memory_space<vmem>>, vector<16x256xbf16>,
    %115 = arith.truncf %72 : vector<16x256xf32> to vector<16x256xbf16>
    %c64_72 = arith.constant 64 : index
    %c0_73 = arith.constant 0 : index
    %116 = vector.load %arg12[%c64_72, %c0_73] : memref<144x256xbf16, #tpu.memory_space<vmem>>, vector<16x256xbf16>
    tpu.vector_store %arg12[%c64_72, %c0_73], %115 {strides = array<i32>} : memref<144x256xbf16, #tpu.memory_space<vmem>>, vector<16x256xbf16>,
    %c255_i32_74 = arith.constant 255 : i32
    %117 = tpu.dynamic_rotate %72 by %c255_i32_74 dim 1 : vector<16x256xf32>, i32 -> vector<16x256xf32>
    %c5_75 = arith.constant 5 : index
    %c0_76 = arith.constant 0 : index
    %c0_77 = arith.constant 0 : index
    %118 = vector.load %arg2[%c5_75, %c0_76, %c0_77] : memref<9x1x256xf32, #tpu.memory_space<vmem>>, vector<1x1x256xf32>
    %119 = vector.shape_cast %118 : vector<1x1x256xf32> to vector<1x256xf32>
    %120 = vector.broadcast %119 : vector<1x256xf32> to vector<16x256xf32>
    %121 = arith.mulf %117, %120 : vector<16x256xf32>
    %122 = arith.truncf %121 : vector<16x256xf32> to vector<16x256xbf16>
    %c80_78 = arith.constant 80 : index
    %c0_79 = arith.constant 0 : index
    %123 = vector.load %arg12[%c80_78, %c0_79] : memref<144x256xbf16, #tpu.memory_space<vmem>>, vector<16x256xbf16>
    tpu.vector_store %arg12[%c80_78, %c0_79], %122 {strides = array<i32>} : memref<144x256xbf16, #tpu.memory_space<vmem>>, vector<16x256xbf16>,
    %c241_i32_80 = arith.constant 241 : i32
    %124 = tpu.dynamic_rotate %72 by %c241_i32_80 dim 1 : vector<16x256xf32>, i32 -> vector<16x256xf32>
    %c6_81 = arith.constant 6 : index
    %c0_82 = arith.constant 0 : index
    %c0_83 = arith.constant 0 : index
    %125 = vector.load %arg2[%c6_81, %c0_82, %c0_83] : memref<9x1x256xf32, #tpu.memory_space<vmem>>, vector<1x1x256xf32>
    %126 = vector.shape_cast %125 : vector<1x1x256xf32> to vector<1x256xf32>
    %127 = vector.broadcast %126 : vector<1x256xf32> to vector<16x256xf32>
    %128 = arith.mulf %124, %127 : vector<16x256xf32>
    %129 = arith.truncf %128 : vector<16x256xf32> to vector<16x256xbf16>
    %c96_84 = arith.constant 96 : index
    %c0_85 = arith.constant 0 : index
    %130 = vector.load %arg12[%c96_84, %c0_85] : memref<144x256xbf16, #tpu.memory_space<vmem>>, vector<16x256xbf16>
    tpu.vector_store %arg12[%c96_84, %c0_85], %129 {strides = array<i32>} : memref<144x256xbf16, #tpu.memory_space<vmem>>, vector<16x256xbf16>,
    %c240_i32_86 = arith.constant 240 : i32
    %131 = tpu.dynamic_rotate %72 by %c240_i32_86 dim 1 : vector<16x256xf32>, i32 -> vector<16x256xf32>
    %c7_87 = arith.constant 7 : index
    %c0_88 = arith.constant 0 : index
    %c0_89 = arith.constant 0 : index
    %132 = vector.load %arg2[%c7_87, %c0_88, %c0_89] : memref<9x1x256xf32, #tpu.memory_space<vmem>>, vector<1x1x256xf32>
    %133 = vector.shape_cast %132 : vector<1x1x256xf32> to vector<1x256xf32>
    %134 = vector.broadcast %133 : vector<1x256xf32> to vector<16x256xf32>
    %135 = arith.mulf %131, %134 : vector<16x256xf32>
    %136 = arith.truncf %135 : vector<16x256xf32> to vector<16x256xbf16>
    %c112_90 = arith.constant 112 : index
    %c0_91 = arith.constant 0 : index
    %137 = vector.load %arg12[%c112_90, %c0_91] : memref<144x256xbf16, #tpu.memory_space<vmem>>, vector<16x256xbf16>
    tpu.vector_store %arg12[%c112_90, %c0_91], %136 {strides = array<i32>} : memref<144x256xbf16, #tpu.memory_space<vmem>>, vector<16x256xbf16>,
    %c239_i32_92 = arith.constant 239 : i32
    %138 = tpu.dynamic_rotate %72 by %c239_i32_92 dim 1 : vector<16x256xf32>, i32 -> vector<16x256xf32>
    %c8_93 = arith.constant 8 : index
    %c0_94 = arith.constant 0 : index
    %c0_95 = arith.constant 0 : index
    %139 = vector.load %arg2[%c8_93, %c0_94, %c0_95] : memref<9x1x256xf32, #tpu.memory_space<vmem>>, vector<1x1x256xf32>
    %140 = vector.shape_cast %139 : vector<1x1x256xf32> to vector<1x256xf32>
    %141 = vector.broadcast %140 : vector<1x256xf32> to vector<16x256xf32>
    %142 = arith.mulf %138, %141 : vector<16x256xf32>
    %143 = arith.truncf %142 : vector<16x256xf32> to vector<16x256xbf16>
    %c128_96 = arith.constant 128 : index
    %c0_97 = arith.constant 0 : index
    %144 = vector.load %arg12[%c128_96, %c0_97] : memref<144x256xbf16, #tpu.memory_space<vmem>>, vector<16x256xbf16>
    tpu.vector_store %arg12[%c128_96, %c0_97], %143 {strides = array<i32>} : memref<144x256xbf16, #tpu.memory_space<vmem>>, vector<16x256xbf16>,
    %c1_98 = arith.constant 1 : index
    %c0_99 = arith.constant 0 : index
    %c0_100 = arith.constant 0 : index
    %145 = vector.load %arg3[%c1_98, %c0_99, %c0_100] : memref<7x16x144xbf16, #tpu.memory_space<vmem>>, vector<1x16x144xbf16>
    %146 = vector.shape_cast %145 : vector<1x16x144xbf16> to vector<16x144xbf16>
    %c0_101 = arith.constant 0 : index
    %c0_102 = arith.constant 0 : index
    %147 = vector.load %arg12[%c0_101, %c0_102] : memref<144x256xbf16, #tpu.memory_space<vmem>>, vector<144x256xbf16>
    %cst_103 = arith.constant dense<0.000000e+00> : vector<16x256xf32>
    %148 = tpu.matmul %146, %147, %cst_103 {dimension_numbers = #tpu.dot_dimension_numbers<[1], [0], [0], [1], [0, 0, 1, 1], [], []>} : vector<16x144xbf16>, vector<144x256xbf16>, vector<16x256xf32> -> vector<16x256xf32>
    %c1_104 = arith.constant 1 : index
    %c0_105 = arith.constant 0 : index
    %c0_106 = arith.constant 0 : index
    %149 = vector.load %arg4[%c1_104, %c0_105, %c0_106] : memref<7x16x1xf32, #tpu.memory_space<vmem>>, vector<1x16x1xf32>
    %150 = vector.shape_cast %149 : vector<1x16x1xf32> to vector<16x1xf32>
    %151 = vector.broadcast %150 : vector<16x1xf32> to vector<16x256xf32>
    %152 = arith.addf %148, %151 : vector<16x256xf32>
    %cst_107 = arith.constant 0.000000e+00 : f32
    %153 = vector.broadcast %cst_107 : f32 to vector<16x256xf32>
    %154 = arith.cmpf oge, %152, %153 : vector<16x256xf32>
    %cst_108 = arith.constant 5.000000e-02 : f32
    %155 = vector.broadcast %cst_108 : f32 to vector<16x256xf32>
    %156 = arith.mulf %155, %152 : vector<16x256xf32>
    %157 = arith.select %154, %152, %156 : vector<16x256xi1>, vector<16x256xf32>
    %158 = arith.subf %72, %157 : vector<16x256xf32>
    %c17_i32_109 = arith.constant 17 : i32
    %159 = tpu.dynamic_rotate %158 by %c17_i32_109 dim 1 : vector<16x256xf32>, i32 -> vector<16x256xf32>
    %c0_110 = arith.constant 0 : index
    %c0_111 = arith.constant 0 : index
    %c0_112 = arith.constant 0 : index
    %160 = vector.load %arg2[%c0_110, %c0_111, %c0_112] : memref<9x1x256xf32, #tpu.memory_space<vmem>>, vector<1x1x256xf32>
    %161 = vector.shape_cast %160 : vector<1x1x256xf32> to vector<1x256xf32>
    %162 = vector.broadcast %161 : vector<1x256xf32> to vector<16x256xf32>
    %163 = arith.mulf %159, %162 : vector<16x256xf32>
    %164 = arith.truncf %163 : vector<16x256xf32> to vector<16x256xbf16>
    %c0_113 = arith.constant 0 : index
    %c0_114 = arith.constant 0 : index
    %165 = vector.load %arg12[%c0_113, %c0_114] : memref<144x256xbf16, #tpu.memory_space<vmem>>, vector<16x256xbf16>
    tpu.vector_store %arg12[%c0_113, %c0_114], %164 {strides = array<i32>} : memref<144x256xbf16, #tpu.memory_space<vmem>>, vector<16x256xbf16>,
    %c16_i32_115 = arith.constant 16 : i32
    %166 = tpu.dynamic_rotate %158 by %c16_i32_115 dim 1 : vector<16x256xf32>, i32 -> vector<16x256xf32>
    %c1_116 = arith.constant 1 : index
    %c0_117 = arith.constant 0 : index
    %c0_118 = arith.constant 0 : index
    %167 = vector.load %arg2[%c1_116, %c0_117, %c0_118] : memref<9x1x256xf32, #tpu.memory_space<vmem>>, vector<1x1x256xf32>
    %168 = vector.shape_cast %167 : vector<1x1x256xf32> to vector<1x256xf32>
    %169 = vector.broadcast %168 : vector<1x256xf32> to vector<16x256xf32>
    %170 = arith.mulf %166, %169 : vector<16x256xf32>
    %171 = arith.truncf %170 : vector<16x256xf32> to vector<16x256xbf16>
    %c16_119 = arith.constant 16 : index
    %c0_120 = arith.constant 0 : index
    %172 = vector.load %arg12[%c16_119, %c0_120] : memref<144x256xbf16, #tpu.memory_space<vmem>>, vector<16x256xbf16>
    tpu.vector_store %arg12[%c16_119, %c0_120], %171 {strides = array<i32>} : memref<144x256xbf16, #tpu.memory_space<vmem>>, vector<16x256xbf16>,
    %c15_i32_121 = arith.constant 15 : i32
    %173 = tpu.dynamic_rotate %158 by %c15_i32_121 dim 1 : vector<16x256xf32>, i32 -> vector<16x256xf32>
    %c2_122 = arith.constant 2 : index
    %c0_123 = arith.constant 0 : index
    %c0_124 = arith.constant 0 : index
    %174 = vector.load %arg2[%c2_122, %c0_123, %c0_124] : memref<9x1x256xf32, #tpu.memory_space<vmem>>, vector<1x1x256xf32>
    %175 = vector.shape_cast %174 : vector<1x1x256xf32> to vector<1x256xf32>
    %176 = vector.broadcast %175 : vector<1x256xf32> to vector<16x256xf32>
    %177 = arith.mulf %173, %176 : vector<16x256xf32>
    %178 = arith.truncf %177 : vector<16x256xf32> to vector<16x256xbf16>
    %c32_125 = arith.constant 32 : index
    %c0_126 = arith.constant 0 : index
    %179 = vector.load %arg12[%c32_125, %c0_126] : memref<144x256xbf16, #tpu.memory_space<vmem>>, vector<16x256xbf16>
    tpu.vector_store %arg12[%c32_125, %c0_126], %178 {strides = array<i32>} : memref<144x256xbf16, #tpu.memory_space<vmem>>, vector<16x256xbf16>,
    %c1_i32_127 = arith.constant 1 : i32
    %180 = tpu.dynamic_rotate %158 by %c1_i32_127 dim 1 : vector<16x256xf32>, i32 -> vector<16x256xf32>
    %c3_128 = arith.constant 3 : index
    %c0_129 = arith.constant 0 : index
    %c0_130 = arith.constant 0 : index
    %181 = vector.load %arg2[%c3_128, %c0_129, %c0_130] : memref<9x1x256xf32, #tpu.memory_space<vmem>>, vector<1x1x256xf32>
    %182 = vector.shape_cast %181 : vector<1x1x256xf32> to vector<1x256xf32>
    %183 = vector.broadcast %182 : vector<1x256xf32> to vector<16x256xf32>
    %184 = arith.mulf %180, %183 : vector<16x256xf32>
    %185 = arith.truncf %184 : vector<16x256xf32> to vector<16x256xbf16>
    %c48_131 = arith.constant 48 : index
    %c0_132 = arith.constant 0 : index
    %186 = vector.load %arg12[%c48_131, %c0_132] : memref<144x256xbf16, #tpu.memory_space<vmem>>, vector<16x256xbf16>
    tpu.vector_store %arg12[%c48_131, %c0_132], %185 {strides = array<i32>} : memref<144x256xbf16, #tpu.memory_space<vmem>>, vector<16x256xbf16>,
    %187 = arith.truncf %158 : vector<16x256xf32> to vector<16x256xbf16>
    %c64_133 = arith.constant 64 : index
    %c0_134 = arith.constant 0 : index
    %188 = vector.load %arg12[%c64_133, %c0_134] : memref<144x256xbf16, #tpu.memory_space<vmem>>, vector<16x256xbf16>
    tpu.vector_store %arg12[%c64_133, %c0_134], %187 {strides = array<i32>} : memref<144x256xbf16, #tpu.memory_space<vmem>>, vector<16x256xbf16>,
    %c255_i32_135 = arith.constant 255 : i32
    %189 = tpu.dynamic_rotate %158 by %c255_i32_135 dim 1 : vector<16x256xf32>, i32 -> vector<16x256xf32>
    %c5_136 = arith.constant 5 : index
    %c0_137 = arith.constant 0 : index
    %c0_138 = arith.constant 0 : index
    %190 = vector.load %arg2[%c5_136, %c0_137, %c0_138] : memref<9x1x256xf32, #tpu.memory_space<vmem>>, vector<1x1x256xf32>
    %191 = vector.shape_cast %190 : vector<1x1x256xf32> to vector<1x256xf32>
    %192 = vector.broadcast %191 : vector<1x256xf32> to vector<16x256xf32>
    %193 = arith.mulf %189, %192 : vector<16x256xf32>
    %194 = arith.truncf %193 : vector<16x256xf32> to vector<16x256xbf16>
    %c80_139 = arith.constant 80 : index
    %c0_140 = arith.constant 0 : index
    %195 = vector.load %arg12[%c80_139, %c0_140] : memref<144x256xbf16, #tpu.memory_space<vmem>>, vector<16x256xbf16>
    tpu.vector_store %arg12[%c80_139, %c0_140], %194 {strides = array<i32>} : memref<144x256xbf16, #tpu.memory_space<vmem>>, vector<16x256xbf16>,
    %c241_i32_141 = arith.constant 241 : i32
    %196 = tpu.dynamic_rotate %158 by %c241_i32_141 dim 1 : vector<16x256xf32>, i32 -> vector<16x256xf32>
    %c6_142 = arith.constant 6 : index
    %c0_143 = arith.constant 0 : index
    %c0_144 = arith.constant 0 : index
    %197 = vector.load %arg2[%c6_142, %c0_143, %c0_144] : memref<9x1x256xf32, #tpu.memory_space<vmem>>, vector<1x1x256xf32>
    %198 = vector.shape_cast %197 : vector<1x1x256xf32> to vector<1x256xf32>
    %199 = vector.broadcast %198 : vector<1x256xf32> to vector<16x256xf32>
    %200 = arith.mulf %196, %199 : vector<16x256xf32>
    %201 = arith.truncf %200 : vector<16x256xf32> to vector<16x256xbf16>
    %c96_145 = arith.constant 96 : index
    %c0_146 = arith.constant 0 : index
    %202 = vector.load %arg12[%c96_145, %c0_146] : memref<144x256xbf16, #tpu.memory_space<vmem>>, vector<16x256xbf16>
    tpu.vector_store %arg12[%c96_145, %c0_146], %201 {strides = array<i32>} : memref<144x256xbf16, #tpu.memory_space<vmem>>, vector<16x256xbf16>,
    %c240_i32_147 = arith.constant 240 : i32
    %203 = tpu.dynamic_rotate %158 by %c240_i32_147 dim 1 : vector<16x256xf32>, i32 -> vector<16x256xf32>
    %c7_148 = arith.constant 7 : index
    %c0_149 = arith.constant 0 : index
    %c0_150 = arith.constant 0 : index
    %204 = vector.load %arg2[%c7_148, %c0_149, %c0_150] : memref<9x1x256xf32, #tpu.memory_space<vmem>>, vector<1x1x256xf32>
    %205 = vector.shape_cast %204 : vector<1x1x256xf32> to vector<1x256xf32>
    %206 = vector.broadcast %205 : vector<1x256xf32> to vector<16x256xf32>
    %207 = arith.mulf %203, %206 : vector<16x256xf32>
    %208 = arith.truncf %207 : vector<16x256xf32> to vector<16x256xbf16>
    %c112_151 = arith.constant 112 : index
    %c0_152 = arith.constant 0 : index
    %209 = vector.load %arg12[%c112_151, %c0_152] : memref<144x256xbf16, #tpu.memory_space<vmem>>, vector<16x256xbf16>
    tpu.vector_store %arg12[%c112_151, %c0_152], %208 {strides = array<i32>} : memref<144x256xbf16, #tpu.memory_space<vmem>>, vector<16x256xbf16>,
    %c239_i32_153 = arith.constant 239 : i32
    %210 = tpu.dynamic_rotate %158 by %c239_i32_153 dim 1 : vector<16x256xf32>, i32 -> vector<16x256xf32>
    %c8_154 = arith.constant 8 : index
    %c0_155 = arith.constant 0 : index
    %c0_156 = arith.constant 0 : index
    %211 = vector.load %arg2[%c8_154, %c0_155, %c0_156] : memref<9x1x256xf32, #tpu.memory_space<vmem>>, vector<1x1x256xf32>
    %212 = vector.shape_cast %211 : vector<1x1x256xf32> to vector<1x256xf32>
    %213 = vector.broadcast %212 : vector<1x256xf32> to vector<16x256xf32>
    %214 = arith.mulf %210, %213 : vector<16x256xf32>
    %215 = arith.truncf %214 : vector<16x256xf32> to vector<16x256xbf16>
    %c128_157 = arith.constant 128 : index
    %c0_158 = arith.constant 0 : index
    %216 = vector.load %arg12[%c128_157, %c0_158] : memref<144x256xbf16, #tpu.memory_space<vmem>>, vector<16x256xbf16>
    tpu.vector_store %arg12[%c128_157, %c0_158], %215 {strides = array<i32>} : memref<144x256xbf16, #tpu.memory_space<vmem>>, vector<16x256xbf16>,
    %c2_159 = arith.constant 2 : index
    %c0_160 = arith.constant 0 : index
    %c0_161 = arith.constant 0 : index
    %217 = vector.load %arg3[%c2_159, %c0_160, %c0_161] : memref<7x16x144xbf16, #tpu.memory_space<vmem>>, vector<1x16x144xbf16>
    %218 = vector.shape_cast %217 : vector<1x16x144xbf16> to vector<16x144xbf16>
    %c0_162 = arith.constant 0 : index
    %c0_163 = arith.constant 0 : index
    %219 = vector.load %arg12[%c0_162, %c0_163] : memref<144x256xbf16, #tpu.memory_space<vmem>>, vector<144x256xbf16>
    %cst_164 = arith.constant dense<0.000000e+00> : vector<16x256xf32>
    %220 = tpu.matmul %218, %219, %cst_164 {dimension_numbers = #tpu.dot_dimension_numbers<[1], [0], [0], [1], [0, 0, 1, 1], [], []>} : vector<16x144xbf16>, vector<144x256xbf16>, vector<16x256xf32> -> vector<16x256xf32>
    %c2_165 = arith.constant 2 : index
    %c0_166 = arith.constant 0 : index
    %c0_167 = arith.constant 0 : index
    %221 = vector.load %arg4[%c2_165, %c0_166, %c0_167] : memref<7x16x1xf32, #tpu.memory_space<vmem>>, vector<1x16x1xf32>
    %222 = vector.shape_cast %221 : vector<1x16x1xf32> to vector<16x1xf32>
    %223 = vector.broadcast %222 : vector<16x1xf32> to vector<16x256xf32>
    %224 = arith.addf %220, %223 : vector<16x256xf32>
    %cst_168 = arith.constant 0.000000e+00 : f32
    %225 = vector.broadcast %cst_168 : f32 to vector<16x256xf32>
    %226 = arith.cmpf oge, %224, %225 : vector<16x256xf32>
    %cst_169 = arith.constant 5.000000e-02 : f32
    %227 = vector.broadcast %cst_169 : f32 to vector<16x256xf32>
    %228 = arith.mulf %227, %224 : vector<16x256xf32>
    %229 = arith.select %226, %224, %228 : vector<16x256xi1>, vector<16x256xf32>
    %230 = arith.subf %158, %229 : vector<16x256xf32>
    %c1_170 = arith.constant 1 : index
    %c0_171 = arith.constant 0 : index
    %c0_172 = arith.constant 0 : index
    %231 = vector.load %arg5[%c1_170, %c0_171, %c0_172] : memref<4x16x16xbf16, #tpu.memory_space<vmem>>, vector<1x16x16xbf16>
    %232 = vector.shape_cast %231 : vector<1x16x16xbf16> to vector<16x16xbf16>
    %233 = arith.truncf %230 : vector<16x256xf32> to vector<16x256xbf16>
    %cst_173 = arith.constant dense<0.000000e+00> : vector<16x256xf32>
    %234 = tpu.matmul %232, %233, %cst_173 {dimension_numbers = #tpu.dot_dimension_numbers<[1], [0], [0], [1], [0, 0, 1, 1], [], []>} : vector<16x16xbf16>, vector<16x256xbf16>, vector<16x256xf32> -> vector<16x256xf32>
    %c1_174 = arith.constant 1 : index
    %c0_175 = arith.constant 0 : index
    %c0_176 = arith.constant 0 : index
    %235 = vector.load %arg6[%c1_174, %c0_175, %c0_176] : memref<4x16x1xf32, #tpu.memory_space<vmem>>, vector<1x16x1xf32>
    %236 = vector.shape_cast %235 : vector<1x16x1xf32> to vector<16x1xf32>
    %237 = vector.broadcast %236 : vector<16x1xf32> to vector<16x256xf32>
    %238 = arith.addf %234, %237 : vector<16x256xf32>
    %cst_177 = arith.constant 0.000000e+00 : f32
    %239 = vector.broadcast %cst_177 : f32 to vector<16x256xf32>
    %240 = arith.cmpf oge, %238, %239 : vector<16x256xf32>
    %cst_178 = arith.constant 5.000000e-02 : f32
    %241 = vector.broadcast %cst_178 : f32 to vector<16x256xf32>
    %242 = arith.mulf %241, %238 : vector<16x256xf32>
    %243 = arith.select %240, %238, %242 : vector<16x256xi1>, vector<16x256xf32>
    %244 = arith.addf %86, %243 : vector<16x256xf32>
    %c17_i32_179 = arith.constant 17 : i32
    %245 = tpu.dynamic_rotate %229 by %c17_i32_179 dim 1 : vector<16x256xf32>, i32 -> vector<16x256xf32>
    %c0_180 = arith.constant 0 : index
    %c0_181 = arith.constant 0 : index
    %c0_182 = arith.constant 0 : index
    %246 = vector.load %arg2[%c0_180, %c0_181, %c0_182] : memref<9x1x256xf32, #tpu.memory_space<vmem>>, vector<1x1x256xf32>
    %247 = vector.shape_cast %246 : vector<1x1x256xf32> to vector<1x256xf32>
    %248 = vector.broadcast %247 : vector<1x256xf32> to vector<16x256xf32>
    %249 = arith.mulf %245, %248 : vector<16x256xf32>
    %250 = arith.truncf %249 : vector<16x256xf32> to vector<16x256xbf16>
    %c0_183 = arith.constant 0 : index
    %c0_184 = arith.constant 0 : index
    %251 = vector.load %arg12[%c0_183, %c0_184] : memref<144x256xbf16, #tpu.memory_space<vmem>>, vector<16x256xbf16>
    tpu.vector_store %arg12[%c0_183, %c0_184], %250 {strides = array<i32>} : memref<144x256xbf16, #tpu.memory_space<vmem>>, vector<16x256xbf16>,
    %c16_i32_185 = arith.constant 16 : i32
    %252 = tpu.dynamic_rotate %229 by %c16_i32_185 dim 1 : vector<16x256xf32>, i32 -> vector<16x256xf32>
    %c1_186 = arith.constant 1 : index
    %c0_187 = arith.constant 0 : index
    %c0_188 = arith.constant 0 : index
    %253 = vector.load %arg2[%c1_186, %c0_187, %c0_188] : memref<9x1x256xf32, #tpu.memory_space<vmem>>, vector<1x1x256xf32>
    %254 = vector.shape_cast %253 : vector<1x1x256xf32> to vector<1x256xf32>
    %255 = vector.broadcast %254 : vector<1x256xf32> to vector<16x256xf32>
    %256 = arith.mulf %252, %255 : vector<16x256xf32>
    %257 = arith.truncf %256 : vector<16x256xf32> to vector<16x256xbf16>
    %c16_189 = arith.constant 16 : index
    %c0_190 = arith.constant 0 : index
    %258 = vector.load %arg12[%c16_189, %c0_190] : memref<144x256xbf16, #tpu.memory_space<vmem>>, vector<16x256xbf16>
    tpu.vector_store %arg12[%c16_189, %c0_190], %257 {strides = array<i32>} : memref<144x256xbf16, #tpu.memory_space<vmem>>, vector<16x256xbf16>,
    %c15_i32_191 = arith.constant 15 : i32
    %259 = tpu.dynamic_rotate %229 by %c15_i32_191 dim 1 : vector<16x256xf32>, i32 -> vector<16x256xf32>
    %c2_192 = arith.constant 2 : index
    %c0_193 = arith.constant 0 : index
    %c0_194 = arith.constant 0 : index
    %260 = vector.load %arg2[%c2_192, %c0_193, %c0_194] : memref<9x1x256xf32, #tpu.memory_space<vmem>>, vector<1x1x256xf32>
    %261 = vector.shape_cast %260 : vector<1x1x256xf32> to vector<1x256xf32>
    %262 = vector.broadcast %261 : vector<1x256xf32> to vector<16x256xf32>
    %263 = arith.mulf %259, %262 : vector<16x256xf32>
    %264 = arith.truncf %263 : vector<16x256xf32> to vector<16x256xbf16>
    %c32_195 = arith.constant 32 : index
    %c0_196 = arith.constant 0 : index
    %265 = vector.load %arg12[%c32_195, %c0_196] : memref<144x256xbf16, #tpu.memory_space<vmem>>, vector<16x256xbf16>
    tpu.vector_store %arg12[%c32_195, %c0_196], %264 {strides = array<i32>} : memref<144x256xbf16, #tpu.memory_space<vmem>>, vector<16x256xbf16>,
    %c1_i32_197 = arith.constant 1 : i32
    %266 = tpu.dynamic_rotate %229 by %c1_i32_197 dim 1 : vector<16x256xf32>, i32 -> vector<16x256xf32>
    %c3_198 = arith.constant 3 : index
    %c0_199 = arith.constant 0 : index
    %c0_200 = arith.constant 0 : index
    %267 = vector.load %arg2[%c3_198, %c0_199, %c0_200] : memref<9x1x256xf32, #tpu.memory_space<vmem>>, vector<1x1x256xf32>
    %268 = vector.shape_cast %267 : vector<1x1x256xf32> to vector<1x256xf32>
    %269 = vector.broadcast %268 : vector<1x256xf32> to vector<16x256xf32>
    %270 = arith.mulf %266, %269 : vector<16x256xf32>
    %271 = arith.truncf %270 : vector<16x256xf32> to vector<16x256xbf16>
    %c48_201 = arith.constant 48 : index
    %c0_202 = arith.constant 0 : index
    %272 = vector.load %arg12[%c48_201, %c0_202] : memref<144x256xbf16, #tpu.memory_space<vmem>>, vector<16x256xbf16>
    tpu.vector_store %arg12[%c48_201, %c0_202], %271 {strides = array<i32>} : memref<144x256xbf16, #tpu.memory_space<vmem>>, vector<16x256xbf16>,
    %273 = arith.truncf %229 : vector<16x256xf32> to vector<16x256xbf16>
    %c64_203 = arith.constant 64 : index
    %c0_204 = arith.constant 0 : index
    %274 = vector.load %arg12[%c64_203, %c0_204] : memref<144x256xbf16, #tpu.memory_space<vmem>>, vector<16x256xbf16>
    tpu.vector_store %arg12[%c64_203, %c0_204], %273 {strides = array<i32>} : memref<144x256xbf16, #tpu.memory_space<vmem>>, vector<16x256xbf16>,
    %c255_i32_205 = arith.constant 255 : i32
    %275 = tpu.dynamic_rotate %229 by %c255_i32_205 dim 1 : vector<16x256xf32>, i32 -> vector<16x256xf32>
    %c5_206 = arith.constant 5 : index
    %c0_207 = arith.constant 0 : index
    %c0_208 = arith.constant 0 : index
    %276 = vector.load %arg2[%c5_206, %c0_207, %c0_208] : memref<9x1x256xf32, #tpu.memory_space<vmem>>, vector<1x1x256xf32>
    %277 = vector.shape_cast %276 : vector<1x1x256xf32> to vector<1x256xf32>
    %278 = vector.broadcast %277 : vector<1x256xf32> to vector<16x256xf32>
    %279 = arith.mulf %275, %278 : vector<16x256xf32>
    %280 = arith.truncf %279 : vector<16x256xf32> to vector<16x256xbf16>
    %c80_209 = arith.constant 80 : index
    %c0_210 = arith.constant 0 : index
    %281 = vector.load %arg12[%c80_209, %c0_210] : memref<144x256xbf16, #tpu.memory_space<vmem>>, vector<16x256xbf16>
    tpu.vector_store %arg12[%c80_209, %c0_210], %280 {strides = array<i32>} : memref<144x256xbf16, #tpu.memory_space<vmem>>, vector<16x256xbf16>,
    %c241_i32_211 = arith.constant 241 : i32
    %282 = tpu.dynamic_rotate %229 by %c241_i32_211 dim 1 : vector<16x256xf32>, i32 -> vector<16x256xf32>
    %c6_212 = arith.constant 6 : index
    %c0_213 = arith.constant 0 : index
    %c0_214 = arith.constant 0 : index
    %283 = vector.load %arg2[%c6_212, %c0_213, %c0_214] : memref<9x1x256xf32, #tpu.memory_space<vmem>>, vector<1x1x256xf32>
    %284 = vector.shape_cast %283 : vector<1x1x256xf32> to vector<1x256xf32>
    %285 = vector.broadcast %284 : vector<1x256xf32> to vector<16x256xf32>
    %286 = arith.mulf %282, %285 : vector<16x256xf32>
    %287 = arith.truncf %286 : vector<16x256xf32> to vector<16x256xbf16>
    %c96_215 = arith.constant 96 : index
    %c0_216 = arith.constant 0 : index
    %288 = vector.load %arg12[%c96_215, %c0_216] : memref<144x256xbf16, #tpu.memory_space<vmem>>, vector<16x256xbf16>
    tpu.vector_store %arg12[%c96_215, %c0_216], %287 {strides = array<i32>} : memref<144x256xbf16, #tpu.memory_space<vmem>>, vector<16x256xbf16>,
    %c240_i32_217 = arith.constant 240 : i32
    %289 = tpu.dynamic_rotate %229 by %c240_i32_217 dim 1 : vector<16x256xf32>, i32 -> vector<16x256xf32>
    %c7_218 = arith.constant 7 : index
    %c0_219 = arith.constant 0 : index
    %c0_220 = arith.constant 0 : index
    %290 = vector.load %arg2[%c7_218, %c0_219, %c0_220] : memref<9x1x256xf32, #tpu.memory_space<vmem>>, vector<1x1x256xf32>
    %291 = vector.shape_cast %290 : vector<1x1x256xf32> to vector<1x256xf32>
    %292 = vector.broadcast %291 : vector<1x256xf32> to vector<16x256xf32>
    %293 = arith.mulf %289, %292 : vector<16x256xf32>
    %294 = arith.truncf %293 : vector<16x256xf32> to vector<16x256xbf16>
    %c112_221 = arith.constant 112 : index
    %c0_222 = arith.constant 0 : index
    %295 = vector.load %arg12[%c112_221, %c0_222] : memref<144x256xbf16, #tpu.memory_space<vmem>>, vector<16x256xbf16>
    tpu.vector_store %arg12[%c112_221, %c0_222], %294 {strides = array<i32>} : memref<144x256xbf16, #tpu.memory_space<vmem>>, vector<16x256xbf16>,
    %c239_i32_223 = arith.constant 239 : i32
    %296 = tpu.dynamic_rotate %229 by %c239_i32_223 dim 1 : vector<16x256xf32>, i32 -> vector<16x256xf32>
    %c8_224 = arith.constant 8 : index
    %c0_225 = arith.constant 0 : index
    %c0_226 = arith.constant 0 : index
    %297 = vector.load %arg2[%c8_224, %c0_225, %c0_226] : memref<9x1x256xf32, #tpu.memory_space<vmem>>, vector<1x1x256xf32>
    %298 = vector.shape_cast %297 : vector<1x1x256xf32> to vector<1x256xf32>
    %299 = vector.broadcast %298 : vector<1x256xf32> to vector<16x256xf32>
    %300 = arith.mulf %296, %299 : vector<16x256xf32>
    %301 = arith.truncf %300 : vector<16x256xf32> to vector<16x256xbf16>
    %c128_227 = arith.constant 128 : index
    %c0_228 = arith.constant 0 : index
    %302 = vector.load %arg12[%c128_227, %c0_228] : memref<144x256xbf16, #tpu.memory_space<vmem>>, vector<16x256xbf16>
    tpu.vector_store %arg12[%c128_227, %c0_228], %301 {strides = array<i32>} : memref<144x256xbf16, #tpu.memory_space<vmem>>, vector<16x256xbf16>,
    %c3_229 = arith.constant 3 : index
    %c0_230 = arith.constant 0 : index
    %c0_231 = arith.constant 0 : index
    %303 = vector.load %arg3[%c3_229, %c0_230, %c0_231] : memref<7x16x144xbf16, #tpu.memory_space<vmem>>, vector<1x16x144xbf16>
    %304 = vector.shape_cast %303 : vector<1x16x144xbf16> to vector<16x144xbf16>
    %c0_232 = arith.constant 0 : index
    %c0_233 = arith.constant 0 : index
    %305 = vector.load %arg12[%c0_232, %c0_233] : memref<144x256xbf16, #tpu.memory_space<vmem>>, vector<144x256xbf16>
    %cst_234 = arith.constant dense<0.000000e+00> : vector<16x256xf32>
    %306 = tpu.matmul %304, %305, %cst_234 {dimension_numbers = #tpu.dot_dimension_numbers<[1], [0], [0], [1], [0, 0, 1, 1], [], []>} : vector<16x144xbf16>, vector<144x256xbf16>, vector<16x256xf32> -> vector<16x256xf32>
    %c3_235 = arith.constant 3 : index
    %c0_236 = arith.constant 0 : index
    %c0_237 = arith.constant 0 : index
    %307 = vector.load %arg4[%c3_235, %c0_236, %c0_237] : memref<7x16x1xf32, #tpu.memory_space<vmem>>, vector<1x16x1xf32>
    %308 = vector.shape_cast %307 : vector<1x16x1xf32> to vector<16x1xf32>
    %309 = vector.broadcast %308 : vector<16x1xf32> to vector<16x256xf32>
    %310 = arith.addf %306, %309 : vector<16x256xf32>
    %cst_238 = arith.constant 0.000000e+00 : f32
    %311 = vector.broadcast %cst_238 : f32 to vector<16x256xf32>
    %312 = arith.cmpf oge, %310, %311 : vector<16x256xf32>
    %cst_239 = arith.constant 5.000000e-02 : f32
    %313 = vector.broadcast %cst_239 : f32 to vector<16x256xf32>
    %314 = arith.mulf %313, %310 : vector<16x256xf32>
    %315 = arith.select %312, %310, %314 : vector<16x256xi1>, vector<16x256xf32>
    %316 = arith.subf %229, %315 : vector<16x256xf32>
    %c17_i32_240 = arith.constant 17 : i32
    %317 = tpu.dynamic_rotate %316 by %c17_i32_240 dim 1 : vector<16x256xf32>, i32 -> vector<16x256xf32>
    %c0_241 = arith.constant 0 : index
    %c0_242 = arith.constant 0 : index
    %c0_243 = arith.constant 0 : index
    %318 = vector.load %arg2[%c0_241, %c0_242, %c0_243] : memref<9x1x256xf32, #tpu.memory_space<vmem>>, vector<1x1x256xf32>
    %319 = vector.shape_cast %318 : vector<1x1x256xf32> to vector<1x256xf32>
    %320 = vector.broadcast %319 : vector<1x256xf32> to vector<16x256xf32>
    %321 = arith.mulf %317, %320 : vector<16x256xf32>
    %322 = arith.truncf %321 : vector<16x256xf32> to vector<16x256xbf16>
    %c0_244 = arith.constant 0 : index
    %c0_245 = arith.constant 0 : index
    %323 = vector.load %arg12[%c0_244, %c0_245] : memref<144x256xbf16, #tpu.memory_space<vmem>>, vector<16x256xbf16>
    tpu.vector_store %arg12[%c0_244, %c0_245], %322 {strides = array<i32>} : memref<144x256xbf16, #tpu.memory_space<vmem>>, vector<16x256xbf16>,
    %c16_i32_246 = arith.constant 16 : i32
    %324 = tpu.dynamic_rotate %316 by %c16_i32_246 dim 1 : vector<16x256xf32>, i32 -> vector<16x256xf32>
    %c1_247 = arith.constant 1 : index
    %c0_248 = arith.constant 0 : index
    %c0_249 = arith.constant 0 : index
    %325 = vector.load %arg2[%c1_247, %c0_248, %c0_249] : memref<9x1x256xf32, #tpu.memory_space<vmem>>, vector<1x1x256xf32>
    %326 = vector.shape_cast %325 : vector<1x1x256xf32> to vector<1x256xf32>
    %327 = vector.broadcast %326 : vector<1x256xf32> to vector<16x256xf32>
    %328 = arith.mulf %324, %327 : vector<16x256xf32>
    %329 = arith.truncf %328 : vector<16x256xf32> to vector<16x256xbf16>
    %c16_250 = arith.constant 16 : index
    %c0_251 = arith.constant 0 : index
    %330 = vector.load %arg12[%c16_250, %c0_251] : memref<144x256xbf16, #tpu.memory_space<vmem>>, vector<16x256xbf16>
    tpu.vector_store %arg12[%c16_250, %c0_251], %329 {strides = array<i32>} : memref<144x256xbf16, #tpu.memory_space<vmem>>, vector<16x256xbf16>,
    %c15_i32_252 = arith.constant 15 : i32
    %331 = tpu.dynamic_rotate %316 by %c15_i32_252 dim 1 : vector<16x256xf32>, i32 -> vector<16x256xf32>
    %c2_253 = arith.constant 2 : index
    %c0_254 = arith.constant 0 : index
    %c0_255 = arith.constant 0 : index
    %332 = vector.load %arg2[%c2_253, %c0_254, %c0_255] : memref<9x1x256xf32, #tpu.memory_space<vmem>>, vector<1x1x256xf32>
    %333 = vector.shape_cast %332 : vector<1x1x256xf32> to vector<1x256xf32>
    %334 = vector.broadcast %333 : vector<1x256xf32> to vector<16x256xf32>
    %335 = arith.mulf %331, %334 : vector<16x256xf32>
    %336 = arith.truncf %335 : vector<16x256xf32> to vector<16x256xbf16>
    %c32_256 = arith.constant 32 : index
    %c0_257 = arith.constant 0 : index
    %337 = vector.load %arg12[%c32_256, %c0_257] : memref<144x256xbf16, #tpu.memory_space<vmem>>, vector<16x256xbf16>
    tpu.vector_store %arg12[%c32_256, %c0_257], %336 {strides = array<i32>} : memref<144x256xbf16, #tpu.memory_space<vmem>>, vector<16x256xbf16>,
    %c1_i32_258 = arith.constant 1 : i32
    %338 = tpu.dynamic_rotate %316 by %c1_i32_258 dim 1 : vector<16x256xf32>, i32 -> vector<16x256xf32>
    %c3_259 = arith.constant 3 : index
    %c0_260 = arith.constant 0 : index
    %c0_261 = arith.constant 0 : index
    %339 = vector.load %arg2[%c3_259, %c0_260, %c0_261] : memref<9x1x256xf32, #tpu.memory_space<vmem>>, vector<1x1x256xf32>
    %340 = vector.shape_cast %339 : vector<1x1x256xf32> to vector<1x256xf32>
    %341 = vector.broadcast %340 : vector<1x256xf32> to vector<16x256xf32>
    %342 = arith.mulf %338, %341 : vector<16x256xf32>
    %343 = arith.truncf %342 : vector<16x256xf32> to vector<16x256xbf16>
    %c48_262 = arith.constant 48 : index
    %c0_263 = arith.constant 0 : index
    %344 = vector.load %arg12[%c48_262, %c0_263] : memref<144x256xbf16, #tpu.memory_space<vmem>>, vector<16x256xbf16>
    tpu.vector_store %arg12[%c48_262, %c0_263], %343 {strides = array<i32>} : memref<144x256xbf16, #tpu.memory_space<vmem>>, vector<16x256xbf16>,
    %345 = arith.truncf %316 : vector<16x256xf32> to vector<16x256xbf16>
    %c64_264 = arith.constant 64 : index
    %c0_265 = arith.constant 0 : index
    %346 = vector.load %arg12[%c64_264, %c0_265] : memref<144x256xbf16, #tpu.memory_space<vmem>>, vector<16x256xbf16>
    tpu.vector_store %arg12[%c64_264, %c0_265], %345 {strides = array<i32>} : memref<144x256xbf16, #tpu.memory_space<vmem>>, vector<16x256xbf16>,
    %c255_i32_266 = arith.constant 255 : i32
    %347 = tpu.dynamic_rotate %316 by %c255_i32_266 dim 1 : vector<16x256xf32>, i32 -> vector<16x256xf32>
    %c5_267 = arith.constant 5 : index
    %c0_268 = arith.constant 0 : index
    %c0_269 = arith.constant 0 : index
    %348 = vector.load %arg2[%c5_267, %c0_268, %c0_269] : memref<9x1x256xf32, #tpu.memory_space<vmem>>, vector<1x1x256xf32>
    %349 = vector.shape_cast %348 : vector<1x1x256xf32> to vector<1x256xf32>
    %350 = vector.broadcast %349 : vector<1x256xf32> to vector<16x256xf32>
    %351 = arith.mulf %347, %350 : vector<16x256xf32>
    %352 = arith.truncf %351 : vector<16x256xf32> to vector<16x256xbf16>
    %c80_270 = arith.constant 80 : index
    %c0_271 = arith.constant 0 : index
    %353 = vector.load %arg12[%c80_270, %c0_271] : memref<144x256xbf16, #tpu.memory_space<vmem>>, vector<16x256xbf16>
    tpu.vector_store %arg12[%c80_270, %c0_271], %352 {strides = array<i32>} : memref<144x256xbf16, #tpu.memory_space<vmem>>, vector<16x256xbf16>,
    %c241_i32_272 = arith.constant 241 : i32
    %354 = tpu.dynamic_rotate %316 by %c241_i32_272 dim 1 : vector<16x256xf32>, i32 -> vector<16x256xf32>
    %c6_273 = arith.constant 6 : index
    %c0_274 = arith.constant 0 : index
    %c0_275 = arith.constant 0 : index
    %355 = vector.load %arg2[%c6_273, %c0_274, %c0_275] : memref<9x1x256xf32, #tpu.memory_space<vmem>>, vector<1x1x256xf32>
    %356 = vector.shape_cast %355 : vector<1x1x256xf32> to vector<1x256xf32>
    %357 = vector.broadcast %356 : vector<1x256xf32> to vector<16x256xf32>
    %358 = arith.mulf %354, %357 : vector<16x256xf32>
    %359 = arith.truncf %358 : vector<16x256xf32> to vector<16x256xbf16>
    %c96_276 = arith.constant 96 : index
    %c0_277 = arith.constant 0 : index
    %360 = vector.load %arg12[%c96_276, %c0_277] : memref<144x256xbf16, #tpu.memory_space<vmem>>, vector<16x256xbf16>
    tpu.vector_store %arg12[%c96_276, %c0_277], %359 {strides = array<i32>} : memref<144x256xbf16, #tpu.memory_space<vmem>>, vector<16x256xbf16>,
    %c240_i32_278 = arith.constant 240 : i32
    %361 = tpu.dynamic_rotate %316 by %c240_i32_278 dim 1 : vector<16x256xf32>, i32 -> vector<16x256xf32>
    %c7_279 = arith.constant 7 : index
    %c0_280 = arith.constant 0 : index
    %c0_281 = arith.constant 0 : index
    %362 = vector.load %arg2[%c7_279, %c0_280, %c0_281] : memref<9x1x256xf32, #tpu.memory_space<vmem>>, vector<1x1x256xf32>
    %363 = vector.shape_cast %362 : vector<1x1x256xf32> to vector<1x256xf32>
    %364 = vector.broadcast %363 : vector<1x256xf32> to vector<16x256xf32>
    %365 = arith.mulf %361, %364 : vector<16x256xf32>
    %366 = arith.truncf %365 : vector<16x256xf32> to vector<16x256xbf16>
    %c112_282 = arith.constant 112 : index
    %c0_283 = arith.constant 0 : index
    %367 = vector.load %arg12[%c112_282, %c0_283] : memref<144x256xbf16, #tpu.memory_space<vmem>>, vector<16x256xbf16>
    tpu.vector_store %arg12[%c112_282, %c0_283], %366 {strides = array<i32>} : memref<144x256xbf16, #tpu.memory_space<vmem>>, vector<16x256xbf16>,
    %c239_i32_284 = arith.constant 239 : i32
    %368 = tpu.dynamic_rotate %316 by %c239_i32_284 dim 1 : vector<16x256xf32>, i32 -> vector<16x256xf32>
    %c8_285 = arith.constant 8 : index
    %c0_286 = arith.constant 0 : index
    %c0_287 = arith.constant 0 : index
    %369 = vector.load %arg2[%c8_285, %c0_286, %c0_287] : memref<9x1x256xf32, #tpu.memory_space<vmem>>, vector<1x1x256xf32>
    %370 = vector.shape_cast %369 : vector<1x1x256xf32> to vector<1x256xf32>
    %371 = vector.broadcast %370 : vector<1x256xf32> to vector<16x256xf32>
    %372 = arith.mulf %368, %371 : vector<16x256xf32>
    %373 = arith.truncf %372 : vector<16x256xf32> to vector<16x256xbf16>
    %c128_288 = arith.constant 128 : index
    %c0_289 = arith.constant 0 : index
    %374 = vector.load %arg12[%c128_288, %c0_289] : memref<144x256xbf16, #tpu.memory_space<vmem>>, vector<16x256xbf16>
    tpu.vector_store %arg12[%c128_288, %c0_289], %373 {strides = array<i32>} : memref<144x256xbf16, #tpu.memory_space<vmem>>, vector<16x256xbf16>,
    %c4 = arith.constant 4 : index
    %c0_290 = arith.constant 0 : index
    %c0_291 = arith.constant 0 : index
    %375 = vector.load %arg3[%c4, %c0_290, %c0_291] : memref<7x16x144xbf16, #tpu.memory_space<vmem>>, vector<1x16x144xbf16>
    %376 = vector.shape_cast %375 : vector<1x16x144xbf16> to vector<16x144xbf16>
    %c0_292 = arith.constant 0 : index
    %c0_293 = arith.constant 0 : index
    %377 = vector.load %arg12[%c0_292, %c0_293] : memref<144x256xbf16, #tpu.memory_space<vmem>>, vector<144x256xbf16>
    %cst_294 = arith.constant dense<0.000000e+00> : vector<16x256xf32>
    %378 = tpu.matmul %376, %377, %cst_294 {dimension_numbers = #tpu.dot_dimension_numbers<[1], [0], [0], [1], [0, 0, 1, 1], [], []>} : vector<16x144xbf16>, vector<144x256xbf16>, vector<16x256xf32> -> vector<16x256xf32>
    %c4_295 = arith.constant 4 : index
    %c0_296 = arith.constant 0 : index
    %c0_297 = arith.constant 0 : index
    %379 = vector.load %arg4[%c4_295, %c0_296, %c0_297] : memref<7x16x1xf32, #tpu.memory_space<vmem>>, vector<1x16x1xf32>
    %380 = vector.shape_cast %379 : vector<1x16x1xf32> to vector<16x1xf32>
    %381 = vector.broadcast %380 : vector<16x1xf32> to vector<16x256xf32>
    %382 = arith.addf %378, %381 : vector<16x256xf32>
    %cst_298 = arith.constant 0.000000e+00 : f32
    %383 = vector.broadcast %cst_298 : f32 to vector<16x256xf32>
    %384 = arith.cmpf oge, %382, %383 : vector<16x256xf32>
    %cst_299 = arith.constant 5.000000e-02 : f32
    %385 = vector.broadcast %cst_299 : f32 to vector<16x256xf32>
    %386 = arith.mulf %385, %382 : vector<16x256xf32>
    %387 = arith.select %384, %382, %386 : vector<16x256xi1>, vector<16x256xf32>
    %388 = arith.subf %316, %387 : vector<16x256xf32>
    %c2_300 = arith.constant 2 : index
    %c0_301 = arith.constant 0 : index
    %c0_302 = arith.constant 0 : index
    %389 = vector.load %arg5[%c2_300, %c0_301, %c0_302] : memref<4x16x16xbf16, #tpu.memory_space<vmem>>, vector<1x16x16xbf16>
    %390 = vector.shape_cast %389 : vector<1x16x16xbf16> to vector<16x16xbf16>
    %391 = arith.truncf %388 : vector<16x256xf32> to vector<16x256xbf16>
    %cst_303 = arith.constant dense<0.000000e+00> : vector<16x256xf32>
    %392 = tpu.matmul %390, %391, %cst_303 {dimension_numbers = #tpu.dot_dimension_numbers<[1], [0], [0], [1], [0, 0, 1, 1], [], []>} : vector<16x16xbf16>, vector<16x256xbf16>, vector<16x256xf32> -> vector<16x256xf32>
    %c2_304 = arith.constant 2 : index
    %c0_305 = arith.constant 0 : index
    %c0_306 = arith.constant 0 : index
    %393 = vector.load %arg6[%c2_304, %c0_305, %c0_306] : memref<4x16x1xf32, #tpu.memory_space<vmem>>, vector<1x16x1xf32>
    %394 = vector.shape_cast %393 : vector<1x16x1xf32> to vector<16x1xf32>
    %395 = vector.broadcast %394 : vector<16x1xf32> to vector<16x256xf32>
    %396 = arith.addf %392, %395 : vector<16x256xf32>
    %cst_307 = arith.constant 0.000000e+00 : f32
    %397 = vector.broadcast %cst_307 : f32 to vector<16x256xf32>
    %398 = arith.cmpf oge, %396, %397 : vector<16x256xf32>
    %cst_308 = arith.constant 5.000000e-02 : f32
    %399 = vector.broadcast %cst_308 : f32 to vector<16x256xf32>
    %400 = arith.mulf %399, %396 : vector<16x256xf32>
    %401 = arith.select %398, %396, %400 : vector<16x256xi1>, vector<16x256xf32>
    %402 = arith.addf %244, %401 : vector<16x256xf32>
    %c17_i32_309 = arith.constant 17 : i32
    %403 = tpu.dynamic_rotate %387 by %c17_i32_309 dim 1 : vector<16x256xf32>, i32 -> vector<16x256xf32>
    %c0_310 = arith.constant 0 : index
    %c0_311 = arith.constant 0 : index
    %c0_312 = arith.constant 0 : index
    %404 = vector.load %arg2[%c0_310, %c0_311, %c0_312] : memref<9x1x256xf32, #tpu.memory_space<vmem>>, vector<1x1x256xf32>
    %405 = vector.shape_cast %404 : vector<1x1x256xf32> to vector<1x256xf32>
    %406 = vector.broadcast %405 : vector<1x256xf32> to vector<16x256xf32>
    %407 = arith.mulf %403, %406 : vector<16x256xf32>
    %408 = arith.truncf %407 : vector<16x256xf32> to vector<16x256xbf16>
    %c0_313 = arith.constant 0 : index
    %c0_314 = arith.constant 0 : index
    %409 = vector.load %arg12[%c0_313, %c0_314] : memref<144x256xbf16, #tpu.memory_space<vmem>>, vector<16x256xbf16>
    tpu.vector_store %arg12[%c0_313, %c0_314], %408 {strides = array<i32>} : memref<144x256xbf16, #tpu.memory_space<vmem>>, vector<16x256xbf16>,
    %c16_i32_315 = arith.constant 16 : i32
    %410 = tpu.dynamic_rotate %387 by %c16_i32_315 dim 1 : vector<16x256xf32>, i32 -> vector<16x256xf32>
    %c1_316 = arith.constant 1 : index
    %c0_317 = arith.constant 0 : index
    %c0_318 = arith.constant 0 : index
    %411 = vector.load %arg2[%c1_316, %c0_317, %c0_318] : memref<9x1x256xf32, #tpu.memory_space<vmem>>, vector<1x1x256xf32>
    %412 = vector.shape_cast %411 : vector<1x1x256xf32> to vector<1x256xf32>
    %413 = vector.broadcast %412 : vector<1x256xf32> to vector<16x256xf32>
    %414 = arith.mulf %410, %413 : vector<16x256xf32>
    %415 = arith.truncf %414 : vector<16x256xf32> to vector<16x256xbf16>
    %c16_319 = arith.constant 16 : index
    %c0_320 = arith.constant 0 : index
    %416 = vector.load %arg12[%c16_319, %c0_320] : memref<144x256xbf16, #tpu.memory_space<vmem>>, vector<16x256xbf16>
    tpu.vector_store %arg12[%c16_319, %c0_320], %415 {strides = array<i32>} : memref<144x256xbf16, #tpu.memory_space<vmem>>, vector<16x256xbf16>,
    %c15_i32_321 = arith.constant 15 : i32
    %417 = tpu.dynamic_rotate %387 by %c15_i32_321 dim 1 : vector<16x256xf32>, i32 -> vector<16x256xf32>
    %c2_322 = arith.constant 2 : index
    %c0_323 = arith.constant 0 : index
    %c0_324 = arith.constant 0 : index
    %418 = vector.load %arg2[%c2_322, %c0_323, %c0_324] : memref<9x1x256xf32, #tpu.memory_space<vmem>>, vector<1x1x256xf32>
    %419 = vector.shape_cast %418 : vector<1x1x256xf32> to vector<1x256xf32>
    %420 = vector.broadcast %419 : vector<1x256xf32> to vector<16x256xf32>
    %421 = arith.mulf %417, %420 : vector<16x256xf32>
    %422 = arith.truncf %421 : vector<16x256xf32> to vector<16x256xbf16>
    %c32_325 = arith.constant 32 : index
    %c0_326 = arith.constant 0 : index
    %423 = vector.load %arg12[%c32_325, %c0_326] : memref<144x256xbf16, #tpu.memory_space<vmem>>, vector<16x256xbf16>
    tpu.vector_store %arg12[%c32_325, %c0_326], %422 {strides = array<i32>} : memref<144x256xbf16, #tpu.memory_space<vmem>>, vector<16x256xbf16>,
    %c1_i32_327 = arith.constant 1 : i32
    %424 = tpu.dynamic_rotate %387 by %c1_i32_327 dim 1 : vector<16x256xf32>, i32 -> vector<16x256xf32>
    %c3_328 = arith.constant 3 : index
    %c0_329 = arith.constant 0 : index
    %c0_330 = arith.constant 0 : index
    %425 = vector.load %arg2[%c3_328, %c0_329, %c0_330] : memref<9x1x256xf32, #tpu.memory_space<vmem>>, vector<1x1x256xf32>
    %426 = vector.shape_cast %425 : vector<1x1x256xf32> to vector<1x256xf32>
    %427 = vector.broadcast %426 : vector<1x256xf32> to vector<16x256xf32>
    %428 = arith.mulf %424, %427 : vector<16x256xf32>
    %429 = arith.truncf %428 : vector<16x256xf32> to vector<16x256xbf16>
    %c48_331 = arith.constant 48 : index
    %c0_332 = arith.constant 0 : index
    %430 = vector.load %arg12[%c48_331, %c0_332] : memref<144x256xbf16, #tpu.memory_space<vmem>>, vector<16x256xbf16>
    tpu.vector_store %arg12[%c48_331, %c0_332], %429 {strides = array<i32>} : memref<144x256xbf16, #tpu.memory_space<vmem>>, vector<16x256xbf16>,
    %431 = arith.truncf %387 : vector<16x256xf32> to vector<16x256xbf16>
    %c64_333 = arith.constant 64 : index
    %c0_334 = arith.constant 0 : index
    %432 = vector.load %arg12[%c64_333, %c0_334] : memref<144x256xbf16, #tpu.memory_space<vmem>>, vector<16x256xbf16>
    tpu.vector_store %arg12[%c64_333, %c0_334], %431 {strides = array<i32>} : memref<144x256xbf16, #tpu.memory_space<vmem>>, vector<16x256xbf16>,
    %c255_i32_335 = arith.constant 255 : i32
    %433 = tpu.dynamic_rotate %387 by %c255_i32_335 dim 1 : vector<16x256xf32>, i32 -> vector<16x256xf32>
    %c5_336 = arith.constant 5 : index
    %c0_337 = arith.constant 0 : index
    %c0_338 = arith.constant 0 : index
    %434 = vector.load %arg2[%c5_336, %c0_337, %c0_338] : memref<9x1x256xf32, #tpu.memory_space<vmem>>, vector<1x1x256xf32>
    %435 = vector.shape_cast %434 : vector<1x1x256xf32> to vector<1x256xf32>
    %436 = vector.broadcast %435 : vector<1x256xf32> to vector<16x256xf32>
    %437 = arith.mulf %433, %436 : vector<16x256xf32>
    %438 = arith.truncf %437 : vector<16x256xf32> to vector<16x256xbf16>
    %c80_339 = arith.constant 80 : index
    %c0_340 = arith.constant 0 : index
    %439 = vector.load %arg12[%c80_339, %c0_340] : memref<144x256xbf16, #tpu.memory_space<vmem>>, vector<16x256xbf16>
    tpu.vector_store %arg12[%c80_339, %c0_340], %438 {strides = array<i32>} : memref<144x256xbf16, #tpu.memory_space<vmem>>, vector<16x256xbf16>,
    %c241_i32_341 = arith.constant 241 : i32
    %440 = tpu.dynamic_rotate %387 by %c241_i32_341 dim 1 : vector<16x256xf32>, i32 -> vector<16x256xf32>
    %c6_342 = arith.constant 6 : index
    %c0_343 = arith.constant 0 : index
    %c0_344 = arith.constant 0 : index
    %441 = vector.load %arg2[%c6_342, %c0_343, %c0_344] : memref<9x1x256xf32, #tpu.memory_space<vmem>>, vector<1x1x256xf32>
    %442 = vector.shape_cast %441 : vector<1x1x256xf32> to vector<1x256xf32>
    %443 = vector.broadcast %442 : vector<1x256xf32> to vector<16x256xf32>
    %444 = arith.mulf %440, %443 : vector<16x256xf32>
    %445 = arith.truncf %444 : vector<16x256xf32> to vector<16x256xbf16>
    %c96_345 = arith.constant 96 : index
    %c0_346 = arith.constant 0 : index
    %446 = vector.load %arg12[%c96_345, %c0_346] : memref<144x256xbf16, #tpu.memory_space<vmem>>, vector<16x256xbf16>
    tpu.vector_store %arg12[%c96_345, %c0_346], %445 {strides = array<i32>} : memref<144x256xbf16, #tpu.memory_space<vmem>>, vector<16x256xbf16>,
    %c240_i32_347 = arith.constant 240 : i32
    %447 = tpu.dynamic_rotate %387 by %c240_i32_347 dim 1 : vector<16x256xf32>, i32 -> vector<16x256xf32>
    %c7_348 = arith.constant 7 : index
    %c0_349 = arith.constant 0 : index
    %c0_350 = arith.constant 0 : index
    %448 = vector.load %arg2[%c7_348, %c0_349, %c0_350] : memref<9x1x256xf32, #tpu.memory_space<vmem>>, vector<1x1x256xf32>
    %449 = vector.shape_cast %448 : vector<1x1x256xf32> to vector<1x256xf32>
    %450 = vector.broadcast %449 : vector<1x256xf32> to vector<16x256xf32>
    %451 = arith.mulf %447, %450 : vector<16x256xf32>
    %452 = arith.truncf %451 : vector<16x256xf32> to vector<16x256xbf16>
    %c112_351 = arith.constant 112 : index
    %c0_352 = arith.constant 0 : index
    %453 = vector.load %arg12[%c112_351, %c0_352] : memref<144x256xbf16, #tpu.memory_space<vmem>>, vector<16x256xbf16>
    tpu.vector_store %arg12[%c112_351, %c0_352], %452 {strides = array<i32>} : memref<144x256xbf16, #tpu.memory_space<vmem>>, vector<16x256xbf16>,
    %c239_i32_353 = arith.constant 239 : i32
    %454 = tpu.dynamic_rotate %387 by %c239_i32_353 dim 1 : vector<16x256xf32>, i32 -> vector<16x256xf32>
    %c8_354 = arith.constant 8 : index
    %c0_355 = arith.constant 0 : index
    %c0_356 = arith.constant 0 : index
    %455 = vector.load %arg2[%c8_354, %c0_355, %c0_356] : memref<9x1x256xf32, #tpu.memory_space<vmem>>, vector<1x1x256xf32>
    %456 = vector.shape_cast %455 : vector<1x1x256xf32> to vector<1x256xf32>
    %457 = vector.broadcast %456 : vector<1x256xf32> to vector<16x256xf32>
    %458 = arith.mulf %454, %457 : vector<16x256xf32>
    %459 = arith.truncf %458 : vector<16x256xf32> to vector<16x256xbf16>
    %c128_357 = arith.constant 128 : index
    %c0_358 = arith.constant 0 : index
    %460 = vector.load %arg12[%c128_357, %c0_358] : memref<144x256xbf16, #tpu.memory_space<vmem>>, vector<16x256xbf16>
    tpu.vector_store %arg12[%c128_357, %c0_358], %459 {strides = array<i32>} : memref<144x256xbf16, #tpu.memory_space<vmem>>, vector<16x256xbf16>,
    %c5_359 = arith.constant 5 : index
    %c0_360 = arith.constant 0 : index
    %c0_361 = arith.constant 0 : index
    %461 = vector.load %arg3[%c5_359, %c0_360, %c0_361] : memref<7x16x144xbf16, #tpu.memory_space<vmem>>, vector<1x16x144xbf16>
    %462 = vector.shape_cast %461 : vector<1x16x144xbf16> to vector<16x144xbf16>
    %c0_362 = arith.constant 0 : index
    %c0_363 = arith.constant 0 : index
    %463 = vector.load %arg12[%c0_362, %c0_363] : memref<144x256xbf16, #tpu.memory_space<vmem>>, vector<144x256xbf16>
    %cst_364 = arith.constant dense<0.000000e+00> : vector<16x256xf32>
    %464 = tpu.matmul %462, %463, %cst_364 {dimension_numbers = #tpu.dot_dimension_numbers<[1], [0], [0], [1], [0, 0, 1, 1], [], []>} : vector<16x144xbf16>, vector<144x256xbf16>, vector<16x256xf32> -> vector<16x256xf32>
    %c5_365 = arith.constant 5 : index
    %c0_366 = arith.constant 0 : index
    %c0_367 = arith.constant 0 : index
    %465 = vector.load %arg4[%c5_365, %c0_366, %c0_367] : memref<7x16x1xf32, #tpu.memory_space<vmem>>, vector<1x16x1xf32>
    %466 = vector.shape_cast %465 : vector<1x16x1xf32> to vector<16x1xf32>
    %467 = vector.broadcast %466 : vector<16x1xf32> to vector<16x256xf32>
    %468 = arith.addf %464, %467 : vector<16x256xf32>
    %cst_368 = arith.constant 0.000000e+00 : f32
    %469 = vector.broadcast %cst_368 : f32 to vector<16x256xf32>
    %470 = arith.cmpf oge, %468, %469 : vector<16x256xf32>
    %cst_369 = arith.constant 5.000000e-02 : f32
    %471 = vector.broadcast %cst_369 : f32 to vector<16x256xf32>
    %472 = arith.mulf %471, %468 : vector<16x256xf32>
    %473 = arith.select %470, %468, %472 : vector<16x256xi1>, vector<16x256xf32>
    %474 = arith.subf %387, %473 : vector<16x256xf32>
    %c17_i32_370 = arith.constant 17 : i32
    %475 = tpu.dynamic_rotate %474 by %c17_i32_370 dim 1 : vector<16x256xf32>, i32 -> vector<16x256xf32>
    %c0_371 = arith.constant 0 : index
    %c0_372 = arith.constant 0 : index
    %c0_373 = arith.constant 0 : index
    %476 = vector.load %arg2[%c0_371, %c0_372, %c0_373] : memref<9x1x256xf32, #tpu.memory_space<vmem>>, vector<1x1x256xf32>
    %477 = vector.shape_cast %476 : vector<1x1x256xf32> to vector<1x256xf32>
    %478 = vector.broadcast %477 : vector<1x256xf32> to vector<16x256xf32>
    %479 = arith.mulf %475, %478 : vector<16x256xf32>
    %480 = arith.truncf %479 : vector<16x256xf32> to vector<16x256xbf16>
    %c0_374 = arith.constant 0 : index
    %c0_375 = arith.constant 0 : index
    %481 = vector.load %arg12[%c0_374, %c0_375] : memref<144x256xbf16, #tpu.memory_space<vmem>>, vector<16x256xbf16>
    tpu.vector_store %arg12[%c0_374, %c0_375], %480 {strides = array<i32>} : memref<144x256xbf16, #tpu.memory_space<vmem>>, vector<16x256xbf16>,
    %c16_i32_376 = arith.constant 16 : i32
    %482 = tpu.dynamic_rotate %474 by %c16_i32_376 dim 1 : vector<16x256xf32>, i32 -> vector<16x256xf32>
    %c1_377 = arith.constant 1 : index
    %c0_378 = arith.constant 0 : index
    %c0_379 = arith.constant 0 : index
    %483 = vector.load %arg2[%c1_377, %c0_378, %c0_379] : memref<9x1x256xf32, #tpu.memory_space<vmem>>, vector<1x1x256xf32>
    %484 = vector.shape_cast %483 : vector<1x1x256xf32> to vector<1x256xf32>
    %485 = vector.broadcast %484 : vector<1x256xf32> to vector<16x256xf32>
    %486 = arith.mulf %482, %485 : vector<16x256xf32>
    %487 = arith.truncf %486 : vector<16x256xf32> to vector<16x256xbf16>
    %c16_380 = arith.constant 16 : index
    %c0_381 = arith.constant 0 : index
    %488 = vector.load %arg12[%c16_380, %c0_381] : memref<144x256xbf16, #tpu.memory_space<vmem>>, vector<16x256xbf16>
    tpu.vector_store %arg12[%c16_380, %c0_381], %487 {strides = array<i32>} : memref<144x256xbf16, #tpu.memory_space<vmem>>, vector<16x256xbf16>,
    %c15_i32_382 = arith.constant 15 : i32
    %489 = tpu.dynamic_rotate %474 by %c15_i32_382 dim 1 : vector<16x256xf32>, i32 -> vector<16x256xf32>
    %c2_383 = arith.constant 2 : index
    %c0_384 = arith.constant 0 : index
    %c0_385 = arith.constant 0 : index
    %490 = vector.load %arg2[%c2_383, %c0_384, %c0_385] : memref<9x1x256xf32, #tpu.memory_space<vmem>>, vector<1x1x256xf32>
    %491 = vector.shape_cast %490 : vector<1x1x256xf32> to vector<1x256xf32>
    %492 = vector.broadcast %491 : vector<1x256xf32> to vector<16x256xf32>
    %493 = arith.mulf %489, %492 : vector<16x256xf32>
    %494 = arith.truncf %493 : vector<16x256xf32> to vector<16x256xbf16>
    %c32_386 = arith.constant 32 : index
    %c0_387 = arith.constant 0 : index
    %495 = vector.load %arg12[%c32_386, %c0_387] : memref<144x256xbf16, #tpu.memory_space<vmem>>, vector<16x256xbf16>
    tpu.vector_store %arg12[%c32_386, %c0_387], %494 {strides = array<i32>} : memref<144x256xbf16, #tpu.memory_space<vmem>>, vector<16x256xbf16>,
    %c1_i32_388 = arith.constant 1 : i32
    %496 = tpu.dynamic_rotate %474 by %c1_i32_388 dim 1 : vector<16x256xf32>, i32 -> vector<16x256xf32>
    %c3_389 = arith.constant 3 : index
    %c0_390 = arith.constant 0 : index
    %c0_391 = arith.constant 0 : index
    %497 = vector.load %arg2[%c3_389, %c0_390, %c0_391] : memref<9x1x256xf32, #tpu.memory_space<vmem>>, vector<1x1x256xf32>
    %498 = vector.shape_cast %497 : vector<1x1x256xf32> to vector<1x256xf32>
    %499 = vector.broadcast %498 : vector<1x256xf32> to vector<16x256xf32>
    %500 = arith.mulf %496, %499 : vector<16x256xf32>
    %501 = arith.truncf %500 : vector<16x256xf32> to vector<16x256xbf16>
    %c48_392 = arith.constant 48 : index
    %c0_393 = arith.constant 0 : index
    %502 = vector.load %arg12[%c48_392, %c0_393] : memref<144x256xbf16, #tpu.memory_space<vmem>>, vector<16x256xbf16>
    tpu.vector_store %arg12[%c48_392, %c0_393], %501 {strides = array<i32>} : memref<144x256xbf16, #tpu.memory_space<vmem>>, vector<16x256xbf16>,
    %503 = arith.truncf %474 : vector<16x256xf32> to vector<16x256xbf16>
    %c64_394 = arith.constant 64 : index
    %c0_395 = arith.constant 0 : index
    %504 = vector.load %arg12[%c64_394, %c0_395] : memref<144x256xbf16, #tpu.memory_space<vmem>>, vector<16x256xbf16>
    tpu.vector_store %arg12[%c64_394, %c0_395], %503 {strides = array<i32>} : memref<144x256xbf16, #tpu.memory_space<vmem>>, vector<16x256xbf16>,
    %c255_i32_396 = arith.constant 255 : i32
    %505 = tpu.dynamic_rotate %474 by %c255_i32_396 dim 1 : vector<16x256xf32>, i32 -> vector<16x256xf32>
    %c5_397 = arith.constant 5 : index
    %c0_398 = arith.constant 0 : index
    %c0_399 = arith.constant 0 : index
    %506 = vector.load %arg2[%c5_397, %c0_398, %c0_399] : memref<9x1x256xf32, #tpu.memory_space<vmem>>, vector<1x1x256xf32>
    %507 = vector.shape_cast %506 : vector<1x1x256xf32> to vector<1x256xf32>
    %508 = vector.broadcast %507 : vector<1x256xf32> to vector<16x256xf32>
    %509 = arith.mulf %505, %508 : vector<16x256xf32>
    %510 = arith.truncf %509 : vector<16x256xf32> to vector<16x256xbf16>
    %c80_400 = arith.constant 80 : index
    %c0_401 = arith.constant 0 : index
    %511 = vector.load %arg12[%c80_400, %c0_401] : memref<144x256xbf16, #tpu.memory_space<vmem>>, vector<16x256xbf16>
    tpu.vector_store %arg12[%c80_400, %c0_401], %510 {strides = array<i32>} : memref<144x256xbf16, #tpu.memory_space<vmem>>, vector<16x256xbf16>,
    %c241_i32_402 = arith.constant 241 : i32
    %512 = tpu.dynamic_rotate %474 by %c241_i32_402 dim 1 : vector<16x256xf32>, i32 -> vector<16x256xf32>
    %c6_403 = arith.constant 6 : index
    %c0_404 = arith.constant 0 : index
    %c0_405 = arith.constant 0 : index
    %513 = vector.load %arg2[%c6_403, %c0_404, %c0_405] : memref<9x1x256xf32, #tpu.memory_space<vmem>>, vector<1x1x256xf32>
    %514 = vector.shape_cast %513 : vector<1x1x256xf32> to vector<1x256xf32>
    %515 = vector.broadcast %514 : vector<1x256xf32> to vector<16x256xf32>
    %516 = arith.mulf %512, %515 : vector<16x256xf32>
    %517 = arith.truncf %516 : vector<16x256xf32> to vector<16x256xbf16>
    %c96_406 = arith.constant 96 : index
    %c0_407 = arith.constant 0 : index
    %518 = vector.load %arg12[%c96_406, %c0_407] : memref<144x256xbf16, #tpu.memory_space<vmem>>, vector<16x256xbf16>
    tpu.vector_store %arg12[%c96_406, %c0_407], %517 {strides = array<i32>} : memref<144x256xbf16, #tpu.memory_space<vmem>>, vector<16x256xbf16>,
    %c240_i32_408 = arith.constant 240 : i32
    %519 = tpu.dynamic_rotate %474 by %c240_i32_408 dim 1 : vector<16x256xf32>, i32 -> vector<16x256xf32>
    %c7_409 = arith.constant 7 : index
    %c0_410 = arith.constant 0 : index
    %c0_411 = arith.constant 0 : index
    %520 = vector.load %arg2[%c7_409, %c0_410, %c0_411] : memref<9x1x256xf32, #tpu.memory_space<vmem>>, vector<1x1x256xf32>
    %521 = vector.shape_cast %520 : vector<1x1x256xf32> to vector<1x256xf32>
    %522 = vector.broadcast %521 : vector<1x256xf32> to vector<16x256xf32>
    %523 = arith.mulf %519, %522 : vector<16x256xf32>
    %524 = arith.truncf %523 : vector<16x256xf32> to vector<16x256xbf16>
    %c112_412 = arith.constant 112 : index
    %c0_413 = arith.constant 0 : index
    %525 = vector.load %arg12[%c112_412, %c0_413] : memref<144x256xbf16, #tpu.memory_space<vmem>>, vector<16x256xbf16>
    tpu.vector_store %arg12[%c112_412, %c0_413], %524 {strides = array<i32>} : memref<144x256xbf16, #tpu.memory_space<vmem>>, vector<16x256xbf16>,
    %c239_i32_414 = arith.constant 239 : i32
    %526 = tpu.dynamic_rotate %474 by %c239_i32_414 dim 1 : vector<16x256xf32>, i32 -> vector<16x256xf32>
    %c8_415 = arith.constant 8 : index
    %c0_416 = arith.constant 0 : index
    %c0_417 = arith.constant 0 : index
    %527 = vector.load %arg2[%c8_415, %c0_416, %c0_417] : memref<9x1x256xf32, #tpu.memory_space<vmem>>, vector<1x1x256xf32>
    %528 = vector.shape_cast %527 : vector<1x1x256xf32> to vector<1x256xf32>
    %529 = vector.broadcast %528 : vector<1x256xf32> to vector<16x256xf32>
    %530 = arith.mulf %526, %529 : vector<16x256xf32>
    %531 = arith.truncf %530 : vector<16x256xf32> to vector<16x256xbf16>
    %c128_418 = arith.constant 128 : index
    %c0_419 = arith.constant 0 : index
    %532 = vector.load %arg12[%c128_418, %c0_419] : memref<144x256xbf16, #tpu.memory_space<vmem>>, vector<16x256xbf16>
    tpu.vector_store %arg12[%c128_418, %c0_419], %531 {strides = array<i32>} : memref<144x256xbf16, #tpu.memory_space<vmem>>, vector<16x256xbf16>,
    %c6_420 = arith.constant 6 : index
    %c0_421 = arith.constant 0 : index
    %c0_422 = arith.constant 0 : index
    %533 = vector.load %arg3[%c6_420, %c0_421, %c0_422] : memref<7x16x144xbf16, #tpu.memory_space<vmem>>, vector<1x16x144xbf16>
    %534 = vector.shape_cast %533 : vector<1x16x144xbf16> to vector<16x144xbf16>
    %c0_423 = arith.constant 0 : index
    %c0_424 = arith.constant 0 : index
    %535 = vector.load %arg12[%c0_423, %c0_424] : memref<144x256xbf16, #tpu.memory_space<vmem>>, vector<144x256xbf16>
    %cst_425 = arith.constant dense<0.000000e+00> : vector<16x256xf32>
    %536 = tpu.matmul %534, %535, %cst_425 {dimension_numbers = #tpu.dot_dimension_numbers<[1], [0], [0], [1], [0, 0, 1, 1], [], []>} : vector<16x144xbf16>, vector<144x256xbf16>, vector<16x256xf32> -> vector<16x256xf32>
    %c6_426 = arith.constant 6 : index
    %c0_427 = arith.constant 0 : index
    %c0_428 = arith.constant 0 : index
    %537 = vector.load %arg4[%c6_426, %c0_427, %c0_428] : memref<7x16x1xf32, #tpu.memory_space<vmem>>, vector<1x16x1xf32>
    %538 = vector.shape_cast %537 : vector<1x16x1xf32> to vector<16x1xf32>
    %539 = vector.broadcast %538 : vector<16x1xf32> to vector<16x256xf32>
    %540 = arith.addf %536, %539 : vector<16x256xf32>
    %cst_429 = arith.constant 0.000000e+00 : f32
    %541 = vector.broadcast %cst_429 : f32 to vector<16x256xf32>
    %542 = arith.cmpf oge, %540, %541 : vector<16x256xf32>
    %cst_430 = arith.constant 5.000000e-02 : f32
    %543 = vector.broadcast %cst_430 : f32 to vector<16x256xf32>
    %544 = arith.mulf %543, %540 : vector<16x256xf32>
    %545 = arith.select %542, %540, %544 : vector<16x256xi1>, vector<16x256xf32>
    %546 = arith.addf %402, %545 : vector<16x256xf32>
    %c3_431 = arith.constant 3 : index
    %c0_432 = arith.constant 0 : index
    %c0_433 = arith.constant 0 : index
    %547 = vector.load %arg5[%c3_431, %c0_432, %c0_433] : memref<4x16x16xbf16, #tpu.memory_space<vmem>>, vector<1x16x16xbf16>
    %548 = vector.shape_cast %547 : vector<1x16x16xbf16> to vector<16x16xbf16>
    %549 = arith.truncf %546 : vector<16x256xf32> to vector<16x256xbf16>
    %cst_434 = arith.constant dense<0.000000e+00> : vector<16x256xf32>
    %550 = tpu.matmul %548, %549, %cst_434 {dimension_numbers = #tpu.dot_dimension_numbers<[1], [0], [0], [1], [0, 0, 1, 1], [], []>} : vector<16x16xbf16>, vector<16x256xbf16>, vector<16x256xf32> -> vector<16x256xf32>
    %c3_435 = arith.constant 3 : index
    %c0_436 = arith.constant 0 : index
    %c0_437 = arith.constant 0 : index
    %551 = vector.load %arg6[%c3_435, %c0_436, %c0_437] : memref<4x16x1xf32, #tpu.memory_space<vmem>>, vector<1x16x1xf32>
    %552 = vector.shape_cast %551 : vector<1x16x1xf32> to vector<16x1xf32>
    %553 = vector.broadcast %552 : vector<16x1xf32> to vector<16x256xf32>
    %554 = arith.addf %550, %553 : vector<16x256xf32>
    %cst_438 = arith.constant dense<0.000000e+00> : vector<16xf32>
    %555 = vector.multi_reduction <add>, %554, %cst_438 [1] : vector<16x256xf32> to vector<16xf32>
    %556 = vector.shape_cast %555 : vector<16xf32> to vector<16x1xf32>
    %cst_439 = arith.constant 3.906250e-03 : f32
    %557 = vector.broadcast %cst_439 : f32 to vector<16x1xf32>
    %558 = arith.mulf %556, %557 : vector<16x1xf32>
    %559 = vector.broadcast %558 : vector<16x1xf32> to vector<16x256xf32>
    %560 = arith.subf %554, %559 : vector<16x256xf32>
    %561 = arith.mulf %560, %560 : vector<16x256xf32>
    %cst_440 = arith.constant dense<0.000000e+00> : vector<16xf32>
    %562 = vector.multi_reduction <add>, %561, %cst_440 [1] : vector<16x256xf32> to vector<16xf32>
    %563 = vector.shape_cast %562 : vector<16xf32> to vector<16x1xf32>
    %cst_441 = arith.constant 3.906250e-03 : f32
    %564 = vector.broadcast %cst_441 : f32 to vector<16x1xf32>
    %565 = arith.mulf %563, %564 : vector<16x1xf32>
    %566 = math.sqrt %565 : vector<16x1xf32>
    %567 = arith.addf %566, %558 : vector<16x1xf32>
    %c0_442 = arith.constant 0 : index
    %c0_443 = arith.constant 0 : index
    %568 = vector.load %arg7[%c0_442, %c0_443] : memref<16x1xf32, #tpu.memory_space<vmem>>, vector<16x1xf32>
    %569 = arith.mulf %568, %567 : vector<16x1xf32>
    %cst_444 = arith.constant dense<0.000000e+00> : vector<1xf32>
    %570 = vector.multi_reduction <add>, %569, %cst_444 [0] : vector<16x1xf32> to vector<1xf32>
    %571 = vector.shape_cast %570 : vector<1xf32> to vector<1x1xf32>
    %c0_445 = arith.constant 0 : index
    %c0_446 = arith.constant 0 : index
    %572 = vector.load %arg8[%c0_445, %c0_446] : memref<1x1xf32, #tpu.memory_space<vmem>>, vector<1x1xf32>
    %573 = arith.addf %571, %572 : vector<1x1xf32>
    %cst_447 = arith.constant 0.000000e+00 : f32
    %574 = vector.broadcast %cst_447 : f32 to vector<1x1xf32>
    %575 = arith.maximumf %573, %574 : vector<1x1xf32>
    %c0_448 = arith.constant 0 : index
    %c0_449 = arith.constant 0 : index
    %576 = vector.load %arg9[%c0_448, %c0_449] : memref<16x1xf32, #tpu.memory_space<vmem>>, vector<16x1xf32>
    %577 = vector.broadcast %575 : vector<1x1xf32> to vector<16x1xf32>
    %578 = arith.mulf %576, %577 : vector<16x1xf32>
    %cst_450 = arith.constant dense<0.000000e+00> : vector<16xf32>
    %579 = vector.multi_reduction <add>, %578, %cst_450 [1] : vector<16x1xf32> to vector<16xf32>
    %580 = vector.shape_cast %579 : vector<16xf32> to vector<16x1xf32>
    %c0_451 = arith.constant 0 : index
    %c0_452 = arith.constant 0 : index
    %581 = vector.load %arg10[%c0_451, %c0_452] : memref<16x1xf32, #tpu.memory_space<vmem>>, vector<16x1xf32>
    %582 = arith.addf %580, %581 : vector<16x1xf32>
    %cst_453 = arith.constant 0.000000e+00 : f32
    %583 = vector.broadcast %cst_453 : f32 to vector<16x1xf32>
    %584 = arith.subf %583, %582 : vector<16x1xf32>
    %585 = math.exp %584 : vector<16x1xf32>
    %cst_454 = arith.constant 1.000000e+00 : f32
    %586 = vector.broadcast %cst_454 : f32 to vector<16x1xf32>
    %587 = arith.addf %586, %585 : vector<16x1xf32>
    %cst_455 = arith.constant 1.000000e+00 : f32
    %588 = vector.broadcast %cst_455 : f32 to vector<16x1xf32>
    %589 = arith.divf %588, %587 : vector<16x1xf32>
    %590 = vector.broadcast %589 : vector<16x1xf32> to vector<16x256xf32>
    %591 = arith.mulf %554, %590 : vector<16x256xf32>
    %c0_456 = arith.constant 0 : index
    %c0_457 = arith.constant 0 : index
    %c0_458 = arith.constant 0 : index
    %592 = vector.load %arg1[%c0_456, %c0_457, %c0_458] : memref<1x16x256xf32, #tpu.memory_space<vmem>>, vector<1x16x256xf32>
    %593 = vector.shape_cast %592 : vector<1x16x256xf32> to vector<16x256xf32>
    %594 = arith.addf %593, %591 : vector<16x256xf32>
    %c0_459 = arith.constant 0 : index
    %c0_460 = arith.constant 0 : index
    %c0_461 = arith.constant 0 : index
    %595 = vector.load %arg11[%c0_459, %c0_460, %c0_461] : memref<1x16x256xf32, #tpu.memory_space<vmem>>, vector<1x16x256xf32>
    %596 = vector.shape_cast %595 : vector<1x16x256xf32> to vector<16x256xf32>
    %597 = vector.shape_cast %594 : vector<16x256xf32> to vector<1x16x256xf32>
    tpu.vector_store %arg11[%c0_459, %c0_460, %c0_461], %597 {strides = array<i32>} : memref<1x16x256xf32, #tpu.memory_space<vmem>>, vector<1x16x256xf32>,
    return
  }
  func.func @transform_0(%arg0: i32) -> (i32, i32, i32) {
    %c0_i32 = arith.constant 0 : i32
    %c0_i32_0 = arith.constant 0 : i32
    %c0_i32_1 = arith.constant 0 : i32
    return %arg0, %c0_i32, %c0_i32_0 : i32, i32, i32
  }
  func.func @transform_1(%arg0: i32) -> (i32, i32, i32) {
    %c0_i32 = arith.constant 0 : i32
    %c0_i32_0 = arith.constant 0 : i32
    %c0_i32_1 = arith.constant 0 : i32
    %c0_i32_2 = arith.constant 0 : i32
    return %c0_i32, %c0_i32_0, %c0_i32_1 : i32, i32, i32
  }
  func.func @transform_2(%arg0: i32) -> (i32, i32, i32) {
    %c0_i32 = arith.constant 0 : i32
    %c0_i32_0 = arith.constant 0 : i32
    %c0_i32_1 = arith.constant 0 : i32
    %c0_i32_2 = arith.constant 0 : i32
    return %c0_i32, %c0_i32_0, %c0_i32_1 : i32, i32, i32
  }
  func.func @transform_3(%arg0: i32) -> (i32, i32, i32) {
    %c0_i32 = arith.constant 0 : i32
    %c0_i32_0 = arith.constant 0 : i32
    %c0_i32_1 = arith.constant 0 : i32
    %c0_i32_2 = arith.constant 0 : i32
    return %c0_i32, %c0_i32_0, %c0_i32_1 : i32, i32, i32
  }
  func.func @transform_4(%arg0: i32) -> (i32, i32, i32) {
    %c0_i32 = arith.constant 0 : i32
    %c0_i32_0 = arith.constant 0 : i32
    %c0_i32_1 = arith.constant 0 : i32
    %c0_i32_2 = arith.constant 0 : i32
    return %c0_i32, %c0_i32_0, %c0_i32_1 : i32, i32, i32
  }
  func.func @transform_5(%arg0: i32) -> (i32, i32, i32) {
    %c0_i32 = arith.constant 0 : i32
    %c0_i32_0 = arith.constant 0 : i32
    %c0_i32_1 = arith.constant 0 : i32
    %c0_i32_2 = arith.constant 0 : i32
    return %c0_i32, %c0_i32_0, %c0_i32_1 : i32, i32, i32
  }
  func.func @transform_6(%arg0: i32) -> (i32, i32) {
    %c0_i32 = arith.constant 0 : i32
    %c0_i32_0 = arith.constant 0 : i32
    %c0_i32_1 = arith.constant 0 : i32
    return %c0_i32, %c0_i32_0 : i32, i32
  }
  func.func @transform_7(%arg0: i32) -> (i32, i32) {
    %c0_i32 = arith.constant 0 : i32
    %c0_i32_0 = arith.constant 0 : i32
    %c0_i32_1 = arith.constant 0 : i32
    return %c0_i32, %c0_i32_0 : i32, i32
  }
  func.func @transform_8(%arg0: i32) -> (i32, i32) {
    %c0_i32 = arith.constant 0 : i32
    %c0_i32_0 = arith.constant 0 : i32
    %c0_i32_1 = arith.constant 0 : i32
    return %c0_i32, %c0_i32_0 : i32, i32
  }
  func.func @transform_9(%arg0: i32) -> (i32, i32) {
    %c0_i32 = arith.constant 0 : i32
    %c0_i32_0 = arith.constant 0 : i32
    %c0_i32_1 = arith.constant 0 : i32
    return %c0_i32, %c0_i32_0 : i32, i32
  }
  func.func @transform_10(%arg0: i32) -> (i32, i32, i32) {
    %c0_i32 = arith.constant 0 : i32
    %c0_i32_0 = arith.constant 0 : i32
    %c0_i32_1 = arith.constant 0 : i32
    return %arg0, %c0_i32, %c0_i32_0 : i32, i32, i32
  }
}

</mosaic_0001>

<bundles_post_ra>
// kernel: tpu_custom_call.1
= control target key start
LH: loop header
LB: loop body
LE: loop exit
PB: predicated region body
PF: predicated region fallthrough
CT: control target
= control target key end

     0   :  { %s5644_s0 = inlined_call_operand.vmem [shape: f32[2,16,256], index: 0, kind: input, shape index: {}]   ;;  %s5645_s1 = inlined_call_operand.vmem [shape: f32[9,1,256], index: 1, kind: input, shape index: {}]   ;;  %s5646_s2 = inlined_call_operand.vmem [shape: bf16[7,16,144], index: 2, kind: input, shape index: {}]   ;;  %s5647_s3 = inlined_call_operand.vmem [shape: f32[7,16,1], index: 3, kind: input, shape index: {}]   ;;  %s5648_s4 = inlined_call_operand.vmem [shape: bf16[4,16,16], index: 4, kind: input, shape index: {}]   ;;  %s5649_s5 = inlined_call_operand.vmem [shape: f32[4,16,1], index: 5, kind: input, shape index: {}]   ;;  %s5650_s6 = inlined_call_operand.vmem [shape: f32[16,1], index: 6, kind: input, shape index: {}]   ;;  %s5651_s7 = inlined_call_operand.<no memory space> [shape: f32[1,1], index: 7, kind: input, shape index: {}]   ;;  %s5652_s8 = inlined_call_operand.vmem [shape: f32[16,1], index: 8, kind: input, shape index: {}]   ;;  %s5653_s9 = inlined_call_operand.vmem [shape: f32[16,1], index: 9, kind: input, shape index: {}]   ;;  %s5654_s10 = inlined_call_operand.hbm [shape: f32[2,16,256], index: 10, kind: output, shape index: {}]  }
   0x1   :  { %v15_v0 = vstv %s5651_s7 }
   0x2   :  { %16 = vst [vmem:[#allocation3] sm:$0x1] %v15_v0 }
   0x3   :  { %17 = vsyncpa [#allocation5], 0 }
   0x4   :  { %19 = vsyncpa [#allocation5 + $0x1], 0  ;;  %s3788_s15 = smov 0   ;;  %s3790_s16 = smov 0  }
   0x5   :  { %s3792_s17 = smov 0   ;;  %s3794_s18 = smov 0  }
   0x6 LB: > { %s3809_s7 = sadd.s32 4294967295, %s3717_s18   ;;  %s3439_s19 = sadd.s32 4294967294, %s3717_s18   ;;  %s3717_s18 = sphi %s3794_s18, %s5684_s18   ;;  %s3713_s17 = sphi %s3792_s17, %s5683_s17   ;;  %s3709_s16 = sphi %s3790_s16, %s5682_s16   ;;  %s3705_s15 = sphi %s3788_s15, %s5681_s15  }
   0x7   : > { %s3813_s20 = sadd.s32 1, %s3717_s18   ;;  %s247_s21 = sadd.s32 1, %s3713_s17 }
   0x8   : > { %s244_s22 = ssub.s32 %s3717_s18, %s3813_s20  ;;  %p257_p0 = scmp.ne.s32.totalorder %s3713_s17, %s3709_s16 }
   0x9   : > { %p245_p1 = scmp.eq.s32.totalorder %s244_s22, 0  ;;  %p258_p2 = scmp.eq.s32.totalorder %s3809_s7, 1 }
   0xa   : > { %p263_p3 = scmp.ne.s32.totalorder %s3709_s16, %s3705_s15  ;;  %p264_p4 = scmp.eq.s32.totalorder %s3439_s19, 1 }
   0xb   : > { %s3824_s23 = scalar_select %p245_p1, %s3713_s17, %s247_s21  }
   0xc   : > { %p3826_p5 = por %p258_p2, %p257_p0  ;;  %p3830_p6 = por %p264_p4, %p263_p3 }
   0xd   : > { %p3442_p7 = scmp.ge.s32.totalorder %s3717_s18, 1  ;;  %p317_p8 = scmp.lt.s32.totalorder %s3717_s18, 3 }
   0xf   : > { %p318_p9 = pnand %p3442_p7, %p317_p8 }
  0x10   : > { %p355_p10 = scmp.lt.s32.totalorder (!%p318_p9), %s3809_s7, 1  ;;  %s5669_s11 = smov (!%p318_p9), 17   ;;  %v3620_v5 = vld [vmem:[%s5646_s2 + $0x4] ss:$8 sps:$4 sm:$0xff] (!%p318_p9)   ;;  %vm683_vm0 = vcmask (!%p318_p9), 130048   ;;  %v3727_v6 = vmov (!%p318_p9), 0   ;;  %v373_v9 = vlaneseq (!%p318_p9) }
  0x11   : > { %321 = sbr.rel (%p318_p9) target bundleno = 3598 (0xe0e), region = 60  ;;  %s5667_s12 = smov (!%p318_p9), 16   ;;  %3455 = vmatprep.mubr.msk.bf16.mxu0 (!%p318_p9), %vm683_vm0, %v3620_v5  ;;  %3616 = vset.pattern.permute.xlu0 (!%p318_p9), %v3727_v6  ;;  %v662_v7 = vld [vmem:[%s5647_s3] sm:$0xff] (!%p318_p9)  ;;  %v663_v8 = vld [vmem:[%s5647_s3 + $0x8] sm:$0xff] (!%p318_p9) }
  0x12   : > { %s5665_s13 = smov (!%p318_p9), 15   ;;  %s5663_s14 = smov (!%p318_p9), 1   ;;  %3617 = vset.pattern.permute.xlu1 (!%p318_p9), %v3727_v6  ;;  %802 = vmatprep.mubr.bf16.mxu1 (!%p318_p9), %v3727_v6  ;;  %v383_v10 = vshrl.u32 (!%p318_p9), %v373_v9, 7  ;;  %v3932_v11 = vand.u32 (!%p318_p9), 127, %v373_v9  ;;  %v380_v14 = vld [vmem:[%s5645_s1] sm:$0x3] (!%p318_p9) }
  0x13   : > { %s5661_s19 = smov (!%p318_p9), 127   ;;  %s5657_s21 = smov (!%p318_p9), 113   ;;  %v3446_v29 = vld [vmem:[%s5645_s1 + $0x2] sm:$0x3] (!%p318_p9)  ;;  %v3447_v46 = vld [vmem:[%s5645_s1 + $0x4] sm:$0x3] (!%p318_p9) }
  0x14   : > { %s5655_s22 = smov (!%p318_p9), 112   ;;  %s5659_s28 = smov (!%p318_p9), 111   ;;  %v3934_v12 = vsub.s32 (!%p318_p9), 0, %v383_v10  ;;  %v3936_v13 = vsub.s32 (!%p318_p9), 1, %v383_v10  ;;  %vm375_vm1 = vcmp.lt.s32.totalorder (!%p318_p9), %v3932_v11, 17  ;;  %vm408_vm2 = vcmp.lt.s32.totalorder (!%p318_p9), %v3932_v11, 16 }
  0x15   : > { %vm442_vm3 = vcmp.lt.s32.totalorder (!%p318_p9), %v3932_v11, 15  ;;  %v3448_v63 = vld [vmem:[%s5645_s1 + $0x6] sm:$0x3] (!%p318_p9)  ;;  %vm476_vm4 = vcmp.lt.s32.totalorder (!%p318_p9), %v3932_v11, 1  ;;  %vm514_vm5 = vcmp.lt.s32.totalorder (!%p318_p9), %v3932_v11, 127  ;;  %vm548_vm6 = vcmp.lt.s32.totalorder (!%p318_p9), %v3932_v11, 113 }
  0x16   : > { %v389_v17 = vrot.slane (!%p318_p9), %v380_v14, %v3936_v13  ;;  %v385_v18 = vrot.slane (!%p318_p9), %v380_v14, %v3934_v12  ;;  %v419_v34 = vrot.slane (!%p318_p9), %v3446_v29, %v3934_v12  ;;  %v423_v35 = vrot.slane (!%p318_p9), %v3446_v29, %v3936_v13  ;;  %s5676_s29 = smov (!%p318_p9), 127  }
  0x17   : > { %v453_v51 = vrot.slane (!%p318_p9), %v3447_v46, %v3934_v12  ;;  %v457_v52 = vrot.slane (!%p318_p9), %v3447_v46, %v3936_v13  ;;  %v487_v9 = vrot.slane (!%p318_p9), %v3448_v63, %v3934_v12  ;;  %v491_v10 = vrot.slane (!%p318_p9), %v3448_v63, %v3936_v13 }
  0x18   : > { %s356_s26 = scalar_select %p355_p10, %s3809_s7, 1  ;;  %vm582_vm7 = vcmp.lt.s32.totalorder %v3932_v11, 112  ;;  %vm616_vm8 = vcmp.lt.s32.totalorder %v3932_v11, 111 }
  0x1a   : > { %s3565_s27 = sshll.u32 %s356_s26, 5  ;;  %s5677_s26 = smov 1  }
  0x1b   : > { %s3841_s30 = scalar_lea.vmem %s5644_s0, %s3565_s27  ;;  %s5678_s27 = smov 15  }
  0x1c   : > { %v3844_v1 = vld [vmem:[%s3841_s30 + $0x8] sm:$0xff]  ;;  %v3847_v2 = vld [vmem:[%s3841_s30] sm:$0xff]  ;;  %v3850_v3 = vld [vmem:[%s3841_s30 + $0x18] sm:$0xff] }
  0x1d   : > { %369 = vrot.lane.b32.xlu1 %v3844_v1, %s5669_s11  ;;  %365 = vrot.lane.b32.xlu0 %v3847_v2, %s5669_s11  ;;  %v3857_v4 = vld [vmem:[%s3841_s30 + $0x10] sm:$0xff]  ;;  %v503_v29 = vpack.c.bf16 %v3850_v3, %v3844_v1 }
  0x21   : > { %371 = vrot.lane.b32.xlu1 %v3850_v3, %s5669_s11  ;;  %367 = vrot.lane.b32.xlu0 %v3857_v4, %s5669_s11 }
  0x25   : > { %402 = vrot.lane.b32.xlu1 %v3857_v4, %s5667_s12  ;;  %400 = vrot.lane.b32.xlu0 %v3847_v2, %s5667_s12 }
  0x29   : > { %406 = vrot.lane.b32.xlu1 %v3850_v3, %s5667_s12  ;;  %404 = vrot.lane.b32.xlu0 %v3844_v1, %s5667_s12 }
  0x2d   : > { %436 = vrot.lane.b32.xlu1 %v3857_v4, %s5665_s13  ;;  %434 = vrot.lane.b32.xlu0 %v3847_v2, %s5665_s13 }
  0x31   : > { %440 = vrot.lane.b32.xlu1 %v3850_v3, %s5665_s13  ;;  %438 = vrot.lane.b32.xlu0 %v3844_v1, %s5665_s13 }
  0x35   : > { %470 = vrot.lane.b32.xlu1 %v3857_v4, %s5663_s14  ;;  %468 = vrot.lane.b32.xlu0 %v3847_v2, %s5663_s14 }
  0x39   : > { %474 = vrot.lane.b32.xlu1 %v3850_v3, %s5663_s14  ;;  %472 = vrot.lane.b32.xlu0 %v3844_v1, %s5663_s14 }
  0x3d   : > { %508 = vrot.lane.b32.xlu1 %v3857_v4, %s5661_s19  ;;  %506 = vrot.lane.b32.xlu0 %v3847_v2, %s5661_s19 }
  0x41   : > { %512 = vrot.lane.b32.xlu1 %v3850_v3, %s5661_s19  ;;  %510 = vrot.lane.b32.xlu0 %v3844_v1, %s5661_s19 }
  0x45   : > { %542 = vrot.lane.b32.xlu1 %v3857_v4, %s5657_s21  ;;  %540 = vrot.lane.b32.xlu0 %v3847_v2, %s5657_s21 }
  0x49   : > { %546 = vrot.lane.b32.xlu1 %v3850_v3, %s5657_s21  ;;  %544 = vrot.lane.b32.xlu0 %v3844_v1, %s5657_s21  ;;  %s5673_s21 = smov 113  }
  0x4d   : > { %576 = vrot.lane.b32.xlu1 %v3857_v4, %s5655_s22  ;;  %574 = vrot.lane.b32.xlu0 %v3847_v2, %s5655_s22 }
  0x51   : > { %580 = vrot.lane.b32.xlu1 %v3850_v3, %s5655_s22  ;;  %578 = vrot.lane.b32.xlu0 %v3844_v1, %s5655_s22  ;;  %s5674_s22 = smov 112  }
  0x55   : > { %610 = vrot.lane.b32.xlu1 %v3857_v4, %s5659_s28  ;;  %608 = vrot.lane.b32.xlu0 %v3847_v2, %s5659_s28 }
  0x59   : > { %614 = vrot.lane.b32.xlu1 %v3850_v3, %s5659_s28  ;;  %612 = vrot.lane.b32.xlu0 %v3844_v1, %s5659_s28  ;;  %s5675_s28 = smov 111  }
  0x5d   : > { %666 = vperm.xlu0 %3616, %v662_v7   ;;  %671 = vperm.xlu1 %3617, %v663_v8  }
  0x8f   : > { %v370_v15 = vpop.permute.xlu1 %369  ;;  %v366_v16 = vpop.permute.xlu0 %365 }
  0x90   : > { %v378_v19 = vsel %vm375_vm1, %v370_v15, %v366_v16  ;;  %v376_v20 = vsel %vm375_vm1, %v366_v16, %v370_v15 }
  0x91   : > { %v393_v25 = vmul.f32 %v389_v17, %v376_v20  ;;  %v392_v27 = vmul.f32 %v385_v18, %v378_v19 }
  0x93   : > { %v372_v21 = vpop.permute.xlu1 %371  ;;  %v368_v22 = vpop.permute.xlu0 %367 }
  0x94   : > { %v379_v23 = vsel %vm375_vm1, %v372_v21, %v368_v22  ;;  %v377_v24 = vsel %vm375_vm1, %v368_v22, %v372_v21 }
  0x95   : > { %v395_v26 = vmul.f32 %v389_v17, %v377_v24  ;;  %v394_v28 = vmul.f32 %v385_v18, %v379_v23  ;;  %v3449_v24 = vld [vmem:[%s5645_s1 + $0xa] sm:$0x3] }
  0x97   : > { %v403_v30 = vpop.permute.xlu1 %402  ;;  %v401_v31 = vpop.permute.xlu0 %400  ;;  %v397_v32 = vpack.c.bf16 %v395_v26, %v393_v25  ;;  %v396_v33 = vpack.c.bf16 %v394_v28, %v392_v27 }
  0x99   : > { %687 = vmatprep.subr.bf16.mxu0 %v397_v32  ;;  %v502_v32 = vpack.c.bf16 %v3857_v4, %v3847_v2 }
  0x9a   : > { %688 = vmatpush1.bf16.msra.mxu0 %v396_v33 }
  0x9b   : > { %v407_v36 = vpop.permute.xlu1 %406  ;;  %v405_v37 = vpop.permute.xlu0 %404 }
  0x9c   : > { %v410_v38 = vsel %vm408_vm2, %v403_v30, %v407_v36  ;;  %v412_v39 = vsel %vm408_vm2, %v407_v36, %v403_v30  ;;  %v409_v40 = vsel %vm408_vm2, %v401_v31, %v405_v37  ;;  %v411_v41 = vsel %vm408_vm2, %v405_v37, %v401_v31 }
  0x9d   : > { %v428_v42 = vmul.f32 %v419_v34, %v412_v39  ;;  %v429_v43 = vmul.f32 %v423_v35, %v410_v38  ;;  %v426_v44 = vmul.f32 %v419_v34, %v411_v41  ;;  %v427_v45 = vmul.f32 %v423_v35, %v409_v40 }
  0x9e   : > { %v525_v30 = vrot.slane %v3449_v24, %v3934_v12  ;;  %v529_v31 = vrot.slane %v3449_v24, %v3936_v13 }
  0x9f   : > { %v437_v47 = vpop.permute.xlu1 %436  ;;  %v435_v48 = vpop.permute.xlu0 %434  ;;  %v431_v49 = vpack.c.bf16 %v429_v43, %v427_v45  ;;  %v430_v50 = vpack.c.bf16 %v428_v42, %v426_v44  ;;  %v3450_v43 = vld [vmem:[%s5645_s1 + $0xc] sm:$0x3] }
  0xa1   : > { %689 = vmatprep.subr.bf16.mxu0 %v431_v49  ;;  %v563_v49 = vrot.slane %v3450_v43, %v3936_v13 }
  0xa2   : > { %690 = vmatpush1.bf16.msra.mxu0 %v430_v50 }
  0xa3   : > { %v441_v53 = vpop.permute.xlu1 %440  ;;  %v439_v54 = vpop.permute.xlu0 %438 }
  0xa4   : > { %v444_v55 = vsel %vm442_vm3, %v437_v47, %v441_v53  ;;  %v446_v56 = vsel %vm442_vm3, %v441_v53, %v437_v47  ;;  %v443_v57 = vsel %vm442_vm3, %v435_v48, %v439_v54  ;;  %v445_v58 = vsel %vm442_vm3, %v439_v54, %v435_v48 }
  0xa5   : > { %v462_v59 = vmul.f32 %v453_v51, %v446_v56  ;;  %v463_v60 = vmul.f32 %v457_v52, %v444_v55  ;;  %v460_v61 = vmul.f32 %v453_v51, %v445_v58  ;;  %v461_v62 = vmul.f32 %v457_v52, %v443_v57 }
  0xa6   : > { %v559_v48 = vrot.slane %v3450_v43, %v3934_v12 }
  0xa7   : > { %v471_v0 = vpop.permute.xlu1 %470  ;;  %v469_v5 = vpop.permute.xlu0 %468  ;;  %v465_v7 = vpack.c.bf16 %v463_v60, %v461_v62  ;;  %v464_v8 = vpack.c.bf16 %v462_v59, %v460_v61  ;;  %v3451_v60 = vld [vmem:[%s5645_s1 + $0xe] sm:$0x3] }
  0xa9   : > { %691 = vmatprep.subr.bf16.mxu0 %v465_v7  ;;  %v597_v7 = vrot.slane %v3451_v60, %v3936_v13 }
  0xaa   : > { %692 = vmatpush1.bf16.msra.mxu0 %v464_v8 }
  0xab   : > { %v475_v14 = vpop.permute.xlu1 %474  ;;  %v473_v15 = vpop.permute.xlu0 %472 }
  0xac   : > { %v478_v16 = vsel %vm476_vm4, %v471_v0, %v475_v14  ;;  %v480_v17 = vsel %vm476_vm4, %v475_v14, %v471_v0  ;;  %v477_v18 = vsel %vm476_vm4, %v469_v5, %v473_v15  ;;  %v479_v19 = vsel %vm476_vm4, %v473_v15, %v469_v5 }
  0xad   : > { %v496_v20 = vmul.f32 %v487_v9, %v480_v17  ;;  %v497_v21 = vmul.f32 %v491_v10, %v478_v16  ;;  %v494_v22 = vmul.f32 %v487_v9, %v479_v19  ;;  %v495_v23 = vmul.f32 %v491_v10, %v477_v18 }
  0xae   : > { %v593_v5 = vrot.slane %v3451_v60, %v3934_v12 }
  0xaf   : > { %v509_v25 = vpop.permute.xlu1 %508  ;;  %v507_v26 = vpop.permute.xlu0 %506  ;;  %v499_v27 = vpack.c.bf16 %v497_v21, %v495_v23  ;;  %v498_v28 = vpack.c.bf16 %v496_v20, %v494_v22  ;;  %v3452_v21 = vld [vmem:[%s5645_s1 + $0x10] sm:$0x3] }
  0xb1   : > { %693 = vmatprep.subr.bf16.mxu0 %v499_v27  ;;  %v631_v27 = vrot.slane %v3452_v21, %v3936_v13 }
  0xb2   : > { %694 = vmatpush1.bf16.msra.mxu0 %v498_v28 }
  0xb3   : > { %v513_v33 = vpop.permute.xlu1 %512  ;;  %v511_v34 = vpop.permute.xlu0 %510  ;;  %695 = vmatprep.subr.bf16.mxu0 %v503_v29 }
  0xb4   : > { %v516_v35 = vsel %vm514_vm5, %v509_v25, %v513_v33  ;;  %v518_v36 = vsel %vm514_vm5, %v513_v33, %v509_v25  ;;  %v515_v37 = vsel %vm514_vm5, %v507_v26, %v511_v34  ;;  %v517_v38 = vsel %vm514_vm5, %v511_v34, %v507_v26 }
  0xb5   : > { %v534_v39 = vmul.f32 %v525_v30, %v516_v35  ;;  %v535_v40 = vmul.f32 %v529_v31, %v518_v36  ;;  %v532_v41 = vmul.f32 %v525_v30, %v515_v37  ;;  %v533_v42 = vmul.f32 %v529_v31, %v517_v38 }
  0xb6   : > { %696 = vmatpush1.bf16.msra.mxu0 %v502_v32  ;;  %v627_v26 = vrot.slane %v3452_v21, %v3934_v12 }
  0xb7   : > { %v543_v44 = vpop.permute.xlu1 %542  ;;  %v541_v45 = vpop.permute.xlu0 %540  ;;  %v537_v46 = vpack.c.bf16 %v535_v40, %v533_v42  ;;  %v536_v47 = vpack.c.bf16 %v534_v39, %v532_v41  ;;  %v3618_v40 = vld [vmem:[%s5646_s2] ss:$8 sps:$4 sm:$0xff]  }
  0xb9   : > { %697 = vmatprep.subr.bf16.mxu0 %v537_v46 }
  0xba   : > { %698 = vmatpush1.bf16.msra.mxu0 %v536_v47 }
  0xbb   : > { %v547_v50 = vpop.permute.xlu1 %546  ;;  %v545_v51 = vpop.permute.xlu0 %544 }
  0xbc   : > { %v550_v52 = vsel %vm548_vm6, %v543_v44, %v547_v50  ;;  %v552_v53 = vsel %vm548_vm6, %v547_v50, %v543_v44  ;;  %v549_v54 = vsel %vm548_vm6, %v541_v45, %v545_v51  ;;  %v551_v55 = vsel %vm548_vm6, %v545_v51, %v541_v45 }
  0xbd   : > { %v568_v56 = vmul.f32 %v559_v48, %v550_v52  ;;  %v569_v57 = vmul.f32 %v563_v49, %v552_v53  ;;  %v566_v58 = vmul.f32 %v559_v48, %v549_v54  ;;  %v567_v59 = vmul.f32 %v563_v49, %v551_v55 }
  0xbf   : > { %v577_v61 = vpop.permute.xlu1 %576  ;;  %v575_v62 = vpop.permute.xlu0 %574  ;;  %v571_v63 = vpack.c.bf16 %v569_v57, %v567_v59  ;;  %v570_v0 = vpack.c.bf16 %v568_v56, %v566_v58 }
  0xc1   : > { %699 = vmatprep.subr.bf16.mxu0 %v571_v63 }
  0xc2   : > { %700 = vmatpush1.bf16.msra.mxu0 %v570_v0 }
  0xc3   : > { %v581_v8 = vpop.permute.xlu1 %580  ;;  %v579_v9 = vpop.permute.xlu0 %578 }
  0xc4   : > { %v584_v10 = vsel %vm582_vm7, %v577_v61, %v581_v8  ;;  %v586_v14 = vsel %vm582_vm7, %v581_v8, %v577_v61  ;;  %v583_v15 = vsel %vm582_vm7, %v575_v62, %v579_v9  ;;  %v585_v16 = vsel %vm582_vm7, %v579_v9, %v575_v62 }
  0xc5   : > { %v602_v17 = vmul.f32 %v593_v5, %v584_v10  ;;  %v603_v18 = vmul.f32 %v597_v7, %v586_v14  ;;  %v600_v19 = vmul.f32 %v593_v5, %v583_v15  ;;  %v601_v20 = vmul.f32 %v597_v7, %v585_v16 }
  0xc7   : > { %v611_v22 = vpop.permute.xlu1 %610  ;;  %v609_v23 = vpop.permute.xlu0 %608  ;;  %v605_v24 = vpack.c.bf16 %v603_v18, %v601_v20  ;;  %v604_v25 = vpack.c.bf16 %v602_v17, %v600_v19 }
  0xc9   : > { %701 = vmatprep.subr.bf16.mxu0 %v605_v24 }
  0xca   : > { %702 = vmatpush1.bf16.msra.mxu0 %v604_v25 }
  0xcb   : > { %v615_v28 = vpop.permute.xlu1 %614  ;;  %v613_v29 = vpop.permute.xlu0 %612 }
  0xcc   : > { %v618_v30 = vsel %vm616_vm8, %v611_v22, %v615_v28  ;;  %v620_v31 = vsel %vm616_vm8, %v615_v28, %v611_v22  ;;  %v617_v32 = vsel %vm616_vm8, %v609_v23, %v613_v29  ;;  %v619_v33 = vsel %vm616_vm8, %v613_v29, %v609_v23  ;;  %v837_v22 = vld [vmem:[%s5645_s1] sm:$0x3] }
  0xcd   : > { %v636_v34 = vmul.f32 %v627_v26, %v618_v30  ;;  %v637_v35 = vmul.f32 %v631_v27, %v620_v31  ;;  %v634_v36 = vmul.f32 %v627_v26, %v617_v32  ;;  %v635_v37 = vmul.f32 %v631_v27, %v619_v33  ;;  %v3458_v27 = vld [vmem:[%s5645_s1 + $0x2] sm:$0x3] }
  0xce   : > { %v842_v24 = vrot.slane %v837_v22, %v3934_v12  ;;  %v846_v25 = vrot.slane %v837_v22, %v3936_v13  ;;  %v874_v33 = vrot.slane %v3458_v27, %v3934_v12 }
  0xcf   : > { %v639_v38 = vpack.c.bf16 %v637_v35, %v635_v37  ;;  %v638_v39 = vpack.c.bf16 %v636_v34, %v634_v36  ;;  %v878_v34 = vrot.slane %v3458_v27, %v3936_v13 }
  0xd1   : > { %703 = vmatprep.subr.bf16.mxu0 %v639_v38 }
  0xd2   : > { %704 = vmatpush1.bf16.msra.mxu0 %v638_v39 }
  0xd5   : > { %720 = vmatmul.mubr.bf16.vlgmr.msra.gmra.mrb[0].mxu0 %v3618_v40  ;;  %v3459_v40 = vld [vmem:[%s5645_s1 + $0x4] sm:$0x3] }
  0xdc   : > { %v667_v41 = vpop.permute.xlu0 %666  ;;  %v672_v43 = vpop.permute.xlu1 %671 }
 0x1a8   : > { %v721_v42 = vpop.f32.mrb[0].mxu0 }
 0x1a9   : > { %v722_v44 = vadd.f32 %v721_v42, %v667_v41  ;;  %v723_v45 = vpop.f32.mrb[1].mxu0 }
 0x1aa   : > { %v724_v46 = vadd.f32 %v723_v45, %v667_v41  ;;  %v725_v47 = vpop.f32.mrb[2].mxu0 }
 0x1ab   : > { %vm730_vm9 = vcmp.ge.f32.partialorder %v722_v44, 0.0  ;;  %v734_v48 = vmul.f32 0.05, %v722_v44  ;;  %v726_v49 = vadd.f32 %v725_v47, %v672_v43  ;;  %v727_v50 = vpop.f32.mrb[3].mxu0 }
 0x1ac   : > { %vm731_vm10 = vcmp.ge.f32.partialorder %v724_v46, 0.0  ;;  %v735_v51 = vmul.f32 0.05, %v724_v46  ;;  %v728_v52 = vadd.f32 %v727_v50, %v672_v43 }
 0x1ad   : > { %v4057_v53 = vsel %vm730_vm9, %v722_v44, %v734_v48  ;;  %vm732_vm11 = vcmp.ge.f32.partialorder %v726_v49, 0.0  ;;  %v736_v54 = vmul.f32 0.05, %v726_v49  ;;  %v906_v48 = vrot.slane %v3459_v40, %v3934_v12 }
 0x1ae   : > { %v4059_v55 = vsel %vm731_vm10, %v724_v46, %v735_v51  ;;  %vm733_vm12 = vcmp.ge.f32.partialorder %v728_v52, 0.0  ;;  %v737_v56 = vmul.f32 0.05, %v728_v52  ;;  %825 = vrot.lane.b32.xlu1 %v4057_v53, %s5669_s11  ;;  %v742_v62 = vsub.f32 %v3847_v2, %v4057_v53  ;;  %v3622_v2 = vld [vmem:[%s5646_s2 + $0x14] ss:$8 sps:$4 sm:$0xff]  }
 0x1af   : > { %v4063_v57 = vsel %vm732_vm11, %v726_v49, %v736_v54  ;;  %v743_v60 = vsub.f32 %v3844_v1, %v4059_v55  ;;  %v3621_v1 = vld [vmem:[%s5648_s4] sm:$0xff]   ;;  %v910_v49 = vrot.slane %v3459_v40, %v3936_v13  ;;  %v3462_v40 = vld [vmem:[%s5645_s1 + $0xc] sm:$0x3] }
 0x1b0   : > { %v4065_v58 = vsel %vm733_vm12, %v728_v52, %v737_v56  ;;  %827 = vrot.lane.b32.xlu0 %v4063_v57, %s5669_s11  ;;  %v744_v59 = vsub.f32 %v3857_v4, %v4063_v57  ;;  %v3468_v4 = vld [vmem:[%s5647_s3 + $0x18] sm:$0xff] }
 0x1b1   : > { %v745_v61 = vsub.f32 %v3850_v3, %v4065_v58  ;;  %v3467_v3 = vld [vmem:[%s5647_s3 + $0x10] sm:$0xff] }
 0x1b2   : > { %857 = vrot.lane.b32.xlu1 %v4057_v53, %s5667_s12  ;;  %v748_v0 = vpack.c.bf16 %v744_v59, %v742_v62  ;;  %v3460_v59 = vld [vmem:[%s5645_s1 + $0x6] sm:$0x3] }
 0x1b3   : > { %v749_v63 = vpack.c.bf16 %v745_v61, %v743_v60 }
 0x1b4   : > { %859 = vrot.lane.b32.xlu0 %v4063_v57, %s5667_s12 }
 0x1b5   : > { %770 = vmatprep.subr.bf16.mxu1 %v749_v63 }
 0x1b6   : > { %889 = vrot.lane.b32.xlu1 %v4057_v53, %s5665_s13  ;;  %771 = vmatpush1.bf16.msra.mxu1 %v748_v0 }
 0x1b8   : > { %891 = vrot.lane.b32.xlu0 %v4063_v57, %s5665_s13 }
 0x1b9   : > { %3457 = vmatmul.mubr.msk.bf16.vlgmr.msra.gmra.mrb[0].mxu1 %vm683_vm0, %v3621_v1 }
 0x1ba   : > { %921 = vrot.lane.b32.xlu1 %v4057_v53, %s5663_s14  ;;  %3471 = vmatprep.mubr.msk.bf16.mxu1 %vm683_vm0, %v3622_v2 }
 0x1bc   : > { %923 = vrot.lane.b32.xlu0 %v4063_v57, %s5663_s14 }
 0x1be   : > { %957 = vrot.lane.b32.xlu1 %v4057_v53, %s5661_s19 }
 0x1c0   : > { %959 = vrot.lane.b32.xlu0 %v4063_v57, %s5661_s19 }
 0x1c2   : > { %989 = vrot.lane.b32.xlu1 %v4057_v53, %s5673_s21 }
 0x1c4   : > { %991 = vrot.lane.b32.xlu0 %v4063_v57, %s5673_s21 }
 0x1c6   : > { %1021 = vrot.lane.b32.xlu1 %v4057_v53, %s5674_s22 }
 0x1c8   : > { %1023 = vrot.lane.b32.xlu0 %v4063_v57, %s5674_s22 }
 0x1ca   : > { %829 = vrot.lane.b32.xlu1 %v4059_v55, %s5669_s11 }
 0x1cc   : > { %831 = vrot.lane.b32.xlu0 %v4065_v58, %s5669_s11 }
 0x1ce   : > { %861 = vrot.lane.b32.xlu1 %v4059_v55, %s5667_s12 }
 0x1d0   : > { %863 = vrot.lane.b32.xlu0 %v4065_v58, %s5667_s12 }
 0x1d2   : > { %893 = vrot.lane.b32.xlu1 %v4059_v55, %s5665_s13 }
 0x1d4   : > { %895 = vrot.lane.b32.xlu0 %v4065_v58, %s5665_s13 }
 0x1d6   : > { %925 = vrot.lane.b32.xlu1 %v4059_v55, %s5663_s14 }
 0x1d8   : > { %927 = vrot.lane.b32.xlu0 %v4065_v58, %s5663_s14 }
 0x1da   : > { %1053 = vrot.lane.b32.xlu1 %v4057_v53, %s5675_s28 }
 0x1dc   : > { %1055 = vrot.lane.b32.xlu0 %v4063_v57, %s5675_s28 }
 0x1de   : > { %961 = vrot.lane.b32.xlu1 %v4059_v55, %s5661_s19 }
 0x1e0   : > { %963 = vrot.lane.b32.xlu0 %v4065_v58, %s5661_s19  ;;  %s5679_s19 = smov 16  }
 0x1e2   : > { %993 = vrot.lane.b32.xlu1 %v4059_v55, %s5673_s21 }
 0x1e4   : > { %995 = vrot.lane.b32.xlu0 %v4065_v58, %s5673_s21 }
 0x1e6   : > { %1025 = vrot.lane.b32.xlu1 %v4059_v55, %s5674_s22 }
 0x1e8   : > { %1027 = vrot.lane.b32.xlu0 %v4065_v58, %s5674_s22 }
 0x1ea   : > { %1057 = vrot.lane.b32.xlu1 %v4059_v55, %s5675_s28 }
 0x1ec   : > { %1059 = vrot.lane.b32.xlu0 %v4065_v58, %s5675_s28 }
 0x1ee   : > { %1111 = vperm.xlu1 %3617, %v3467_v3   ;;  %v938_v3 = vrot.slane %v3460_v59, %v3934_v12 }
 0x1f0   : > { %1116 = vperm.xlu0 %3616, %v3468_v4   ;;  %v942_v4 = vrot.slane %v3460_v59, %v3936_v13 }
 0x220   : > { %v826_v5 = vpop.permute.xlu1 %825 }
 0x222   : > { %v828_v7 = vpop.permute.xlu0 %827 }
 0x224   : > { %v858_v8 = vpop.permute.xlu1 %857 }
 0x226   : > { %v860_v9 = vpop.permute.xlu0 %859 }
 0x228   : > { %v890_v10 = vpop.permute.xlu1 %889 }
 0x22a   : > { %v892_v14 = vpop.permute.xlu0 %891 }
 0x22c   : > { %v922_v15 = vpop.permute.xlu1 %921 }
 0x22e   : > { %v4151_v16 = vpop.permute.xlu0 %923 }
 0x230   : > { %v4153_v17 = vpop.permute.xlu1 %957 }
 0x232   : > { %v4155_v18 = vpop.permute.xlu0 %959 }
 0x234   : > { %v4157_v19 = vpop.permute.xlu1 %989 }
 0x236   : > { %v4159_v20 = vpop.permute.xlu0 %991 }
 0x238   : > { %v4161_v21 = vpop.permute.xlu1 %1021 }
 0x23a   : > { %v4166_v23 = vpop.permute.xlu0 %1023 }
 0x23c   : > { %v830_v26 = vpop.permute.xlu1 %829 }
 0x23d   : > { %v833_v28 = vsel %vm375_vm1, %v826_v5, %v830_v26  ;;  %v835_v29 = vsel %vm375_vm1, %v830_v26, %v826_v5 }
 0x23e   : > { %v832_v30 = vpop.permute.xlu0 %831  ;;  %v849_v35 = vmul.f32 %v842_v24, %v835_v29  ;;  %v850_v36 = vmul.f32 %v846_v25, %v833_v28 }
 0x23f   : > { %v834_v31 = vsel %vm375_vm1, %v828_v7, %v832_v30  ;;  %v836_v32 = vsel %vm375_vm1, %v832_v30, %v828_v7 }
 0x240   : > { %v851_v37 = vmul.f32 %v842_v24, %v836_v32  ;;  %v852_v38 = vmul.f32 %v846_v25, %v834_v31  ;;  %v862_v39 = vpop.permute.xlu1 %861 }
 0x241   : > { %v865_v41 = vsel %vm408_vm2, %v858_v8, %v862_v39  ;;  %v867_v42 = vsel %vm408_vm2, %v862_v39, %v858_v8  ;;  %v954_v39 = vpack.c.bf16 %v4065_v58, %v4059_v55 }
 0x242   : > { %v853_v43 = vpack.c.bf16 %v851_v37, %v849_v35  ;;  %v864_v44 = vpop.permute.xlu0 %863  ;;  %v854_v45 = vpack.c.bf16 %v852_v38, %v850_v36  ;;  %v881_v50 = vmul.f32 %v874_v33, %v867_v42  ;;  %v882_v51 = vmul.f32 %v878_v34, %v865_v41 }
 0x243   : > { %v866_v46 = vsel %vm408_vm2, %v860_v9, %v864_v44  ;;  %v868_v47 = vsel %vm408_vm2, %v864_v44, %v860_v9  ;;  %v953_v44 = vpack.c.bf16 %v4063_v57, %v4057_v53 }
 0x244   : > { %v883_v52 = vmul.f32 %v874_v33, %v868_v47  ;;  %v884_v54 = vmul.f32 %v878_v34, %v866_v46  ;;  %v894_v56 = vpop.permute.xlu1 %893  ;;  %1131 = vmatprep.subr.bf16.mxu1 %v854_v45  ;;  %v1006_v47 = vrot.slane %v3462_v40, %v3934_v12 }
 0x245   : > { %v897_v60 = vsel %vm442_vm3, %v890_v10, %v894_v56  ;;  %v899_v61 = vsel %vm442_vm3, %v894_v56, %v890_v10  ;;  %1132 = vmatpush1.bf16.msra.mxu1 %v853_v43 }
 0x246   : > { %v885_v62 = vpack.c.bf16 %v883_v52, %v881_v50  ;;  %v896_v63 = vpop.permute.xlu0 %895  ;;  %v886_v0 = vpack.c.bf16 %v884_v54, %v882_v51  ;;  %v913_v5 = vmul.f32 %v906_v48, %v899_v61  ;;  %v914_v7 = vmul.f32 %v910_v49, %v897_v60  ;;  %v3463_v54 = vld [vmem:[%s5645_s1 + $0xe] sm:$0x3] }
 0x247   : > { %v898_v1 = vsel %vm442_vm3, %v892_v14, %v896_v63  ;;  %v900_v2 = vsel %vm442_vm3, %v896_v63, %v892_v14 }
 0x248   : > { %v915_v8 = vmul.f32 %v906_v48, %v900_v2  ;;  %v916_v9 = vmul.f32 %v910_v49, %v898_v1  ;;  %v926_v22 = vpop.permute.xlu1 %925  ;;  %1133 = vmatprep.subr.bf16.mxu1 %v886_v0  ;;  %v1010_v48 = vrot.slane %v3462_v40, %v3936_v13  ;;  %v1038_v0 = vrot.slane %v3463_v54, %v3934_v12 }
 0x249   : > { %v929_v10 = vsel %vm476_vm4, %v922_v15, %v926_v22  ;;  %v931_v24 = vsel %vm476_vm4, %v926_v22, %v922_v15  ;;  %1134 = vmatpush1.bf16.msra.mxu1 %v885_v62  ;;  %v3461_v15 = vld [vmem:[%s5645_s1 + $0xa] sm:$0x3]  ;;  %v1042_v1 = vrot.slane %v3463_v54, %v3936_v13 }
 0x24a   : > { %v917_v25 = vpack.c.bf16 %v915_v8, %v913_v5  ;;  %v928_v26 = vpop.permute.xlu0 %927  ;;  %v918_v14 = vpack.c.bf16 %v916_v9, %v914_v7  ;;  %v945_v29 = vmul.f32 %v938_v3, %v931_v24  ;;  %v946_v30 = vmul.f32 %v942_v4, %v929_v10  ;;  %v3464_v7 = vld [vmem:[%s5645_s1 + $0x10] sm:$0x3] }
 0x24b   : > { %v930_v27 = vsel %vm476_vm4, %v4151_v16, %v928_v26  ;;  %v932_v28 = vsel %vm476_vm4, %v928_v26, %v4151_v16  ;;  %v974_v37 = vrot.slane %v3461_v15, %v3934_v12  ;;  %v978_v16 = vrot.slane %v3461_v15, %v3936_v13 }
 0x24c   : > { %v947_v31 = vmul.f32 %v938_v3, %v932_v28  ;;  %v948_v32 = vmul.f32 %v942_v4, %v930_v27  ;;  %v4219_v33 = vpop.permute.xlu1 %1053  ;;  %1135 = vmatprep.subr.bf16.mxu1 %v918_v14  ;;  %v1070_v26 = vrot.slane %v3464_v7, %v3934_v12  ;;  %v1074_v14 = vrot.slane %v3464_v7, %v3936_v13 }
 0x24d   : > { %1136 = vmatpush1.bf16.msra.mxu1 %v917_v25 }
 0x24e   : > { %v949_v34 = vpack.c.bf16 %v947_v31, %v945_v29  ;;  %v4224_v35 = vpop.permute.xlu0 %1055  ;;  %v950_v36 = vpack.c.bf16 %v948_v32, %v946_v30 }
 0x250   : > { %v962_v38 = vpop.permute.xlu1 %961  ;;  %1137 = vmatprep.subr.bf16.mxu1 %v950_v36 }
 0x251   : > { %v965_v41 = vsel %vm514_vm5, %v4153_v17, %v962_v38  ;;  %v967_v42 = vsel %vm514_vm5, %v962_v38, %v4153_v17  ;;  %1138 = vmatpush1.bf16.msra.mxu1 %v949_v34 }
 0x252   : > { %v964_v43 = vpop.permute.xlu0 %963  ;;  %1139 = vmatprep.subr.bf16.mxu1 %v954_v39  ;;  %v981_v49 = vmul.f32 %v974_v37, %v965_v41  ;;  %v982_v17 = vmul.f32 %v978_v16, %v967_v42  ;;  %v3624_v42 = vld [vmem:[%s5646_s2 + $0x10] ss:$8 sps:$4 sm:$0xff]  }
 0x253   : > { %v966_v45 = vsel %vm514_vm5, %v4155_v18, %v964_v43  ;;  %v968_v46 = vsel %vm514_vm5, %v964_v43, %v4155_v18 }
 0x254   : > { %v983_v50 = vmul.f32 %v974_v37, %v966_v45  ;;  %v984_v51 = vmul.f32 %v978_v16, %v968_v46  ;;  %v994_v52 = vpop.permute.xlu1 %993 }
 0x255   : > { %v997_v56 = vsel %vm548_vm6, %v4157_v19, %v994_v52  ;;  %v999_v18 = vsel %vm548_vm6, %v994_v52, %v4157_v19  ;;  %1140 = vmatpush1.bf16.msra.mxu1 %v953_v44 }
 0x256   : > { %v985_v59 = vpack.c.bf16 %v983_v50, %v981_v49  ;;  %v996_v60 = vpop.permute.xlu0 %995  ;;  %v986_v61 = vpack.c.bf16 %v984_v51, %v982_v17  ;;  %v1013_v2 = vmul.f32 %v1006_v47, %v997_v56  ;;  %v1014_v3 = vmul.f32 %v1010_v48, %v999_v18 }
 0x257   : > { %v998_v62 = vsel %vm548_vm6, %v4159_v20, %v996_v60  ;;  %v1000_v63 = vsel %vm548_vm6, %v996_v60, %v4159_v20 }
 0x258   : > { %v1015_v4 = vmul.f32 %v1006_v47, %v998_v62  ;;  %v1016_v19 = vmul.f32 %v1010_v48, %v1000_v63  ;;  %v1026_v5 = vpop.permute.xlu1 %1025  ;;  %1141 = vmatprep.subr.bf16.mxu1 %v986_v61 }
 0x259   : > { %v1029_v8 = vsel %vm582_vm7, %v4161_v21, %v1026_v5  ;;  %v1031_v20 = vsel %vm582_vm7, %v1026_v5, %v4161_v21  ;;  %1142 = vmatpush1.bf16.msra.mxu1 %v985_v59 }
 0x25a   : > { %v1017_v9 = vpack.c.bf16 %v1015_v4, %v1013_v2  ;;  %v1028_v22 = vpop.permute.xlu0 %1027  ;;  %v1018_v10 = vpack.c.bf16 %v1016_v19, %v1014_v3  ;;  %v1045_v27 = vmul.f32 %v1038_v0, %v1029_v8  ;;  %v1046_v28 = vmul.f32 %v1042_v1, %v1031_v20  ;;  %v3482_v4 = vld [vmem:[%s5647_s3 + $0x28] sm:$0xff] }
 0x25b   : > { %v1030_v24 = vsel %vm582_vm7, %v4166_v23, %v1028_v22  ;;  %v1032_v25 = vsel %vm582_vm7, %v1028_v22, %v4166_v23 }
 0x25c   : > { %v1047_v29 = vmul.f32 %v1038_v0, %v1030_v24  ;;  %v1048_v21 = vmul.f32 %v1042_v1, %v1032_v25  ;;  %v1058_v30 = vpop.permute.xlu1 %1057  ;;  %1143 = vmatprep.subr.bf16.mxu1 %v1018_v10 }
 0x25d   : > { %v1061_v31 = vsel %vm616_vm8, %v4219_v33, %v1058_v30  ;;  %v1063_v32 = vsel %vm616_vm8, %v1058_v30, %v4219_v33  ;;  %1144 = vmatpush1.bf16.msra.mxu1 %v1017_v9 }
 0x25e   : > { %v1049_v23 = vpack.c.bf16 %v1047_v29, %v1045_v27  ;;  %v1060_v15 = vpop.permute.xlu0 %1059  ;;  %v1050_v34 = vpack.c.bf16 %v1048_v21, %v1046_v28  ;;  %v1077_v16 = vmul.f32 %v1070_v26, %v1061_v31  ;;  %v1078_v38 = vmul.f32 %v1074_v14, %v1063_v32  ;;  %v1202_v28 = vld [vmem:[%s5645_s1] sm:$0x3]  ;;  %v3472_v32 = vld [vmem:[%s5645_s1 + $0x2] sm:$0x3] }
 0x25f   : > { %v1062_v36 = vsel %vm616_vm8, %v4224_v35, %v1060_v15  ;;  %v1064_v37 = vsel %vm616_vm8, %v1060_v15, %v4224_v35  ;;  %v1207_v21 = vrot.slane %v1202_v28, %v3934_v12  ;;  %v1211_v30 = vrot.slane %v1202_v28, %v3936_v13 }
 0x260   : > { %v1079_v39 = vmul.f32 %v1070_v26, %v1062_v36  ;;  %v1080_v40 = vmul.f32 %v1074_v14, %v1064_v37  ;;  %1145 = vmatprep.subr.bf16.mxu1 %v1050_v34 }
 0x261   : > { %1146 = vmatpush1.bf16.msra.mxu1 %v1049_v23 }
 0x262   : > { %v1081_v41 = vpack.c.bf16 %v1079_v39, %v1077_v16  ;;  %v1082_v33 = vpack.c.bf16 %v1080_v40, %v1078_v38  ;;  %v1239_v16 = vrot.slane %v3472_v32, %v3934_v12  ;;  %v1243_v38 = vrot.slane %v3472_v32, %v3936_v13 }
 0x264   : > { %1147 = vmatprep.subr.bf16.mxu1 %v1082_v33 }
 0x265   : > { %1148 = vmatpush1.bf16.msra.mxu1 %v1081_v41 }
 0x268   : > { %1164 = vmatmul.mubr.bf16.vlgmr.msra.gmra.mrb[4].mxu1 %v3624_v42 }
 0x269   : > { %1613 = vmatprep.mubr.bf16.mxu1 %v3727_v6 }
 0x26d   : > { %v1112_v46 = vpop.permute.xlu1 %1111 }
 0x26f   : > { %v1117_v17 = vpop.permute.xlu0 %1116 }
 0x28c   : > { %v4299_v43 = vpop.f32.mrb[0].mxu1 }
 0x28d   : > { %v4301_v35 = vpop.f32.mrb[1].mxu1 }
 0x28e   : > { %v4303_v44 = vpop.f32.mrb[2].mxu1 }
 0x28f   : > { %v4305_v45 = vpop.f32.mrb[3].mxu1 }
 0x33b   : > { %v1165_v47 = vpop.f32.mrb[4].mxu1 }
 0x33c   : > { %v1166_v48 = vadd.f32 %v1165_v47, %v1112_v46  ;;  %v1167_v49 = vpop.f32.mrb[5].mxu1 }
 0x33d   : > { %v1169_v50 = vpop.f32.mrb[6].mxu1 }
 0x33e   : > { %vm1174_vm13 = vcmp.ge.f32.partialorder %v1166_v48, 0.0  ;;  %v1178_v51 = vmul.f32 0.05, %v1166_v48  ;;  %v1170_v52 = vadd.f32 %v1169_v50, %v1117_v17  ;;  %v1171_v54 = vpop.f32.mrb[7].mxu1 }
 0x340   : > { %v1182_v56 = vsel %vm1174_vm13, %v1166_v48, %v1178_v51  ;;  %vm1176_vm14 = vcmp.ge.f32.partialorder %v1170_v52, 0.0  ;;  %v1180_v18 = vmul.f32 0.05, %v1170_v52 }
 0x341   : > { %v4308_v59 = vsub.f32 %v4057_v53, %v1182_v56  ;;  %v1168_v53 = vadd.f32 %v1167_v49, %v1112_v46  ;;  %v3473_v46 = vld [vmem:[%s5645_s1 + $0x4] sm:$0x3] }
 0x342   : > { %v1184_v60 = vsel %vm1176_vm14, %v1170_v52, %v1180_v18  ;;  %v1275_v56 = vrot.slane %v3473_v46, %v3936_v13 }
 0x343   : > { %v4311_v61 = vsub.f32 %v4063_v57, %v1184_v60  ;;  %1190 = vrot.lane.b32.xlu1 %v4308_v59, %s5669_s11  ;;  %v1172_v57 = vadd.f32 %v1171_v54, %v1117_v17  ;;  %v1179_v62 = vmul.f32 0.05, %v1168_v53  ;;  %vm1175_vm15 = vcmp.ge.f32.partialorder %v1168_v53, 0.0 }
 0x344   : > { %v1271_v54 = vrot.slane %v3473_v46, %v3934_v12 }
 0x345   : > { %1192 = vrot.lane.b32.xlu0 %v4311_v61, %s5669_s11  ;;  %v1181_v63 = vmul.f32 0.05, %v1172_v57  ;;  %vm1177_vm9 = vcmp.ge.f32.partialorder %v1172_v57, 0.0  ;;  %v1183_v0 = vsel %vm1175_vm15, %v1168_v53, %v1179_v62 }
 0x346   : > { %v4340_v2 = vsub.f32 %v4059_v55, %v1183_v0  ;;  %v3625_v55 = vld [vmem:[%s5646_s2 + $0x24] ss:$8 sps:$4 sm:$0xff]  }
 0x347   : > { %1222 = vrot.lane.b32.xlu1 %v4308_v59, %s5667_s12  ;;  %v1185_v1 = vsel %vm1177_vm9, %v1172_v57, %v1181_v63  ;;  %3485 = vmatprep.mubr.msk.bf16.mxu0 %vm683_vm0, %v3625_v55  ;;  %v3474_v63 = vld [vmem:[%s5645_s1 + $0x6] sm:$0x3] }
 0x348   : > { %v4345_v3 = vsub.f32 %v4065_v58, %v1185_v1  ;;  %v3481_v58 = vld [vmem:[%s5647_s3 + $0x20] sm:$0xff] }
 0x349   : > { %1224 = vrot.lane.b32.xlu0 %v4311_v61, %s5667_s12 }
 0x34b   : > { %1254 = vrot.lane.b32.xlu1 %v4308_v59, %s5665_s13 }
 0x34d   : > { %1256 = vrot.lane.b32.xlu0 %v4311_v61, %s5665_s13 }
 0x34f   : > { %1286 = vrot.lane.b32.xlu1 %v4308_v59, %s5663_s14 }
 0x351   : > { %1288 = vrot.lane.b32.xlu0 %v4311_v61, %s5663_s14 }
 0x353   : > { %1322 = vrot.lane.b32.xlu1 %v4308_v59, %s5676_s29 }
 0x355   : > { %1324 = vrot.lane.b32.xlu0 %v4311_v61, %s5676_s29 }
 0x357   : > { %1354 = vrot.lane.b32.xlu1 %v4308_v59, %s5673_s21 }
 0x359   : > { %1356 = vrot.lane.b32.xlu0 %v4311_v61, %s5673_s21 }
 0x35b   : > { %1386 = vrot.lane.b32.xlu1 %v4308_v59, %s5674_s22 }
 0x35d   : > { %1388 = vrot.lane.b32.xlu0 %v4311_v61, %s5674_s22 }
 0x35f   : > { %1194 = vrot.lane.b32.xlu1 %v4340_v2, %s5669_s11 }
 0x361   : > { %1196 = vrot.lane.b32.xlu0 %v4345_v3, %s5669_s11 }
 0x363   : > { %1226 = vrot.lane.b32.xlu1 %v4340_v2, %s5667_s12 }
 0x365   : > { %1228 = vrot.lane.b32.xlu0 %v4345_v3, %s5667_s12 }
 0x367   : > { %1258 = vrot.lane.b32.xlu1 %v4340_v2, %s5665_s13 }
 0x369   : > { %1260 = vrot.lane.b32.xlu0 %v4345_v3, %s5665_s13 }
 0x36b   : > { %1290 = vrot.lane.b32.xlu1 %v4340_v2, %s5663_s14 }
 0x36d   : > { %1292 = vrot.lane.b32.xlu0 %v4345_v3, %s5663_s14  ;;  %s5680_s14 = smov 17  }
 0x36f   : > { %1418 = vrot.lane.b32.xlu1 %v4308_v59, %s5675_s28 }
 0x371   : > { %1420 = vrot.lane.b32.xlu0 %v4311_v61, %s5675_s28 }
 0x373   : > { %1326 = vrot.lane.b32.xlu1 %v4340_v2, %s5676_s29 }
 0x375   : > { %1328 = vrot.lane.b32.xlu0 %v4345_v3, %s5676_s29 }
 0x377   : > { %1358 = vrot.lane.b32.xlu1 %v4340_v2, %s5673_s21 }
 0x379   : > { %1360 = vrot.lane.b32.xlu0 %v4345_v3, %s5673_s21 }
 0x37b   : > { %1390 = vrot.lane.b32.xlu1 %v4340_v2, %s5674_s22 }
 0x37d   : > { %1392 = vrot.lane.b32.xlu0 %v4345_v3, %s5674_s22 }
 0x37f   : > { %1422 = vrot.lane.b32.xlu1 %v4340_v2, %s5675_s28 }
 0x381   : > { %1424 = vrot.lane.b32.xlu0 %v4345_v3, %s5675_s28 }
 0x383   : > { %1476 = vperm.xlu1 %3617, %v3481_v58  }
 0x385   : > { %1481 = vperm.xlu0 %3616, %v3482_v4  }
 0x3b5   : > { %v1191_v19 = vpop.permute.xlu1 %1190 }
 0x3b7   : > { %v1193_v5 = vpop.permute.xlu0 %1192 }
 0x3b9   : > { %v1223_v7 = vpop.permute.xlu1 %1222 }
 0x3bb   : > { %v1225_v8 = vpop.permute.xlu0 %1224 }
 0x3bd   : > { %v1255_v20 = vpop.permute.xlu1 %1254 }
 0x3bf   : > { %v1257_v9 = vpop.permute.xlu0 %1256 }
 0x3c1   : > { %v1287_v22 = vpop.permute.xlu1 %1286 }
 0x3c3   : > { %v4393_v10 = vpop.permute.xlu0 %1288 }
 0x3c5   : > { %v4395_v24 = vpop.permute.xlu1 %1322 }
 0x3c7   : > { %v4397_v25 = vpop.permute.xlu0 %1324 }
 0x3c9   : > { %v4399_v26 = vpop.permute.xlu1 %1354 }
 0x3cb   : > { %v4401_v14 = vpop.permute.xlu0 %1356 }
 0x3cd   : > { %v4403_v27 = vpop.permute.xlu1 %1386 }
 0x3cf   : > { %v4408_v29 = vpop.permute.xlu0 %1388 }
 0x3d1   : > { %v1195_v31 = vpop.permute.xlu1 %1194 }
 0x3d2   : > { %v1198_v23 = vsel %vm375_vm1, %v1191_v19, %v1195_v31  ;;  %v1200_v15 = vsel %vm375_vm1, %v1195_v31, %v1191_v19 }
 0x3d3   : > { %v1197_v34 = vpop.permute.xlu0 %1196  ;;  %v1214_v39 = vmul.f32 %v1207_v21, %v1200_v15  ;;  %v1215_v40 = vmul.f32 %v1211_v30, %v1198_v23 }
 0x3d4   : > { %v1199_v36 = vsel %vm375_vm1, %v1193_v5, %v1197_v34  ;;  %v1201_v37 = vsel %vm375_vm1, %v1197_v34, %v1193_v5 }
 0x3d5   : > { %v1216_v41 = vmul.f32 %v1207_v21, %v1201_v37  ;;  %v1217_v33 = vmul.f32 %v1211_v30, %v1199_v36  ;;  %v1227_v42 = vpop.permute.xlu1 %1226 }
 0x3d6   : > { %v1230_v47 = vsel %vm408_vm2, %v1223_v7, %v1227_v42  ;;  %v1232_v48 = vsel %vm408_vm2, %v1227_v42, %v1223_v7  ;;  %v1303_v7 = vrot.slane %v3474_v63, %v3934_v12 }
 0x3d7   : > { %v1218_v49 = vpack.c.bf16 %v1216_v41, %v1214_v39  ;;  %v1229_v17 = vpop.permute.xlu0 %1228  ;;  %v1219_v50 = vpack.c.bf16 %v1217_v33, %v1215_v40  ;;  %v1246_v18 = vmul.f32 %v1239_v16, %v1232_v48  ;;  %v1247_v60 = vmul.f32 %v1243_v38, %v1230_v47 }
 0x3d8   : > { %v1231_v51 = vsel %vm408_vm2, %v1225_v8, %v1229_v17  ;;  %v1233_v52 = vsel %vm408_vm2, %v1229_v17, %v1225_v8  ;;  %v1307_v8 = vrot.slane %v3474_v63, %v3936_v13  ;;  %v3476_v17 = vld [vmem:[%s5645_s1 + $0xc] sm:$0x3] }
 0x3d9   : > { %v1248_v53 = vmul.f32 %v1239_v16, %v1233_v52  ;;  %v1249_v57 = vmul.f32 %v1243_v38, %v1231_v51  ;;  %1496 = vmatprep.subr.bf16.mxu0 %v1219_v50  ;;  %v1259_v62 = vpop.permute.xlu1 %1258 }
 0x3da   : > { %v1262_v0 = vsel %vm442_vm3, %v1255_v20, %v1259_v62  ;;  %v1264_v1 = vsel %vm442_vm3, %v1259_v62, %v1255_v20  ;;  %1497 = vmatpush1.bf16.msra.mxu0 %v1218_v49  ;;  %v1319_v49 = vpack.c.bf16 %v4345_v3, %v4340_v2 }
 0x3db   : > { %v1250_v55 = vpack.c.bf16 %v1248_v53, %v1246_v18  ;;  %v1261_v58 = vpop.permute.xlu0 %1260  ;;  %v1251_v4 = vpack.c.bf16 %v1249_v57, %v1247_v60  ;;  %v1278_v28 = vmul.f32 %v1271_v54, %v1264_v1  ;;  %v1279_v21 = vmul.f32 %v1275_v56, %v1262_v0  ;;  %v3477_v1 = vld [vmem:[%s5645_s1 + $0xe] sm:$0x3] }
 0x3dc   : > { %v1263_v19 = vsel %vm442_vm3, %v1257_v9, %v1261_v58  ;;  %v1265_v5 = vsel %vm442_vm3, %v1261_v58, %v1257_v9  ;;  %v1371_v60 = vrot.slane %v3476_v17, %v3934_v12  ;;  %v1375_v53 = vrot.slane %v3476_v17, %v3936_v13 }
 0x3dd   : > { %v1280_v30 = vmul.f32 %v1271_v54, %v1265_v5  ;;  %v1281_v31 = vmul.f32 %v1275_v56, %v1263_v19  ;;  %1498 = vmatprep.subr.bf16.mxu0 %v1251_v4  ;;  %v1291_v20 = vpop.permute.xlu1 %1290  ;;  %v1318_v54 = vpack.c.bf16 %v4311_v61, %v4308_v59 }
 0x3de   : > { %v1294_v32 = vsel %vm476_vm4, %v1287_v22, %v1291_v20  ;;  %v1296_v23 = vsel %vm476_vm4, %v1291_v20, %v1287_v22  ;;  %1499 = vmatpush1.bf16.msra.mxu0 %v1250_v55  ;;  %v3475_v22 = vld [vmem:[%s5645_s1 + $0xa] sm:$0x3] }
 0x3df   : > { %v1282_v15 = vpack.c.bf16 %v1280_v30, %v1278_v28  ;;  %v1293_v34 = vpop.permute.xlu0 %1292  ;;  %v1283_v9 = vpack.c.bf16 %v1281_v31, %v1279_v21  ;;  %v1310_v16 = vmul.f32 %v1303_v7, %v1296_v23  ;;  %v1311_v38 = vmul.f32 %v1307_v8, %v1294_v32  ;;  %v3478_v32 = vld [vmem:[%s5645_s1 + $0x10] sm:$0x3] }
 0x3e0   : > { %v1295_v36 = vsel %vm476_vm4, %v4393_v10, %v1293_v34  ;;  %v1297_v37 = vsel %vm476_vm4, %v1293_v34, %v4393_v10  ;;  %v1339_v47 = vrot.slane %v3475_v22, %v3934_v12  ;;  %v1343_v10 = vrot.slane %v3475_v22, %v3936_v13 }
 0x3e1   : > { %v1312_v39 = vmul.f32 %v1303_v7, %v1297_v37  ;;  %v1313_v40 = vmul.f32 %v1307_v8, %v1295_v36  ;;  %1500 = vmatprep.subr.bf16.mxu0 %v1283_v9  ;;  %v4461_v41 = vpop.permute.xlu1 %1418  ;;  %v1403_v8 = vrot.slane %v3477_v1, %v3934_v12  ;;  %v1407_v28 = vrot.slane %v3477_v1, %v3936_v13 }
 0x3e2   : > { %1501 = vmatpush1.bf16.msra.mxu0 %v1282_v15 }
 0x3e3   : > { %v1314_v33 = vpack.c.bf16 %v1312_v39, %v1310_v16  ;;  %v4466_v42 = vpop.permute.xlu0 %1420  ;;  %v1315_v46 = vpack.c.bf16 %v1313_v40, %v1311_v38  ;;  %v1435_v16 = vrot.slane %v3478_v32, %v3934_v12  ;;  %v1439_v38 = vrot.slane %v3478_v32, %v3936_v13 }
 0x3e5   : > { %1502 = vmatprep.subr.bf16.mxu0 %v1315_v46  ;;  %v1327_v48 = vpop.permute.xlu1 %1326 }
 0x3e6   : > { %v1330_v50 = vsel %vm514_vm5, %v4395_v24, %v1327_v48  ;;  %v1332_v51 = vsel %vm514_vm5, %v1327_v48, %v4395_v24  ;;  %1503 = vmatpush1.bf16.msra.mxu0 %v1314_v33 }
 0x3e7   : > { %v1329_v52 = vpop.permute.xlu0 %1328  ;;  %1504 = vmatprep.subr.bf16.mxu0 %v1319_v49  ;;  %v1346_v57 = vmul.f32 %v1339_v47, %v1330_v50  ;;  %v1347_v24 = vmul.f32 %v1343_v10, %v1332_v51 }
 0x3e8   : > { %v1331_v56 = vsel %vm514_vm5, %v4397_v25, %v1329_v52  ;;  %v1333_v18 = vsel %vm514_vm5, %v1329_v52, %v4397_v25 }
 0x3e9   : > { %v1348_v62 = vmul.f32 %v1339_v47, %v1331_v56  ;;  %v1349_v63 = vmul.f32 %v1343_v10, %v1333_v18  ;;  %v1359_v0 = vpop.permute.xlu1 %1358  ;;  %v3627_v18 = vld [vmem:[%s5646_s2 + $0x20] ss:$8 sps:$4 sm:$0xff]  }
 0x3ea   : > { %v1362_v55 = vsel %vm548_vm6, %v4399_v26, %v1359_v0  ;;  %v1364_v25 = vsel %vm548_vm6, %v1359_v0, %v4399_v26  ;;  %1505 = vmatpush1.bf16.msra.mxu0 %v1318_v54 }
 0x3eb   : > { %v1350_v58 = vpack.c.bf16 %v1348_v62, %v1346_v57  ;;  %v1361_v4 = vpop.permute.xlu0 %1360  ;;  %v1351_v19 = vpack.c.bf16 %v1349_v63, %v1347_v24  ;;  %v1378_v21 = vmul.f32 %v1371_v60, %v1362_v55  ;;  %v1379_v30 = vmul.f32 %v1375_v53, %v1364_v25 }
 0x3ec   : > { %v1363_v5 = vsel %vm548_vm6, %v4401_v14, %v1361_v4  ;;  %v1365_v7 = vsel %vm548_vm6, %v1361_v4, %v4401_v14 }
 0x3ed   : > { %v1380_v31 = vmul.f32 %v1371_v60, %v1363_v5  ;;  %v1381_v26 = vmul.f32 %v1375_v53, %v1365_v7  ;;  %v1391_v20 = vpop.permute.xlu1 %1390  ;;  %1506 = vmatprep.subr.bf16.mxu0 %v1351_v19 }
 0x3ee   : > { %v1394_v23 = vsel %vm582_vm7, %v4403_v27, %v1391_v20  ;;  %v1396_v14 = vsel %vm582_vm7, %v1391_v20, %v4403_v27  ;;  %1507 = vmatpush1.bf16.msra.mxu0 %v1350_v58 }
 0x3ef   : > { %v1382_v15 = vpack.c.bf16 %v1380_v31, %v1378_v21  ;;  %v1393_v34 = vpop.permute.xlu0 %1392  ;;  %v1383_v9 = vpack.c.bf16 %v1381_v26, %v1379_v30  ;;  %v1410_v39 = vmul.f32 %v1403_v8, %v1394_v23  ;;  %v1411_v40 = vmul.f32 %v1407_v28, %v1396_v14 }
 0x3f0   : > { %v1395_v36 = vsel %vm582_vm7, %v4408_v29, %v1393_v34  ;;  %v1397_v37 = vsel %vm582_vm7, %v1393_v34, %v4408_v29 }
 0x3f1   : > { %v1412_v22 = vmul.f32 %v1403_v8, %v1395_v36  ;;  %v1413_v27 = vmul.f32 %v1407_v28, %v1397_v37  ;;  %v1423_v33 = vpop.permute.xlu1 %1422  ;;  %1508 = vmatprep.subr.bf16.mxu0 %v1383_v9 }
 0x3f2   : > { %v1426_v46 = vsel %vm616_vm8, %v4461_v41, %v1423_v33  ;;  %v1428_v47 = vsel %vm616_vm8, %v1423_v33, %v4461_v41  ;;  %1509 = vmatpush1.bf16.msra.mxu0 %v1382_v15  ;;  %v1652_v33 = vld [vmem:[%s5645_s1] sm:$0x3] }
 0x3f3   : > { %v1414_v29 = vpack.c.bf16 %v1412_v22, %v1410_v39  ;;  %v1425_v10 = vpop.permute.xlu0 %1424  ;;  %v1415_v48 = vpack.c.bf16 %v1413_v27, %v1411_v40  ;;  %v1442_v50 = vmul.f32 %v1435_v16, %v1426_v46  ;;  %v1443_v51 = vmul.f32 %v1439_v38, %v1428_v47 }
 0x3f4   : > { %v1427_v49 = vsel %vm616_vm8, %v4466_v42, %v1425_v10  ;;  %v1429_v17 = vsel %vm616_vm8, %v1425_v10, %v4466_v42  ;;  %v1657_v47 = vrot.slane %v1652_v33, %v3934_v12 }
 0x3f5   : > { %v1444_v52 = vmul.f32 %v1435_v16, %v1427_v49  ;;  %v1445_v54 = vmul.f32 %v1439_v38, %v1429_v17  ;;  %1510 = vmatprep.subr.bf16.mxu0 %v1415_v48  ;;  %v3492_v48 = vld [vmem:[%s5645_s1 + $0x2] sm:$0x3] }
 0x3f6   : > { %1511 = vmatpush1.bf16.msra.mxu0 %v1414_v29  ;;  %v1661_v29 = vrot.slane %v1652_v33, %v3936_v13 }
 0x3f7   : > { %v1446_v56 = vpack.c.bf16 %v1444_v52, %v1442_v50  ;;  %v1447_v41 = vpack.c.bf16 %v1445_v54, %v1443_v51  ;;  %v1689_v54 = vrot.slane %v3492_v48, %v3934_v12 }
 0x3f9   : > { %1512 = vmatprep.subr.bf16.mxu0 %v1447_v41 }
 0x3fa   : > { %1513 = vmatpush1.bf16.msra.mxu0 %v1446_v56  ;;  %v1693_v56 = vrot.slane %v3492_v48, %v3936_v13 }
 0x3fd   : > { %1529 = vmatmul.mubr.bf16.vlgmr.msra.gmra.mrb[4].mxu0 %v3627_v18 }
 0x402   : > { %v1477_v60 = vpop.permute.xlu1 %1476 }
 0x404   : > { %v1482_v42 = vpop.permute.xlu0 %1481 }
 0x4d0   : > { %v1530_v53 = vpop.f32.mrb[4].mxu0 }
 0x4d1   : > { %v1531_v57 = vadd.f32 %v1530_v53, %v1477_v60  ;;  %v1532_v24 = vpop.f32.mrb[5].mxu0 }
 0x4d2   : > { %v1533_v62 = vadd.f32 %v1532_v24, %v1477_v60  ;;  %v1534_v63 = vpop.f32.mrb[6].mxu0  ;;  %v3493_v24 = vld [vmem:[%s5645_s1 + $0x4] sm:$0x3] }
 0x4d3   : > { %vm1539_vm10 = vcmp.ge.f32.partialorder %v1531_v57, 0.0  ;;  %v1543_v0 = vmul.f32 0.05, %v1531_v57  ;;  %v1535_v1 = vadd.f32 %v1534_v63, %v1482_v42  ;;  %v1536_v55 = vpop.f32.mrb[7].mxu0 }
 0x4d4   : > { %vm1540_vm11 = vcmp.ge.f32.partialorder %v1533_v62, 0.0  ;;  %v1544_v25 = vmul.f32 0.05, %v1533_v62  ;;  %v1537_v58 = vadd.f32 %v1536_v55, %v1482_v42 }
 0x4d5   : > { %v4540_v4 = vsel %vm1539_vm10, %v1531_v57, %v1543_v0  ;;  %vm1541_vm12 = vcmp.ge.f32.partialorder %v1535_v1, 0.0  ;;  %v1545_v19 = vmul.f32 0.05, %v1535_v1 }
 0x4d6   : > { %v4542_v5 = vsel %vm1540_vm11, %v1533_v62, %v1544_v25  ;;  %vm1542_vm13 = vcmp.ge.f32.partialorder %v1537_v58, 0.0  ;;  %v1546_v7 = vmul.f32 0.05, %v1537_v58  ;;  %1640 = vrot.lane.b32.xlu1 %v4540_v4, %s5669_s11  ;;  %v1551_v26 = vsub.f32 %v4308_v59, %v4540_v4  ;;  %v3628_v59 = vld [vmem:[%s5648_s4 + $0x8] sm:$0xff]  }
 0x4d7   : > { %v4546_v8 = vsel %vm1541_vm12, %v1535_v1, %v1545_v19  ;;  %v1552_v30 = vsub.f32 %v4340_v2, %v4542_v5  ;;  %v3501_v2 = vld [vmem:[%s5647_s3 + $0x30] sm:$0xff]  ;;  %v1725_v19 = vrot.slane %v3493_v24, %v3936_v13 }
 0x4d8   : > { %v4548_v28 = vsel %vm1542_vm13, %v1537_v58, %v1546_v7  ;;  %1642 = vrot.lane.b32.xlu0 %v4546_v8, %s5669_s11  ;;  %v1553_v21 = vsub.f32 %v4311_v61, %v4546_v8  ;;  %v3629_v61 = vld [vmem:[%s5646_s2 + $0x34] ss:$8 sps:$4 sm:$0xff]   ;;  %v1721_v58 = vrot.slane %v3493_v24, %v3934_v12 }
 0x4d9   : > { %v1554_v31 = vsub.f32 %v4345_v3, %v4548_v28  ;;  %v3502_v3 = vld [vmem:[%s5647_s3 + $0x38] sm:$0xff] }
 0x4da   : > { %1672 = vrot.lane.b32.xlu1 %v4540_v4, %s5667_s12  ;;  %v1558_v32 = vpack.c.bf16 %v1553_v21, %v1551_v26 }
 0x4db   : > { %v1559_v20 = vpack.c.bf16 %v1554_v31, %v1552_v30 }
 0x4dc   : > { %1674 = vrot.lane.b32.xlu0 %v4546_v8, %s5667_s12 }
 0x4dd   : > { %1581 = vmatprep.subr.bf16.mxu1 %v1559_v20  ;;  %v3494_v20 = vld [vmem:[%s5645_s1 + $0x6] sm:$0x3] }
 0x4de   : > { %1704 = vrot.lane.b32.xlu1 %v4540_v4, %s5665_s13  ;;  %1582 = vmatpush1.bf16.msra.mxu1 %v1558_v32 }
 0x4e0   : > { %1706 = vrot.lane.b32.xlu0 %v4546_v8, %s5665_s13 }
 0x4e1   : > { %3491 = vmatmul.mubr.msk.bf16.vlgmr.msra.gmra.mrb[8].mxu1 %vm683_vm0, %v3628_v59 }
 0x4e2   : > { %1736 = vrot.lane.b32.xlu1 %v4540_v4, %s5677_s26  ;;  %3505 = vmatprep.mubr.msk.bf16.mxu1 %vm683_vm0, %v3629_v61 }
 0x4e4   : > { %1738 = vrot.lane.b32.xlu0 %v4546_v8, %s5677_s26 }
 0x4e6   : > { %1772 = vrot.lane.b32.xlu1 %v4540_v4, %s5676_s29 }
 0x4e8   : > { %1774 = vrot.lane.b32.xlu0 %v4546_v8, %s5676_s29 }
 0x4ea   : > { %1804 = vrot.lane.b32.xlu1 %v4540_v4, %s5673_s21 }
 0x4ec   : > { %1806 = vrot.lane.b32.xlu0 %v4546_v8, %s5673_s21 }
 0x4ee   : > { %1836 = vrot.lane.b32.xlu1 %v4540_v4, %s5674_s22 }
 0x4f0   : > { %1838 = vrot.lane.b32.xlu0 %v4546_v8, %s5674_s22 }
 0x4f2   : > { %1644 = vrot.lane.b32.xlu1 %v4542_v5, %s5669_s11 }
 0x4f4   : > { %1646 = vrot.lane.b32.xlu0 %v4548_v28, %s5669_s11 }
 0x4f6   : > { %1676 = vrot.lane.b32.xlu1 %v4542_v5, %s5667_s12 }
 0x4f8   : > { %1678 = vrot.lane.b32.xlu0 %v4548_v28, %s5667_s12 }
 0x4fa   : > { %1708 = vrot.lane.b32.xlu1 %v4542_v5, %s5665_s13 }
 0x4fc   : > { %1710 = vrot.lane.b32.xlu0 %v4548_v28, %s5665_s13 }
 0x4fe   : > { %1740 = vrot.lane.b32.xlu1 %v4542_v5, %s5677_s26 }
 0x500   : > { %1742 = vrot.lane.b32.xlu0 %v4548_v28, %s5677_s26 }
 0x502   : > { %1868 = vrot.lane.b32.xlu1 %v4540_v4, %s5675_s28 }
 0x504   : > { %1870 = vrot.lane.b32.xlu0 %v4546_v8, %s5675_s28 }
 0x506   : > { %1776 = vrot.lane.b32.xlu1 %v4542_v5, %s5676_s29 }
 0x508   : > { %1778 = vrot.lane.b32.xlu0 %v4548_v28, %s5676_s29 }
 0x50a   : > { %1808 = vrot.lane.b32.xlu1 %v4542_v5, %s5673_s21 }
 0x50c   : > { %1810 = vrot.lane.b32.xlu0 %v4548_v28, %s5673_s21 }
 0x50e   : > { %1840 = vrot.lane.b32.xlu1 %v4542_v5, %s5674_s22 }
 0x510   : > { %1842 = vrot.lane.b32.xlu0 %v4548_v28, %s5674_s22 }
 0x512   : > { %1872 = vrot.lane.b32.xlu1 %v4542_v5, %s5675_s28 }
 0x514   : > { %1874 = vrot.lane.b32.xlu0 %v4548_v28, %s5675_s28 }
 0x516   : > { %1926 = vperm.xlu1 %3617, %v3501_v2  }
 0x518   : > { %1931 = vperm.xlu0 %3616, %v3502_v3  }
 0x548   : > { %v1641_v23 = vpop.permute.xlu1 %1640 }
 0x54a   : > { %v1643_v14 = vpop.permute.xlu0 %1642 }
 0x54c   : > { %v1673_v15 = vpop.permute.xlu1 %1672 }
 0x54e   : > { %v1675_v34 = vpop.permute.xlu0 %1674 }
 0x550   : > { %v1705_v9 = vpop.permute.xlu1 %1704 }
 0x552   : > { %v1707_v36 = vpop.permute.xlu0 %1706 }
 0x554   : > { %v1737_v37 = vpop.permute.xlu1 %1736 }
 0x556   : > { %v4634_v16 = vpop.permute.xlu0 %1738 }
 0x558   : > { %v4636_v38 = vpop.permute.xlu1 %1772 }
 0x55a   : > { %v4638_v39 = vpop.permute.xlu0 %1774 }
 0x55c   : > { %v4640_v40 = vpop.permute.xlu1 %1804 }
 0x55e   : > { %v4642_v22 = vpop.permute.xlu0 %1806 }
 0x560   : > { %v4644_v27 = vpop.permute.xlu1 %1836 }
 0x562   : > { %v4649_v46 = vpop.permute.xlu0 %1838 }
 0x564   : > { %v1645_v10 = vpop.permute.xlu1 %1644 }
 0x565   : > { %v1648_v49 = vsel %vm375_vm1, %v1641_v23, %v1645_v10  ;;  %v1650_v17 = vsel %vm375_vm1, %v1645_v10, %v1641_v23 }
 0x566   : > { %v1647_v50 = vpop.permute.xlu0 %1646  ;;  %v1664_v41 = vmul.f32 %v1657_v47, %v1650_v17  ;;  %v1665_v18 = vmul.f32 %v1661_v29, %v1648_v49 }
 0x567   : > { %v1649_v51 = vsel %vm375_vm1, %v1643_v14, %v1647_v50  ;;  %v1651_v52 = vsel %vm375_vm1, %v1647_v50, %v1643_v14 }
 0x568   : > { %v1666_v60 = vmul.f32 %v1657_v47, %v1651_v52  ;;  %v1667_v53 = vmul.f32 %v1661_v29, %v1649_v51  ;;  %v1677_v57 = vpop.permute.xlu1 %1676 }
 0x569   : > { %v1680_v42 = vsel %vm408_vm2, %v1673_v15, %v1677_v57  ;;  %v1682_v62 = vsel %vm408_vm2, %v1677_v57, %v1673_v15  ;;  %v1753_v15 = vrot.slane %v3494_v20, %v3934_v12 }
 0x56a   : > { %v1668_v63 = vpack.c.bf16 %v1666_v60, %v1664_v41  ;;  %v1679_v0 = vpop.permute.xlu0 %1678  ;;  %v1669_v1 = vpack.c.bf16 %v1667_v53, %v1665_v18  ;;  %v1696_v7 = vmul.f32 %v1689_v54, %v1682_v62  ;;  %v1697_v21 = vmul.f32 %v1693_v56, %v1680_v42 }
 0x56b   : > { %v1681_v55 = vsel %vm408_vm2, %v1675_v34, %v1679_v0  ;;  %v1683_v25 = vsel %vm408_vm2, %v1679_v0, %v1675_v34  ;;  %v1757_v34 = vrot.slane %v3494_v20, %v3936_v13  ;;  %v3496_v0 = vld [vmem:[%s5645_s1 + $0xc] sm:$0x3] }
 0x56c   : > { %v1698_v30 = vmul.f32 %v1689_v54, %v1683_v25  ;;  %v1699_v31 = vmul.f32 %v1693_v56, %v1681_v55  ;;  %v1709_v26 = vpop.permute.xlu1 %1708  ;;  %1946 = vmatprep.subr.bf16.mxu1 %v1669_v1 }
 0x56d   : > { %v1712_v32 = vsel %vm442_vm3, %v1705_v9, %v1709_v26  ;;  %v1714_v59 = vsel %vm442_vm3, %v1709_v26, %v1705_v9  ;;  %1947 = vmatpush1.bf16.msra.mxu1 %v1668_v63  ;;  %v1769_v63 = vpack.c.bf16 %v4548_v28, %v4542_v5 }
 0x56e   : > { %v1700_v61 = vpack.c.bf16 %v1698_v30, %v1696_v7  ;;  %v1711_v2 = vpop.permute.xlu0 %1710  ;;  %v1701_v3 = vpack.c.bf16 %v1699_v31, %v1697_v21  ;;  %v1728_v33 = vmul.f32 %v1721_v58, %v1714_v59  ;;  %v1729_v47 = vmul.f32 %v1725_v19, %v1712_v32  ;;  %v3497_v59 = vld [vmem:[%s5645_s1 + $0xe] sm:$0x3] }
 0x56f   : > { %v1713_v23 = vsel %vm442_vm3, %v1707_v36, %v1711_v2  ;;  %v1715_v14 = vsel %vm442_vm3, %v1711_v2, %v1707_v36  ;;  %v1821_v21 = vrot.slane %v3496_v0, %v3934_v12  ;;  %v1825_v30 = vrot.slane %v3496_v0, %v3936_v13 }
 0x570   : > { %v1730_v29 = vmul.f32 %v1721_v58, %v1715_v14  ;;  %v1731_v10 = vmul.f32 %v1725_v19, %v1713_v23  ;;  %v1741_v48 = vpop.permute.xlu1 %1740  ;;  %1948 = vmatprep.subr.bf16.mxu1 %v1701_v3  ;;  %v1768_v58 = vpack.c.bf16 %v4546_v8, %v4540_v4 }
 0x571   : > { %v1744_v9 = vsel %vm476_vm4, %v1737_v37, %v1741_v48  ;;  %v1746_v49 = vsel %vm476_vm4, %v1741_v48, %v1737_v37  ;;  %1949 = vmatpush1.bf16.msra.mxu1 %v1700_v61  ;;  %v3495_v37 = vld [vmem:[%s5645_s1 + $0xa] sm:$0x3] }
 0x572   : > { %v1732_v17 = vpack.c.bf16 %v1730_v29, %v1728_v33  ;;  %v1743_v50 = vpop.permute.xlu0 %1742  ;;  %v1733_v36 = vpack.c.bf16 %v1731_v10, %v1729_v47  ;;  %v1760_v54 = vmul.f32 %v1753_v15, %v1746_v49  ;;  %v1761_v56 = vmul.f32 %v1757_v34, %v1744_v9  ;;  %v3498_v9 = vld [vmem:[%s5645_s1 + $0x10] sm:$0x3] }
 0x573   : > { %v1745_v51 = vsel %vm476_vm4, %v4634_v16, %v1743_v50  ;;  %v1747_v52 = vsel %vm476_vm4, %v1743_v50, %v4634_v16  ;;  %v1789_v42 = vrot.slane %v3495_v37, %v3934_v12  ;;  %v1793_v16 = vrot.slane %v3495_v37, %v3936_v13 }
 0x574   : > { %v1762_v41 = vmul.f32 %v1753_v15, %v1747_v52  ;;  %v1763_v18 = vmul.f32 %v1757_v34, %v1745_v51  ;;  %v4702_v60 = vpop.permute.xlu1 %1868  ;;  %1950 = vmatprep.subr.bf16.mxu1 %v1733_v36  ;;  %v1853_v34 = vrot.slane %v3497_v59, %v3934_v12  ;;  %v1857_v33 = vrot.slane %v3497_v59, %v3936_v13 }
 0x575   : > { %1951 = vmatpush1.bf16.msra.mxu1 %v1732_v17 }
 0x576   : > { %v1764_v53 = vpack.c.bf16 %v1762_v41, %v1760_v54  ;;  %v4707_v57 = vpop.permute.xlu0 %1870  ;;  %v1765_v24 = vpack.c.bf16 %v1763_v18, %v1761_v56  ;;  %v1885_v54 = vrot.slane %v3498_v9, %v3934_v12  ;;  %v1889_v56 = vrot.slane %v3498_v9, %v3936_v13 }
 0x578   : > { %v1777_v62 = vpop.permute.xlu1 %1776  ;;  %1952 = vmatprep.subr.bf16.mxu1 %v1765_v24 }
 0x579   : > { %v1780_v1 = vsel %vm514_vm5, %v4636_v38, %v1777_v62  ;;  %v1782_v55 = vsel %vm514_vm5, %v1777_v62, %v4636_v38  ;;  %1953 = vmatpush1.bf16.msra.mxu1 %v1764_v53 }
 0x57a   : > { %v1779_v25 = vpop.permute.xlu0 %1778  ;;  %1954 = vmatprep.subr.bf16.mxu1 %v1769_v63  ;;  %v1796_v31 = vmul.f32 %v1789_v42, %v1780_v1  ;;  %v1797_v38 = vmul.f32 %v1793_v16, %v1782_v55 }
 0x57b   : > { %v1781_v19 = vsel %vm514_vm5, %v4638_v39, %v1779_v25  ;;  %v1783_v7 = vsel %vm514_vm5, %v1779_v25, %v4638_v39 }
 0x57c   : > { %v1798_v26 = vmul.f32 %v1789_v42, %v1781_v19  ;;  %v1799_v20 = vmul.f32 %v1793_v16, %v1783_v7  ;;  %v1809_v32 = vpop.permute.xlu1 %1808  ;;  %v3631_v7 = vld [vmem:[%s5646_s2 + $0x30] ss:$8 sps:$4 sm:$0xff]  }
 0x57d   : > { %v1812_v61 = vsel %vm548_vm6, %v4640_v40, %v1809_v32  ;;  %v1814_v39 = vsel %vm548_vm6, %v1809_v32, %v4640_v40  ;;  %1955 = vmatpush1.bf16.msra.mxu1 %v1768_v58 }
 0x57e   : > { %v1800_v2 = vpack.c.bf16 %v1798_v26, %v1796_v31  ;;  %v1811_v3 = vpop.permute.xlu0 %1810  ;;  %v1801_v23 = vpack.c.bf16 %v1799_v20, %v1797_v38  ;;  %v1828_v47 = vmul.f32 %v1821_v21, %v1812_v61  ;;  %v1829_v29 = vmul.f32 %v1825_v30, %v1814_v39 }
 0x57f   : > { %v1813_v14 = vsel %vm548_vm6, %v4642_v22, %v1811_v3  ;;  %v1815_v15 = vsel %vm548_vm6, %v1811_v3, %v4642_v22 }
 0x580   : > { %v1830_v10 = vmul.f32 %v1821_v21, %v1813_v14  ;;  %v1831_v40 = vmul.f32 %v1825_v30, %v1815_v15  ;;  %v1841_v48 = vpop.permute.xlu1 %1840  ;;  %1956 = vmatprep.subr.bf16.mxu1 %v1801_v23 }
 0x581   : > { %v1844_v49 = vsel %vm582_vm7, %v4644_v27, %v1841_v48  ;;  %v1846_v22 = vsel %vm582_vm7, %v1841_v48, %v4644_v27  ;;  %1957 = vmatpush1.bf16.msra.mxu1 %v1800_v2 }
 0x582   : > { %v1832_v17 = vpack.c.bf16 %v1830_v10, %v1828_v47  ;;  %v1843_v50 = vpop.permute.xlu0 %1842  ;;  %v1833_v36 = vpack.c.bf16 %v1831_v40, %v1829_v29  ;;  %v1860_v41 = vmul.f32 %v1853_v34, %v1844_v49  ;;  %v1861_v18 = vmul.f32 %v1857_v33, %v1846_v22  ;;  %v3516_v49 = vld [vmem:[%s5647_s3 + $0x48] sm:$0xff] }
 0x583   : > { %v1845_v51 = vsel %vm582_vm7, %v4649_v46, %v1843_v50  ;;  %v1847_v52 = vsel %vm582_vm7, %v1843_v50, %v4649_v46 }
 0x584   : > { %v1862_v37 = vmul.f32 %v1853_v34, %v1845_v51  ;;  %v1863_v27 = vmul.f32 %v1857_v33, %v1847_v52  ;;  %v1873_v53 = vpop.permute.xlu1 %1872  ;;  %1958 = vmatprep.subr.bf16.mxu1 %v1833_v36 }
 0x585   : > { %v1876_v24 = vsel %vm616_vm8, %v4702_v60, %v1873_v53  ;;  %v1878_v42 = vsel %vm616_vm8, %v1873_v53, %v4702_v60  ;;  %1959 = vmatpush1.bf16.msra.mxu1 %v1832_v17 }
 0x586   : > { %v1864_v46 = vpack.c.bf16 %v1862_v37, %v1860_v41  ;;  %v1875_v16 = vpop.permute.xlu0 %1874  ;;  %v1865_v62 = vpack.c.bf16 %v1863_v27, %v1861_v18  ;;  %v1892_v1 = vmul.f32 %v1885_v54, %v1876_v24  ;;  %v1893_v55 = vmul.f32 %v1889_v56, %v1878_v42  ;;  %v2017_v24 = vld [vmem:[%s5645_s1] sm:$0x3] }
 0x587   : > { %v1877_v63 = vsel %vm616_vm8, %v4707_v57, %v1875_v16  ;;  %v1879_v0 = vsel %vm616_vm8, %v1875_v16, %v4707_v57  ;;  %v2026_v16 = vrot.slane %v2017_v24, %v3936_v13 }
 0x588   : > { %v1894_v25 = vmul.f32 %v1885_v54, %v1877_v63  ;;  %v1895_v58 = vmul.f32 %v1889_v56, %v1879_v0  ;;  %1960 = vmatprep.subr.bf16.mxu1 %v1865_v62  ;;  %v3506_v63 = vld [vmem:[%s5645_s1 + $0x2] sm:$0x3] }
 0x589   : > { %1961 = vmatpush1.bf16.msra.mxu1 %v1864_v46  ;;  %v2022_v46 = vrot.slane %v2017_v24, %v3934_v12 }
 0x58a   : > { %v1896_v19 = vpack.c.bf16 %v1894_v25, %v1892_v1  ;;  %v1897_v60 = vpack.c.bf16 %v1895_v58, %v1893_v55 }
 0x58c   : > { %1962 = vmatprep.subr.bf16.mxu1 %v1897_v60  ;;  %v2058_v60 = vrot.slane %v3506_v63, %v3936_v13 }
 0x58d   : > { %1963 = vmatpush1.bf16.msra.mxu1 %v1896_v19  ;;  %v2054_v19 = vrot.slane %v3506_v63, %v3934_v12 }
 0x590   : > { %1979 = vmatmul.mubr.bf16.vlgmr.msra.gmra.mrb[12].mxu1 %v3631_v7 }
 0x591   : > { %2428 = vmatprep.mubr.bf16.mxu1 %v3727_v6 }
 0x595   : > { %v1927_v38 = vpop.permute.xlu1 %1926 }
 0x597   : > { %v1932_v59 = vpop.permute.xlu0 %1931 }
 0x5b4   : > { %v4782_v21 = vpop.f32.mrb[8].mxu1 }
 0x5b5   : > { %v4784_v57 = vpop.f32.mrb[9].mxu1 }
 0x5b6   : > { %v4786_v30 = vpop.f32.mrb[10].mxu1 }
 0x5b7   : > { %v4788_v31 = vpop.f32.mrb[11].mxu1 }
 0x663   : > { %v1980_v26 = vpop.f32.mrb[12].mxu1 }
 0x664   : > { %v1981_v20 = vadd.f32 %v1980_v26, %v1927_v38  ;;  %v1982_v32 = vpop.f32.mrb[13].mxu1 }
 0x665   : > { %v1984_v61 = vpop.f32.mrb[14].mxu1 }
 0x666   : > { %vm1989_vm14 = vcmp.ge.f32.partialorder %v1981_v20, 0.0  ;;  %v1993_v39 = vmul.f32 0.05, %v1981_v20  ;;  %v1985_v2 = vadd.f32 %v1984_v61, %v1932_v59  ;;  %v1986_v3 = vpop.f32.mrb[15].mxu1 }
 0x668   : > { %v1997_v23 = vsel %vm1989_vm14, %v1981_v20, %v1993_v39  ;;  %vm1991_vm15 = vcmp.ge.f32.partialorder %v1985_v2, 0.0  ;;  %v1995_v14 = vmul.f32 0.05, %v1985_v2 }
 0x669   : > { %v4791_v15 = vsub.f32 %v4540_v4, %v1997_v23  ;;  %v1983_v4 = vadd.f32 %v1982_v32, %v1927_v38 }
 0x66a   : > { %v1999_v34 = vsel %vm1991_vm15, %v1985_v2, %v1995_v14 }
 0x66b   : > { %v4794_v33 = vsub.f32 %v4546_v8, %v1999_v34  ;;  %2005 = vrot.lane.b32.xlu1 %v4791_v15, %s5669_s11  ;;  %v1987_v8 = vadd.f32 %v1986_v3, %v1932_v59  ;;  %v1994_v47 = vmul.f32 0.05, %v1983_v4  ;;  %vm1990_vm9 = vcmp.ge.f32.partialorder %v1983_v4, 0.0  ;;  %v3507_v59 = vld [vmem:[%s5645_s1 + $0x4] sm:$0x3] }
 0x66d   : > { %2007 = vrot.lane.b32.xlu0 %v4794_v33, %s5669_s11  ;;  %v1996_v29 = vmul.f32 0.05, %v1987_v8  ;;  %vm1992_vm10 = vcmp.ge.f32.partialorder %v1987_v8, 0.0  ;;  %v1998_v10 = vsel %vm1990_vm9, %v1983_v4, %v1994_v47  ;;  %v2086_v4 = vrot.slane %v3507_v59, %v3934_v12 }
 0x66e   : > { %v4823_v48 = vsub.f32 %v4542_v5, %v1998_v10  ;;  %v3632_v5 = vld [vmem:[%s5646_s2 + $0x44] ss:$8 sps:$4 sm:$0xff]  }
 0x66f   : > { %2037 = vrot.lane.b32.xlu1 %v4791_v15, %s5667_s12  ;;  %v2000_v40 = vsel %vm1992_vm10, %v1987_v8, %v1996_v29  ;;  %3519 = vmatprep.mubr.msk.bf16.mxu0 %vm683_vm0, %v3632_v5  ;;  %v2090_v8 = vrot.slane %v3507_v59, %v3936_v13 }
 0x670   : > { %v4828_v9 = vsub.f32 %v4548_v28, %v2000_v40  ;;  %v3515_v28 = vld [vmem:[%s5647_s3 + $0x40] sm:$0xff] }
 0x671   : > { %2039 = vrot.lane.b32.xlu0 %v4794_v33, %s5667_s12 }
 0x673   : > { %2069 = vrot.lane.b32.xlu1 %v4791_v15, %s5678_s27 }
 0x675   : > { %2071 = vrot.lane.b32.xlu0 %v4794_v33, %s5678_s27 }
 0x677   : > { %2101 = vrot.lane.b32.xlu1 %v4791_v15, %s5677_s26 }
 0x679   : > { %2103 = vrot.lane.b32.xlu0 %v4794_v33, %s5677_s26 }
 0x67b   : > { %2137 = vrot.lane.b32.xlu1 %v4791_v15, %s5676_s29 }
 0x67d   : > { %2139 = vrot.lane.b32.xlu0 %v4794_v33, %s5676_s29 }
 0x67f   : > { %2169 = vrot.lane.b32.xlu1 %v4791_v15, %s5673_s21 }
 0x681   : > { %2171 = vrot.lane.b32.xlu0 %v4794_v33, %s5673_s21 }
 0x683   : > { %2201 = vrot.lane.b32.xlu1 %v4791_v15, %s5674_s22 }
 0x685   : > { %2203 = vrot.lane.b32.xlu0 %v4794_v33, %s5674_s22 }
 0x687   : > { %2009 = vrot.lane.b32.xlu1 %v4823_v48, %s5669_s11 }
 0x689   : > { %2011 = vrot.lane.b32.xlu0 %v4828_v9, %s5669_s11 }
 0x68b   : > { %2041 = vrot.lane.b32.xlu1 %v4823_v48, %s5667_s12 }
 0x68d   : > { %2043 = vrot.lane.b32.xlu0 %v4828_v9, %s5667_s12 }
 0x68f   : > { %2073 = vrot.lane.b32.xlu1 %v4823_v48, %s5678_s27 }
 0x691   : > { %2075 = vrot.lane.b32.xlu0 %v4828_v9, %s5678_s27 }
 0x693   : > { %2105 = vrot.lane.b32.xlu1 %v4823_v48, %s5677_s26 }
 0x695   : > { %2107 = vrot.lane.b32.xlu0 %v4828_v9, %s5677_s26 }
 0x697   : > { %2233 = vrot.lane.b32.xlu1 %v4791_v15, %s5675_s28 }
 0x699   : > { %2235 = vrot.lane.b32.xlu0 %v4794_v33, %s5675_s28 }
 0x69b   : > { %2141 = vrot.lane.b32.xlu1 %v4823_v48, %s5676_s29 }
 0x69d   : > { %2143 = vrot.lane.b32.xlu0 %v4828_v9, %s5676_s29 }
 0x69f   : > { %2173 = vrot.lane.b32.xlu1 %v4823_v48, %s5673_s21 }
 0x6a1   : > { %2175 = vrot.lane.b32.xlu0 %v4828_v9, %s5673_s21 }
 0x6a3   : > { %2205 = vrot.lane.b32.xlu1 %v4823_v48, %s5674_s22 }
 0x6a5   : > { %2207 = vrot.lane.b32.xlu0 %v4828_v9, %s5674_s22 }
 0x6a7   : > { %2237 = vrot.lane.b32.xlu1 %v4823_v48, %s5675_s28 }
 0x6a9   : > { %2239 = vrot.lane.b32.xlu0 %v4828_v9, %s5675_s28 }
 0x6ab   : > { %2291 = vperm.xlu1 %3617, %v3515_v28   ;;  %v3508_v28 = vld [vmem:[%s5645_s1 + $0x6] sm:$0x3] }
 0x6ad   : > { %2296 = vperm.xlu0 %3616, %v3516_v49  }
 0x6dd   : > { %v2006_v22 = vpop.permute.xlu1 %2005 }
 0x6df   : > { %v2008_v17 = vpop.permute.xlu0 %2007 }
 0x6e1   : > { %v2038_v50 = vpop.permute.xlu1 %2037 }
 0x6e3   : > { %v2040_v36 = vpop.permute.xlu0 %2039 }
 0x6e5   : > { %v2070_v51 = vpop.permute.xlu1 %2069 }
 0x6e7   : > { %v2072_v52 = vpop.permute.xlu0 %2071 }
 0x6e9   : > { %v2102_v54 = vpop.permute.xlu1 %2101 }
 0x6eb   : > { %v4876_v56 = vpop.permute.xlu0 %2103 }
 0x6ed   : > { %v4878_v41 = vpop.permute.xlu1 %2137 }
 0x6ef   : > { %v4880_v18 = vpop.permute.xlu0 %2139 }
 0x6f1   : > { %v4882_v37 = vpop.permute.xlu1 %2169 }
 0x6f3   : > { %v4884_v27 = vpop.permute.xlu0 %2171 }
 0x6f5   : > { %v4886_v53 = vpop.permute.xlu1 %2201 }
 0x6f7   : > { %v4891_v42 = vpop.permute.xlu0 %2203 }
 0x6f9   : > { %v2010_v62 = vpop.permute.xlu1 %2009 }
 0x6fa   : > { %v2013_v0 = vsel %vm375_vm1, %v2006_v22, %v2010_v62  ;;  %v2015_v1 = vsel %vm375_vm1, %v2010_v62, %v2006_v22  ;;  %v2122_v62 = vrot.slane %v3508_v28, %v3936_v13 }
 0x6fb   : > { %v2012_v55 = vpop.permute.xlu0 %2011  ;;  %v2029_v7 = vmul.f32 %v2022_v46, %v2015_v1  ;;  %v2030_v38 = vmul.f32 %v2026_v16, %v2013_v0 }
 0x6fc   : > { %v2014_v25 = vsel %vm375_vm1, %v2008_v17, %v2012_v55  ;;  %v2016_v58 = vsel %vm375_vm1, %v2012_v55, %v2008_v17 }
 0x6fd   : > { %v2031_v26 = vmul.f32 %v2022_v46, %v2016_v58  ;;  %v2032_v20 = vmul.f32 %v2026_v16, %v2014_v25  ;;  %v2042_v32 = vpop.permute.xlu1 %2041  ;;  %v2118_v16 = vrot.slane %v3508_v28, %v3934_v12 }
 0x6fe   : > { %v2045_v61 = vsel %vm408_vm2, %v2038_v50, %v2042_v32  ;;  %v2047_v39 = vsel %vm408_vm2, %v2042_v32, %v2038_v50 }
 0x6ff   : > { %v2033_v2 = vpack.c.bf16 %v2031_v26, %v2029_v7  ;;  %v2044_v3 = vpop.permute.xlu0 %2043  ;;  %v2034_v23 = vpack.c.bf16 %v2032_v20, %v2030_v38  ;;  %v2061_v47 = vmul.f32 %v2054_v19, %v2047_v39  ;;  %v2062_v29 = vmul.f32 %v2058_v60, %v2045_v61 }
 0x700   : > { %v2046_v14 = vsel %vm408_vm2, %v2040_v36, %v2044_v3  ;;  %v2048_v34 = vsel %vm408_vm2, %v2044_v3, %v2040_v36 }
 0x701   : > { %v2063_v10 = vmul.f32 %v2054_v19, %v2048_v34  ;;  %v2064_v40 = vmul.f32 %v2058_v60, %v2046_v14  ;;  %2311 = vmatprep.subr.bf16.mxu0 %v2034_v23  ;;  %v2074_v5 = vpop.permute.xlu1 %2073  ;;  %v2134_v34 = vpack.c.bf16 %v4828_v9, %v4823_v48 }
 0x702   : > { %v2077_v49 = vsel %vm442_vm3, %v2070_v51, %v2074_v5  ;;  %v2079_v22 = vsel %vm442_vm3, %v2074_v5, %v2070_v51  ;;  %2312 = vmatpush1.bf16.msra.mxu0 %v2033_v2 }
 0x703   : > { %v2065_v17 = vpack.c.bf16 %v2063_v10, %v2061_v47  ;;  %v2076_v50 = vpop.permute.xlu0 %2075  ;;  %v2066_v36 = vpack.c.bf16 %v2064_v40, %v2062_v29  ;;  %v2093_v63 = vmul.f32 %v2086_v4, %v2079_v22  ;;  %v2094_v0 = vmul.f32 %v2090_v8, %v2077_v49 }
 0x704   : > { %v2078_v24 = vsel %vm442_vm3, %v2072_v52, %v2076_v50  ;;  %v2080_v46 = vsel %vm442_vm3, %v2076_v50, %v2072_v52  ;;  %v2133_v10 = vpack.c.bf16 %v4794_v33, %v4791_v15 }
 0x705   : > { %v2095_v1 = vmul.f32 %v2086_v4, %v2080_v46  ;;  %v2096_v55 = vmul.f32 %v2090_v8, %v2078_v24  ;;  %2313 = vmatprep.subr.bf16.mxu0 %v2066_v36  ;;  %v2106_v51 = vpop.permute.xlu1 %2105  ;;  %v3510_v4 = vld [vmem:[%s5645_s1 + $0xc] sm:$0x3]  ;;  %v3511_v24 = vld [vmem:[%s5645_s1 + $0xe] sm:$0x3] }
 0x706   : > { %v2109_v25 = vsel %vm476_vm4, %v2102_v54, %v2106_v51  ;;  %v2111_v58 = vsel %vm476_vm4, %v2106_v51, %v2102_v54  ;;  %2314 = vmatpush1.bf16.msra.mxu0 %v2065_v17  ;;  %v3509_v54 = vld [vmem:[%s5645_s1 + $0xa] sm:$0x3]  ;;  %v2186_v28 = vrot.slane %v3510_v4, %v3934_v12  ;;  %v2190_v49 = vrot.slane %v3510_v4, %v3936_v13 }
 0x707   : > { %v2097_v19 = vpack.c.bf16 %v2095_v1, %v2093_v63  ;;  %v2108_v60 = vpop.permute.xlu0 %2107  ;;  %v2098_v52 = vpack.c.bf16 %v2096_v55, %v2094_v0  ;;  %v2125_v26 = vmul.f32 %v2118_v16, %v2111_v58  ;;  %v2126_v20 = vmul.f32 %v2122_v62, %v2109_v25 }
 0x708   : > { %v2110_v7 = vsel %vm476_vm4, %v4876_v56, %v2108_v60  ;;  %v2112_v38 = vsel %vm476_vm4, %v2108_v60, %v4876_v56  ;;  %v2154_v23 = vrot.slane %v3509_v54, %v3934_v12  ;;  %v2158_v56 = vrot.slane %v3509_v54, %v3936_v13 }
 0x709   : > { %v2127_v32 = vmul.f32 %v2118_v16, %v2112_v38  ;;  %v2128_v59 = vmul.f32 %v2122_v62, %v2110_v7  ;;  %2315 = vmatprep.subr.bf16.mxu0 %v2098_v52  ;;  %v4944_v61 = vpop.permute.xlu1 %2233  ;;  %v2218_v55 = vrot.slane %v3511_v24, %v3934_v12  ;;  %v2222_v51 = vrot.slane %v3511_v24, %v3936_v13  ;;  %v3512_v52 = vld [vmem:[%s5645_s1 + $0x10] sm:$0x3] }
 0x70a   : > { %2316 = vmatpush1.bf16.msra.mxu0 %v2097_v19  ;;  %v2250_v54 = vrot.slane %v3512_v52, %v3934_v12 }
 0x70b   : > { %v2129_v39 = vpack.c.bf16 %v2127_v32, %v2125_v26  ;;  %v4949_v2 = vpop.permute.xlu0 %2235  ;;  %v2130_v3 = vpack.c.bf16 %v2128_v59, %v2126_v20 }
 0x70d   : > { %2317 = vmatprep.subr.bf16.mxu0 %v2130_v3  ;;  %v2142_v14 = vpop.permute.xlu1 %2141 }
 0x70e   : > { %v2145_v8 = vsel %vm514_vm5, %v4878_v41, %v2142_v14  ;;  %v2147_v47 = vsel %vm514_vm5, %v2142_v14, %v4878_v41  ;;  %2318 = vmatpush1.bf16.msra.mxu0 %v2129_v39  ;;  %v2254_v39 = vrot.slane %v3512_v52, %v3936_v13 }
 0x70f   : > { %v2144_v29 = vpop.permute.xlu0 %2143  ;;  %2319 = vmatprep.subr.bf16.mxu0 %v2134_v34  ;;  %v2161_v22 = vmul.f32 %v2154_v23, %v2145_v8  ;;  %v2162_v41 = vmul.f32 %v2158_v56, %v2147_v47 }
 0x710   : > { %v2146_v40 = vsel %vm514_vm5, %v4880_v18, %v2144_v29  ;;  %v2148_v5 = vsel %vm514_vm5, %v2144_v29, %v4880_v18 }
 0x711   : > { %v2163_v17 = vmul.f32 %v2154_v23, %v2146_v40  ;;  %v2164_v50 = vmul.f32 %v2158_v56, %v2148_v5  ;;  %v2174_v36 = vpop.permute.xlu1 %2173 }
 0x712   : > { %v2177_v46 = vsel %vm548_vm6, %v4882_v37, %v2174_v36  ;;  %v2179_v18 = vsel %vm548_vm6, %v2174_v36, %v4882_v37  ;;  %2320 = vmatpush1.bf16.msra.mxu0 %v2133_v10 }
 0x713   : > { %v2165_v16 = vpack.c.bf16 %v2163_v17, %v2161_v22  ;;  %v2176_v62 = vpop.permute.xlu0 %2175  ;;  %v2166_v63 = vpack.c.bf16 %v2164_v50, %v2162_v41  ;;  %v2193_v25 = vmul.f32 %v2186_v28, %v2177_v46  ;;  %v2194_v58 = vmul.f32 %v2190_v49, %v2179_v18  ;;  %v3634_v41 = vld [vmem:[%s5646_s2 + $0x40] ss:$8 sps:$4 sm:$0xff]  }
 0x714   : > { %v2178_v0 = vsel %vm548_vm6, %v4884_v27, %v2176_v62  ;;  %v2180_v1 = vsel %vm548_vm6, %v2176_v62, %v4884_v27 }
 0x715   : > { %v2195_v19 = vmul.f32 %v2186_v28, %v2178_v0  ;;  %v2196_v37 = vmul.f32 %v2190_v49, %v2180_v1  ;;  %v2206_v60 = vpop.permute.xlu1 %2205  ;;  %2321 = vmatprep.subr.bf16.mxu0 %v2166_v63 }
 0x716   : > { %v2209_v7 = vsel %vm582_vm7, %v4886_v53, %v2206_v60  ;;  %v2211_v27 = vsel %vm582_vm7, %v2206_v60, %v4886_v53  ;;  %2322 = vmatpush1.bf16.msra.mxu0 %v2165_v16 }
 0x717   : > { %v2197_v38 = vpack.c.bf16 %v2195_v19, %v2193_v25  ;;  %v2208_v26 = vpop.permute.xlu0 %2207  ;;  %v2198_v20 = vpack.c.bf16 %v2196_v37, %v2194_v58  ;;  %v2225_v3 = vmul.f32 %v2218_v55, %v2209_v7  ;;  %v2226_v23 = vmul.f32 %v2222_v51, %v2211_v27 }
 0x718   : > { %v2210_v32 = vsel %vm582_vm7, %v4891_v42, %v2208_v26  ;;  %v2212_v59 = vsel %vm582_vm7, %v2208_v26, %v4891_v42 }
 0x719   : > { %v2227_v56 = vmul.f32 %v2218_v55, %v2210_v32  ;;  %v2228_v53 = vmul.f32 %v2222_v51, %v2212_v59  ;;  %v2238_v14 = vpop.permute.xlu1 %2237  ;;  %2323 = vmatprep.subr.bf16.mxu0 %v2198_v20 }
 0x71a   : > { %v2241_v34 = vsel %vm616_vm8, %v4944_v61, %v2238_v14  ;;  %v2243_v4 = vsel %vm616_vm8, %v2238_v14, %v4944_v61  ;;  %2324 = vmatpush1.bf16.msra.mxu0 %v2197_v38 }
 0x71b   : > { %v2229_v42 = vpack.c.bf16 %v2227_v56, %v2225_v3  ;;  %v2240_v8 = vpop.permute.xlu0 %2239  ;;  %v2230_v47 = vpack.c.bf16 %v2228_v53, %v2226_v23  ;;  %v2257_v40 = vmul.f32 %v2250_v54, %v2241_v34  ;;  %v2258_v5 = vmul.f32 %v2254_v39, %v2243_v4 }
 0x71c   : > { %v2242_v29 = vsel %vm616_vm8, %v4949_v2, %v2240_v8  ;;  %v2244_v10 = vsel %vm616_vm8, %v2240_v8, %v4949_v2  ;;  %v2467_v8 = vld [vmem:[%s5645_s1] sm:$0x3] }
 0x71d   : > { %v2259_v28 = vmul.f32 %v2250_v54, %v2242_v29  ;;  %v2260_v49 = vmul.f32 %v2254_v39, %v2244_v10  ;;  %2325 = vmatprep.subr.bf16.mxu0 %v2230_v47  ;;  %v2472_v29 = vrot.slane %v2467_v8, %v3934_v12  ;;  %v2476_v10 = vrot.slane %v2467_v8, %v3936_v13 }
 0x71e   : > { %2326 = vmatpush1.bf16.msra.mxu0 %v2229_v42 }
 0x71f   : > { %v2261_v22 = vpack.c.bf16 %v2259_v28, %v2257_v40  ;;  %v2262_v61 = vpack.c.bf16 %v2260_v49, %v2258_v5  ;;  %v3526_v5 = vld [vmem:[%s5645_s1 + $0x2] sm:$0x3] }
 0x721   : > { %2327 = vmatprep.subr.bf16.mxu0 %v2262_v61 }
 0x722   : > { %2328 = vmatpush1.bf16.msra.mxu0 %v2261_v22 }
 0x725   : > { %2344 = vmatmul.mubr.bf16.vlgmr.msra.gmra.mrb[8].mxu0 %v3634_v41 }
 0x72a   : > { %v2292_v17 = vpop.permute.xlu1 %2291 }
 0x72c   : > { %v2297_v2 = vpop.permute.xlu0 %2296 }
 0x7f8   : > { %v2345_v50 = vpop.f32.mrb[8].mxu0 }
 0x7f9   : > { %v2346_v36 = vadd.f32 %v2345_v50, %v2292_v17  ;;  %v2347_v24 = vpop.f32.mrb[9].mxu0  ;;  %v2508_v50 = vrot.slane %v3526_v5, %v3936_v13 }
 0x7fa   : > { %v2348_v46 = vadd.f32 %v2347_v24, %v2292_v17  ;;  %v2349_v18 = vpop.f32.mrb[10].mxu0  ;;  %v2504_v17 = vrot.slane %v3526_v5, %v3934_v12 }
 0x7fb   : > { %vm2354_vm11 = vcmp.ge.f32.partialorder %v2346_v36, 0.0  ;;  %v2358_v16 = vmul.f32 0.05, %v2346_v36  ;;  %v2350_v62 = vadd.f32 %v2349_v18, %v2297_v2  ;;  %v2351_v63 = vpop.f32.mrb[11].mxu0 }
 0x7fc   : > { %vm2355_vm12 = vcmp.ge.f32.partialorder %v2348_v46, 0.0  ;;  %v2359_v0 = vmul.f32 0.05, %v2348_v46  ;;  %v2352_v1 = vadd.f32 %v2351_v63, %v2297_v2 }
 0x7fd   : > { %v5023_v55 = vsel %vm2354_vm11, %v2346_v36, %v2358_v16  ;;  %vm2356_vm13 = vcmp.ge.f32.partialorder %v2350_v62, 0.0  ;;  %v2360_v51 = vmul.f32 0.05, %v2350_v62  ;;  %v3527_v16 = vld [vmem:[%s5645_s1 + $0x4] sm:$0x3] }
 0x7fe   : > { %v5025_v25 = vsel %vm2355_vm12, %v2348_v46, %v2359_v0  ;;  %vm2357_vm14 = vcmp.ge.f32.partialorder %v2352_v1, 0.0  ;;  %v2361_v58 = vmul.f32 0.05, %v2352_v1  ;;  %2455 = vrot.lane.b32.xlu1 %v5023_v55, %s5669_s11  ;;  %v2366_v27 = vsub.f32 %v4791_v15, %v5023_v55  ;;  %v3635_v15 = vld [vmem:[%s5648_s4 + $0x10] sm:$0xff]  }
 0x7ff   : > { %v5029_v19 = vsel %vm2356_vm13, %v2350_v62, %v2360_v51  ;;  %v2367_v52 = vsub.f32 %v4823_v48, %v5025_v25  ;;  %v3535_v48 = vld [vmem:[%s5647_s3 + $0x50] sm:$0xff] }
 0x800   : > { %v5031_v37 = vsel %vm2357_vm14, %v2352_v1, %v2361_v58  ;;  %2457 = vrot.lane.b32.xlu0 %v5029_v19, %s5669_s11  ;;  %v2368_v60 = vsub.f32 %v4794_v33, %v5029_v19  ;;  %v3636_v33 = vld [vmem:[%s5646_s2 + $0x54] ss:$8 sps:$4 sm:$0xff]  }
 0x801   : > { %v2369_v7 = vsub.f32 %v4828_v9, %v5031_v37  ;;  %v3536_v9 = vld [vmem:[%s5647_s3 + $0x58] sm:$0xff] }
 0x802   : > { %2487 = vrot.lane.b32.xlu1 %v5023_v55, %s5679_s19  ;;  %v2373_v26 = vpack.c.bf16 %v2368_v60, %v2366_v27 }
 0x803   : > { %v2374_v38 = vpack.c.bf16 %v2369_v7, %v2367_v52  ;;  %v2536_v52 = vrot.slane %v3527_v16, %v3934_v12  ;;  %v2540_v7 = vrot.slane %v3527_v16, %v3936_v13 }
 0x804   : > { %2489 = vrot.lane.b32.xlu0 %v5029_v19, %s5679_s19 }
 0x805   : > { %2396 = vmatprep.subr.bf16.mxu1 %v2374_v38 }
 0x806   : > { %2519 = vrot.lane.b32.xlu1 %v5023_v55, %s5678_s27  ;;  %2397 = vmatpush1.bf16.msra.mxu1 %v2373_v26 }
 0x808   : > { %2521 = vrot.lane.b32.xlu0 %v5029_v19, %s5678_s27 }
 0x809   : > { %3525 = vmatmul.mubr.msk.bf16.vlgmr.msra.gmra.mrb[16].mxu1 %vm683_vm0, %v3635_v15 }
 0x80a   : > { %2551 = vrot.lane.b32.xlu1 %v5023_v55, %s5677_s26  ;;  %3539 = vmatprep.mubr.msk.bf16.mxu1 %vm683_vm0, %v3636_v33 }
 0x80c   : > { %2553 = vrot.lane.b32.xlu0 %v5029_v19, %s5677_s26 }
 0x80e   : > { %2587 = vrot.lane.b32.xlu1 %v5023_v55, %s5676_s29 }
 0x810   : > { %2589 = vrot.lane.b32.xlu0 %v5029_v19, %s5676_s29 }
 0x812   : > { %2619 = vrot.lane.b32.xlu1 %v5023_v55, %s5673_s21 }
 0x814   : > { %2621 = vrot.lane.b32.xlu0 %v5029_v19, %s5673_s21 }
 0x816   : > { %2651 = vrot.lane.b32.xlu1 %v5023_v55, %s5674_s22 }
 0x818   : > { %2653 = vrot.lane.b32.xlu0 %v5029_v19, %s5674_s22 }
 0x81a   : > { %2459 = vrot.lane.b32.xlu1 %v5025_v25, %s5669_s11 }
 0x81c   : > { %2461 = vrot.lane.b32.xlu0 %v5031_v37, %s5669_s11 }
 0x81e   : > { %2491 = vrot.lane.b32.xlu1 %v5025_v25, %s5679_s19 }
 0x820   : > { %2493 = vrot.lane.b32.xlu0 %v5031_v37, %s5679_s19 }
 0x822   : > { %2523 = vrot.lane.b32.xlu1 %v5025_v25, %s5678_s27 }
 0x824   : > { %2525 = vrot.lane.b32.xlu0 %v5031_v37, %s5678_s27 }
 0x826   : > { %2555 = vrot.lane.b32.xlu1 %v5025_v25, %s5677_s26 }
 0x828   : > { %2557 = vrot.lane.b32.xlu0 %v5031_v37, %s5677_s26 }
 0x82a   : > { %2683 = vrot.lane.b32.xlu1 %v5023_v55, %s5675_s28 }
 0x82c   : > { %2685 = vrot.lane.b32.xlu0 %v5029_v19, %s5675_s28 }
 0x82e   : > { %2591 = vrot.lane.b32.xlu1 %v5025_v25, %s5676_s29 }
 0x830   : > { %2593 = vrot.lane.b32.xlu0 %v5031_v37, %s5676_s29 }
 0x832   : > { %2623 = vrot.lane.b32.xlu1 %v5025_v25, %s5673_s21 }
 0x834   : > { %2625 = vrot.lane.b32.xlu0 %v5031_v37, %s5673_s21 }
 0x836   : > { %2655 = vrot.lane.b32.xlu1 %v5025_v25, %s5674_s22 }
 0x838   : > { %2657 = vrot.lane.b32.xlu0 %v5031_v37, %s5674_s22 }
 0x83a   : > { %2687 = vrot.lane.b32.xlu1 %v5025_v25, %s5675_s28 }
 0x83c   : > { %2689 = vrot.lane.b32.xlu0 %v5031_v37, %s5675_s28 }
 0x83e   : > { %2741 = vperm.xlu1 %3617, %v3535_v48   ;;  %v3528_v48 = vld [vmem:[%s5645_s1 + $0x6] sm:$0x3] }
 0x840   : > { %2746 = vperm.xlu0 %3616, %v3536_v9  }
 0x870   : > { %v2456_v20 = vpop.permute.xlu1 %2455 }
 0x872   : > { %v2458_v32 = vpop.permute.xlu0 %2457 }
 0x874   : > { %v2488_v59 = vpop.permute.xlu1 %2487 }
 0x876   : > { %v2490_v54 = vpop.permute.xlu0 %2489 }
 0x878   : > { %v2520_v39 = vpop.permute.xlu1 %2519 }
 0x87a   : > { %v2522_v3 = vpop.permute.xlu0 %2521 }
 0x87c   : > { %v2552_v23 = vpop.permute.xlu1 %2551 }
 0x87e   : > { %v5117_v56 = vpop.permute.xlu0 %2553 }
 0x880   : > { %v5119_v53 = vpop.permute.xlu1 %2587 }
 0x882   : > { %v5121_v14 = vpop.permute.xlu0 %2589 }
 0x884   : > { %v5123_v34 = vpop.permute.xlu1 %2619 }
 0x886   : > { %v5125_v4 = vpop.permute.xlu0 %2621 }
 0x888   : > { %v5127_v42 = vpop.permute.xlu1 %2651 }
 0x88a   : > { %v5132_v47 = vpop.permute.xlu0 %2653 }
 0x88c   : > { %v2460_v40 = vpop.permute.xlu1 %2459 }
 0x88d   : > { %v2463_v28 = vsel %vm375_vm1, %v2456_v20, %v2460_v40  ;;  %v2465_v49 = vsel %vm375_vm1, %v2460_v40, %v2456_v20  ;;  %v2572_v40 = vrot.slane %v3528_v48, %v3936_v13 }
 0x88e   : > { %v2462_v22 = vpop.permute.xlu0 %2461  ;;  %v2479_v36 = vmul.f32 %v2472_v29, %v2465_v49  ;;  %v2480_v24 = vmul.f32 %v2476_v10, %v2463_v28 }
 0x88f   : > { %v2464_v61 = vsel %vm375_vm1, %v2458_v32, %v2462_v22  ;;  %v2466_v41 = vsel %vm375_vm1, %v2462_v22, %v2458_v32 }
 0x890   : > { %v2481_v2 = vmul.f32 %v2472_v29, %v2466_v41  ;;  %v2482_v46 = vmul.f32 %v2476_v10, %v2464_v61  ;;  %v2492_v18 = vpop.permute.xlu1 %2491  ;;  %v2568_v10 = vrot.slane %v3528_v48, %v3934_v12 }
 0x891   : > { %v2495_v62 = vsel %vm408_vm2, %v2488_v59, %v2492_v18  ;;  %v2497_v63 = vsel %vm408_vm2, %v2492_v18, %v2488_v59 }
 0x892   : > { %v2483_v0 = vpack.c.bf16 %v2481_v2, %v2479_v36  ;;  %v2494_v1 = vpop.permute.xlu0 %2493  ;;  %v2484_v51 = vpack.c.bf16 %v2482_v46, %v2480_v24  ;;  %v2511_v27 = vmul.f32 %v2504_v17, %v2497_v63  ;;  %v2512_v38 = vmul.f32 %v2508_v50, %v2495_v62 }
 0x893   : > { %v2496_v58 = vsel %vm408_vm2, %v2490_v54, %v2494_v1  ;;  %v2498_v60 = vsel %vm408_vm2, %v2494_v1, %v2490_v54 }
 0x894   : > { %v2513_v26 = vmul.f32 %v2504_v17, %v2498_v60  ;;  %v2514_v15 = vmul.f32 %v2508_v50, %v2496_v58  ;;  %v2524_v33 = vpop.permute.xlu1 %2523  ;;  %2761 = vmatprep.subr.bf16.mxu1 %v2484_v51  ;;  %v2584_v60 = vpack.c.bf16 %v5031_v37, %v5025_v25 }
 0x895   : > { %v2527_v9 = vsel %vm442_vm3, %v2520_v39, %v2524_v33  ;;  %v2529_v20 = vsel %vm442_vm3, %v2524_v33, %v2520_v39  ;;  %2762 = vmatpush1.bf16.msra.mxu1 %v2483_v0 }
 0x896   : > { %v2515_v32 = vpack.c.bf16 %v2513_v26, %v2511_v27  ;;  %v2526_v59 = vpop.permute.xlu0 %2525  ;;  %v2516_v54 = vpack.c.bf16 %v2514_v15, %v2512_v38  ;;  %v2543_v5 = vmul.f32 %v2536_v52, %v2529_v20  ;;  %v2544_v28 = vmul.f32 %v2540_v7, %v2527_v9 }
 0x897   : > { %v2528_v8 = vsel %vm442_vm3, %v2522_v3, %v2526_v59  ;;  %v2530_v29 = vsel %vm442_vm3, %v2526_v59, %v2522_v3  ;;  %v2583_v26 = vpack.c.bf16 %v5029_v19, %v5023_v55 }
 0x898   : > { %v2545_v49 = vmul.f32 %v2536_v52, %v2530_v29  ;;  %v2546_v22 = vmul.f32 %v2540_v7, %v2528_v8  ;;  %v2556_v61 = vpop.permute.xlu1 %2555  ;;  %2763 = vmatprep.subr.bf16.mxu1 %v2516_v54  ;;  %v3530_v52 = vld [vmem:[%s5645_s1 + $0xc] sm:$0x3]  ;;  %v3531_v8 = vld [vmem:[%s5645_s1 + $0xe] sm:$0x3] }
 0x899   : > { %v2559_v39 = vsel %vm476_vm4, %v2552_v23, %v2556_v61  ;;  %v2561_v41 = vsel %vm476_vm4, %v2556_v61, %v2552_v23  ;;  %2764 = vmatpush1.bf16.msra.mxu1 %v2515_v32  ;;  %v3529_v23 = vld [vmem:[%s5645_s1 + $0xa] sm:$0x3]  ;;  %v2636_v48 = vrot.slane %v3530_v52, %v3934_v12  ;;  %v2640_v9 = vrot.slane %v3530_v52, %v3936_v13 }
 0x89a   : > { %v2547_v17 = vpack.c.bf16 %v2545_v49, %v2543_v5  ;;  %v2558_v50 = vpop.permute.xlu0 %2557  ;;  %v2548_v3 = vpack.c.bf16 %v2546_v22, %v2544_v28  ;;  %v2575_v2 = vmul.f32 %v2568_v10, %v2561_v41  ;;  %v2576_v46 = vmul.f32 %v2572_v40, %v2559_v39 }
 0x89b   : > { %v2560_v36 = vsel %vm476_vm4, %v5117_v56, %v2558_v50  ;;  %v2562_v24 = vsel %vm476_vm4, %v2558_v50, %v5117_v56  ;;  %v2604_v51 = vrot.slane %v3529_v23, %v3934_v12  ;;  %v2608_v56 = vrot.slane %v3529_v23, %v3936_v13 }
 0x89c   : > { %v2577_v18 = vmul.f32 %v2568_v10, %v2562_v24  ;;  %v2578_v16 = vmul.f32 %v2572_v40, %v2560_v36  ;;  %v5185_v62 = vpop.permute.xlu1 %2683  ;;  %2765 = vmatprep.subr.bf16.mxu1 %v2548_v3  ;;  %v2668_v22 = vrot.slane %v3531_v8, %v3934_v12  ;;  %v2672_v61 = vrot.slane %v3531_v8, %v3936_v13  ;;  %v3532_v3 = vld [vmem:[%s5645_s1 + $0x10] sm:$0x3] }
 0x89d   : > { %2766 = vmatpush1.bf16.msra.mxu1 %v2547_v17  ;;  %v2700_v23 = vrot.slane %v3532_v3, %v3934_v12 }
 0x89e   : > { %v2579_v63 = vpack.c.bf16 %v2577_v18, %v2575_v2  ;;  %v5190_v0 = vpop.permute.xlu0 %2685  ;;  %v2580_v1 = vpack.c.bf16 %v2578_v16, %v2576_v46 }
 0x8a0   : > { %v2592_v58 = vpop.permute.xlu1 %2591  ;;  %2767 = vmatprep.subr.bf16.mxu1 %v2580_v1 }
 0x8a1   : > { %v2595_v7 = vsel %vm514_vm5, %v5119_v53, %v2592_v58  ;;  %v2597_v27 = vsel %vm514_vm5, %v2592_v58, %v5119_v53  ;;  %2768 = vmatpush1.bf16.msra.mxu1 %v2579_v63  ;;  %v2704_v63 = vrot.slane %v3532_v3, %v3936_v13 }
 0x8a2   : > { %v2594_v38 = vpop.permute.xlu0 %2593  ;;  %2769 = vmatprep.subr.bf16.mxu1 %v2584_v60  ;;  %v2611_v20 = vmul.f32 %v2604_v51, %v2595_v7  ;;  %v2612_v53 = vmul.f32 %v2608_v56, %v2597_v27 }
 0x8a3   : > { %v2596_v15 = vsel %vm514_vm5, %v5121_v14, %v2594_v38  ;;  %v2598_v33 = vsel %vm514_vm5, %v2594_v38, %v5121_v14 }
 0x8a4   : > { %v2613_v32 = vmul.f32 %v2604_v51, %v2596_v15  ;;  %v2614_v59 = vmul.f32 %v2608_v56, %v2598_v33  ;;  %v2624_v54 = vpop.permute.xlu1 %2623 }
 0x8a5   : > { %v2627_v29 = vsel %vm548_vm6, %v5123_v34, %v2624_v54  ;;  %v2629_v14 = vsel %vm548_vm6, %v2624_v54, %v5123_v34  ;;  %2770 = vmatpush1.bf16.msra.mxu1 %v2583_v26 }
 0x8a6   : > { %v2615_v10 = vpack.c.bf16 %v2613_v32, %v2611_v20  ;;  %v2626_v40 = vpop.permute.xlu0 %2625  ;;  %v2616_v5 = vpack.c.bf16 %v2614_v59, %v2612_v53  ;;  %v2643_v39 = vmul.f32 %v2636_v48, %v2627_v29  ;;  %v2644_v41 = vmul.f32 %v2640_v9, %v2629_v14  ;;  %v3638_v53 = vld [vmem:[%s5646_s2 + $0x50] ss:$8 sps:$4 sm:$0xff]  }
 0x8a7   : > { %v2628_v28 = vsel %vm548_vm6, %v5125_v4, %v2626_v40  ;;  %v2630_v49 = vsel %vm548_vm6, %v2626_v40, %v5125_v4 }
 0x8a8   : > { %v2645_v17 = vmul.f32 %v2636_v48, %v2628_v28  ;;  %v2646_v34 = vmul.f32 %v2640_v9, %v2630_v49  ;;  %v2656_v50 = vpop.permute.xlu1 %2655  ;;  %2771 = vmatprep.subr.bf16.mxu1 %v2616_v5 }
 0x8a9   : > { %v2659_v36 = vsel %vm582_vm7, %v5127_v42, %v2656_v50  ;;  %v2661_v4 = vsel %vm582_vm7, %v2656_v50, %v5127_v42  ;;  %2772 = vmatpush1.bf16.msra.mxu1 %v2615_v10 }
 0x8aa   : > { %v2647_v24 = vpack.c.bf16 %v2645_v17, %v2643_v39  ;;  %v2658_v2 = vpop.permute.xlu0 %2657  ;;  %v2648_v46 = vpack.c.bf16 %v2646_v34, %v2644_v41  ;;  %v2675_v1 = vmul.f32 %v2668_v22, %v2659_v36  ;;  %v2676_v51 = vmul.f32 %v2672_v61, %v2661_v4 }
 0x8ab   : > { %v2660_v18 = vsel %vm582_vm7, %v5132_v47, %v2658_v2  ;;  %v2662_v16 = vsel %vm582_vm7, %v2658_v2, %v5132_v47 }
 0x8ac   : > { %v2677_v56 = vmul.f32 %v2668_v22, %v2660_v18  ;;  %v2678_v42 = vmul.f32 %v2672_v61, %v2662_v16  ;;  %v2688_v58 = vpop.permute.xlu1 %2687  ;;  %2773 = vmatprep.subr.bf16.mxu1 %v2648_v46  ;;  %v751_v18 = vld [vmem:[%s5649_s5 + $0x8] sm:$0xff]  ;;  %v3488_v16 = vld [vmem:[%s5649_s5 + $0x10] sm:$0xff] }
 0x8ad   : > { %v2691_v60 = vsel %vm616_vm8, %v5185_v62, %v2688_v58  ;;  %v2693_v52 = vsel %vm616_vm8, %v2688_v58, %v5185_v62  ;;  %2774 = vmatpush1.bf16.msra.mxu1 %v2647_v24  ;;  %v3557_v58 = vld [vmem:[%s5649_s5 + $0x38] sm:$0xff] }
 0x8ae   : > { %v2679_v47 = vpack.c.bf16 %v2677_v56, %v2675_v1  ;;  %v2690_v7 = vpop.permute.xlu0 %2689  ;;  %v2680_v27 = vpack.c.bf16 %v2678_v42, %v2676_v51  ;;  %v2707_v15 = vmul.f32 %v2700_v23, %v2691_v60  ;;  %v2708_v33 = vmul.f32 %v2704_v63, %v2693_v52  ;;  %v3523_v1 = vld [vmem:[%s5649_s5 + $0x28] sm:$0xff]  ;;  %v3549_v51 = vld [vmem:[%s5647_s3 + $0x60] sm:$0xff]  ;;  %v3556_v42 = vld [vmem:[%s5649_s5 + $0x30] sm:$0xff] }
 0x8af   : > { %v2692_v38 = vsel %vm616_vm8, %v5190_v0, %v2690_v7  ;;  %v2694_v26 = vsel %vm616_vm8, %v2690_v7, %v5190_v0  ;;  %v3550_v56 = vld [vmem:[%s5647_s3 + $0x68] sm:$0xff] }
 0x8b0   : > { %v2709_v48 = vmul.f32 %v2700_v23, %v2692_v38  ;;  %v2710_v9 = vmul.f32 %v2704_v63, %v2694_v26  ;;  %2775 = vmatprep.subr.bf16.mxu1 %v2680_v27  ;;  %v3489_v23 = vld [vmem:[%s5649_s5 + $0x18] sm:$0xff]  ;;  %v3522_v63 = vld [vmem:[%s5649_s5 + $0x20] sm:$0xff] }
 0x8b1   : > { %2776 = vmatpush1.bf16.msra.mxu1 %v2679_v47 }
 0x8b2   : > { %v2711_v20 = vpack.c.bf16 %v2709_v48, %v2707_v15  ;;  %v2712_v62 = vpack.c.bf16 %v2710_v9, %v2708_v33 }
 0x8b4   : > { %2777 = vmatprep.subr.bf16.mxu1 %v2712_v62 }
 0x8b5   : > { %2778 = vmatpush1.bf16.msra.mxu1 %v2711_v20 }
 0x8b8   : > { %2794 = vmatmul.mubr.bf16.vlgmr.msra.gmra.mrb[20].mxu1 %v3638_v53  ;;  %v2832_v53 = vld [vmem:[%s5645_s1] sm:$0x3] }
 0x8b9   : > { %3243 = vmatprep.mubr.bf16.mxu1 %v3727_v6 }
 0x8bd   : > { %v2742_v8 = vpop.permute.xlu1 %2741 }
 0x8bf   : > { %v2747_v40 = vpop.permute.xlu0 %2746 }
 0x8dc   : > { %v5265_v32 = vpop.f32.mrb[16].mxu1 }
 0x8dd   : > { %v5267_v0 = vpop.f32.mrb[17].mxu1 }
 0x8de   : > { %v5269_v59 = vpop.f32.mrb[18].mxu1 }
 0x8df   : > { %v5271_v54 = vpop.f32.mrb[19].mxu1 }
 0x98b   : > { %v2795_v29 = vpop.f32.mrb[20].mxu1 }
 0x98c   : > { %v2796_v14 = vadd.f32 %v2795_v29, %v2742_v8  ;;  %v2797_v10 = vpop.f32.mrb[21].mxu1  ;;  %v2837_v29 = vrot.slane %v2832_v53, %v3934_v12 }
 0x98d   : > { %v2798_v5 = vadd.f32 %v2797_v10, %v2742_v8  ;;  %v2799_v28 = vpop.f32.mrb[22].mxu1 }
 0x98e   : > { %vm2804_vm15 = vcmp.ge.f32.partialorder %v2796_v14, 0.0  ;;  %v2808_v49 = vmul.f32 0.05, %v2796_v14  ;;  %v2800_v22 = vadd.f32 %v2799_v28, %v2747_v40  ;;  %v2801_v61 = vpop.f32.mrb[23].mxu1 }
 0x98f   : > { %vm2805_vm9 = vcmp.ge.f32.partialorder %v2798_v5, 0.0  ;;  %v2809_v6 = vmul.f32 0.05, %v2798_v5  ;;  %v2802_v39 = vadd.f32 %v2801_v61, %v2747_v40  ;;  %v3540_v40 = vld [vmem:[%s5645_s1 + $0x2] sm:$0x3] }
 0x990   : > { %v2812_v41 = vsel %vm2804_vm15, %v2796_v14, %v2808_v49  ;;  %vm2806_vm10 = vcmp.ge.f32.partialorder %v2800_v22, 0.0  ;;  %v2810_v17 = vmul.f32 0.05, %v2800_v22  ;;  %v2841_v14 = vrot.slane %v2832_v53, %v3936_v13 }
 0x991   : > { %v5274_v34 = vsub.f32 %v5023_v55, %v2812_v41  ;;  %v2813_v50 = vsel %vm2805_vm9, %v2798_v5, %v2809_v6  ;;  %vm2807_vm11 = vcmp.ge.f32.partialorder %v2802_v39, 0.0  ;;  %v2811_v3 = vmul.f32 0.05, %v2802_v39 }
 0x992   : > { %v2814_v36 = vsel %vm2806_vm10, %v2800_v22, %v2810_v17  ;;  %v5282_v2 = vsub.f32 %v5025_v25, %v2813_v50  ;;  %v3639_v25 = vld [vmem:[%s5646_s2 + $0x64] ss:$8 sps:$4 sm:$0xff]   ;;  %v2869_v6 = vrot.slane %v3540_v40, %v3934_v12 }
 0x993   : > { %v5277_v4 = vsub.f32 %v5029_v19, %v2814_v36  ;;  %v2815_v24 = vsel %vm2807_vm11, %v2802_v39, %v2811_v3  ;;  %2820 = vrot.lane.b32.xlu1 %v5274_v34, %s5680_s14  ;;  %3553 = vmatprep.mubr.msk.bf16.mxu0 %vm683_vm0, %v3639_v25  ;;  %v2873_v39 = vrot.slane %v3540_v40, %v3936_v13 }
 0x994   : > { %v5285_v46 = vsub.f32 %v5031_v37, %v2815_v24  ;;  %v750_v37 = vld [vmem:[%s5649_s5] sm:$0xff] }
 0x995   : > { %2822 = vrot.lane.b32.xlu0 %v5277_v4, %s5680_s14  ;;  %v2948_v55 = vpack.c.bf16 %v5277_v4, %v5274_v34  ;;  %v3541_v24 = vld [vmem:[%s5645_s1 + $0x4] sm:$0x3] }
 0x996   : > { %v2949_v19 = vpack.c.bf16 %v5285_v46, %v5282_v2 }
 0x997   : > { %2852 = vrot.lane.b32.xlu1 %v5274_v34, %s5679_s19 }
 0x999   : > { %2854 = vrot.lane.b32.xlu0 %v5277_v4, %s5679_s19 }
 0x99b   : > { %2884 = vrot.lane.b32.xlu1 %v5274_v34, %s5678_s27 }
 0x99d   : > { %2886 = vrot.lane.b32.xlu0 %v5277_v4, %s5678_s27 }
 0x99f   : > { %2916 = vrot.lane.b32.xlu1 %v5274_v34, %s5677_s26 }
 0x9a1   : > { %2918 = vrot.lane.b32.xlu0 %v5277_v4, %s5677_s26 }
 0x9a3   : > { %2952 = vrot.lane.b32.xlu1 %v5274_v34, %s5676_s29 }
 0x9a5   : > { %2954 = vrot.lane.b32.xlu0 %v5277_v4, %s5676_s29 }
 0x9a7   : > { %2984 = vrot.lane.b32.xlu1 %v5274_v34, %s5673_s21 }
 0x9a9   : > { %2986 = vrot.lane.b32.xlu0 %v5277_v4, %s5673_s21 }
 0x9ab   : > { %3016 = vrot.lane.b32.xlu1 %v5274_v34, %s5674_s22 }
 0x9ad   : > { %3018 = vrot.lane.b32.xlu0 %v5277_v4, %s5674_s22 }
 0x9af   : > { %2824 = vrot.lane.b32.xlu1 %v5282_v2, %s5680_s14 }
 0x9b1   : > { %2826 = vrot.lane.b32.xlu0 %v5285_v46, %s5680_s14 }
 0x9b3   : > { %2856 = vrot.lane.b32.xlu1 %v5282_v2, %s5679_s19 }
 0x9b5   : > { %2858 = vrot.lane.b32.xlu0 %v5285_v46, %s5679_s19 }
 0x9b7   : > { %2888 = vrot.lane.b32.xlu1 %v5282_v2, %s5678_s27 }
 0x9b9   : > { %2890 = vrot.lane.b32.xlu0 %v5285_v46, %s5678_s27 }
 0x9bb   : > { %2920 = vrot.lane.b32.xlu1 %v5282_v2, %s5677_s26 }
 0x9bd   : > { %2922 = vrot.lane.b32.xlu0 %v5285_v46, %s5677_s26 }
 0x9bf   : > { %3048 = vrot.lane.b32.xlu1 %v5274_v34, %s5675_s28 }
 0x9c1   : > { %3050 = vrot.lane.b32.xlu0 %v5277_v4, %s5675_s28 }
 0x9c3   : > { %2956 = vrot.lane.b32.xlu1 %v5282_v2, %s5676_s29 }
 0x9c5   : > { %2958 = vrot.lane.b32.xlu0 %v5285_v46, %s5676_s29 }
 0x9c7   : > { %2988 = vrot.lane.b32.xlu1 %v5282_v2, %s5673_s21 }
 0x9c9   : > { %2990 = vrot.lane.b32.xlu0 %v5285_v46, %s5673_s21  ;;  %s352_s21 = sand.u32 1, %s3709_s16  }
 0x9ca   : > { %s3443_s11 = sshll.u32 %s352_s21, 5 }
 0x9cb   : > { %3020 = vrot.lane.b32.xlu1 %v5282_v2, %s5674_s22  ;;  %s354_s12 = scalar_lea.vmem [#allocation4], %s3443_s11 }
 0x9cc   : > { %s3377_s14 = sshll.u32 %s354_s12, 4  ;;  %s5595_s14 = int_to_ptr.vmem [resolvable:$true] %s3377_s14 }
 0x9cd   : > { %3022 = vrot.lane.b32.xlu0 %v5285_v46, %s5674_s22  ;;  %s3566_s22 = sshll.u32 %s3809_s7, 9  ;;  %s5602_s7 = scalar_lea.sflag [#allocation5], %s352_s21 }
 0x9ce   : > { %s5600_s26 = scalar_lea.hbm %s5654_s10, %s3566_s22  ;;  %s3655_s29 = scalar_lea.vmem %s5595_s14, 512 }
 0x9cf   : > { %3052 = vrot.lane.b32.xlu1 %v5282_v2, %s5675_s28  ;;  %v3545_v2 = vld [vmem:[%s5645_s1 + $0xe] sm:$0x3]  ;;  %p3656_p11 = scmp.ne.s32.totalorder %s5595_s14, %s3655_s29 }
 0x9d1   : > { %3054 = vrot.lane.b32.xlu0 %v5285_v46, %s5675_s28  ;;  %p3657_p12 = pnand %p3656_p11, %p3826_p5  ;;  %s3728_s28 = smov [#allocation4]  }
 0x9d2   : > { %s3659_s13 = sshll.u32 %s3728_s28, 4  ;;  %s3660_s13 = int_to_ptr.vmem [resolvable:$false] %s3659_s13 }
 0x9d3   : > { %754 = vperm.xlu1 %3617, %v750_v37   ;;  %p3658_p13 = pneg %p3657_p12  ;;  %s3661_s11 = scalar_lea.vmem %s3660_s13, 1024 }
 0x9d4   : > { %p3662_p0 = scmp.lt.s32.totalorder %s5595_s14, %s3660_s13  ;;  %p3663_p1 = scmp.lt.s32.totalorder %s3661_s11, %s3655_s29 }
 0x9d5   : > { %759 = vperm.xlu0 %3616, %v751_v18  }
 0x9d6   : > { %p3664_p2 = por %p3663_p1, %p3662_p0 }
 0x9d7   : > { %1565 = vperm.xlu1 %3617, %v3488_v16  }
 0x9d8   : > { %p3665_p3 = pnand %p3664_p2, %p3658_p13 }
 0x9d9   : > { %1570 = vperm.xlu0 %3616, %v3489_v23  }
 0x9db   : > { %2380 = vperm.xlu1 %3617, %v3522_v63  }
 0x9dd   : > { %2385 = vperm.xlu0 %3616, %v3523_v1  }
 0x9df   : > { %3106 = vperm.xlu1 %3617, %v3549_v51   ;;  %v2901_v51 = vrot.slane %v3541_v24, %v3934_v12 }
 0x9e1   : > { %3111 = vperm.xlu0 %3616, %v3550_v56   ;;  %v2905_v56 = vrot.slane %v3541_v24, %v3936_v13 }
 0x9e3   : > { %3195 = vperm.xlu1 %3617, %v3556_v42  }
 0x9e5   : > { %3200 = vperm.xlu0 %3616, %v3557_v58  }
 0xa05   : > { %v2821_v60 = vpop.permute.xlu1 %2820 }
 0xa07   : > { %v2823_v52 = vpop.permute.xlu0 %2822 }
 0xa09   : > { %v2853_v47 = vpop.permute.xlu1 %2852 }
 0xa0b   : > { %v2855_v7 = vpop.permute.xlu0 %2854 }
 0xa0d   : > { %v2885_v27 = vpop.permute.xlu1 %2884 }
 0xa0f   : > { %v2887_v38 = vpop.permute.xlu0 %2886 }
 0xa11   : > { %v2917_v26 = vpop.permute.xlu1 %2916 }
 0xa13   : > { %v5387_v15 = vpop.permute.xlu0 %2918 }
 0xa15   : > { %v5389_v33 = vpop.permute.xlu1 %2952 }
 0xa17   : > { %v5391_v48 = vpop.permute.xlu0 %2954 }
 0xa19   : > { %v5393_v9 = vpop.permute.xlu1 %2984 }
 0xa1b   : > { %v5395_v20 = vpop.permute.xlu0 %2986 }
 0xa1d   : > { %v5397_v62 = vpop.permute.xlu1 %3016 }
 0xa1f   : > { %v5402_v8 = vpop.permute.xlu0 %3018 }
 0xa21   : > { %v2825_v10 = vpop.permute.xlu1 %2824 }
 0xa22   : > { %v2828_v5 = vsel %vm375_vm1, %v2821_v60, %v2825_v10  ;;  %v2830_v28 = vsel %vm375_vm1, %v2825_v10, %v2821_v60 }
 0xa23   : > { %v2827_v49 = vpop.permute.xlu0 %2826  ;;  %v2844_v41 = vmul.f32 %v2837_v29, %v2830_v28  ;;  %v2845_v17 = vmul.f32 %v2841_v14, %v2828_v5 }
 0xa24   : > { %v2829_v22 = vsel %vm375_vm1, %v2823_v52, %v2827_v49  ;;  %v2831_v61 = vsel %vm375_vm1, %v2827_v49, %v2823_v52 }
 0xa25   : > { %v2846_v50 = vmul.f32 %v2837_v29, %v2831_v61  ;;  %v2847_v3 = vmul.f32 %v2841_v14, %v2829_v22  ;;  %v2857_v36 = vpop.permute.xlu1 %2856 }
 0xa26   : > { %v2860_v25 = vsel %vm408_vm2, %v2853_v47, %v2857_v36  ;;  %v2862_v37 = vsel %vm408_vm2, %v2857_v36, %v2853_v47  ;;  %v3542_v47 = vld [vmem:[%s5645_s1 + $0x6] sm:$0x3] }
 0xa27   : > { %v2848_v18 = vpack.c.bf16 %v2846_v50, %v2844_v41  ;;  %v2859_v16 = vpop.permute.xlu0 %2858  ;;  %v2849_v23 = vpack.c.bf16 %v2847_v3, %v2845_v17  ;;  %v2876_v42 = vmul.f32 %v2869_v6, %v2862_v37  ;;  %v2877_v58 = vmul.f32 %v2873_v39, %v2860_v25 }
 0xa28   : > { %v2861_v63 = vsel %vm408_vm2, %v2855_v7, %v2859_v16  ;;  %v2863_v1 = vsel %vm408_vm2, %v2859_v16, %v2855_v7  ;;  %v2933_v49 = vrot.slane %v3542_v47, %v3934_v12  ;;  %v2937_v22 = vrot.slane %v3542_v47, %v3936_v13 }
 0xa29   : > { %v2878_v60 = vmul.f32 %v2869_v6, %v2863_v1  ;;  %v2879_v52 = vmul.f32 %v2873_v39, %v2861_v63  ;;  %3126 = vmatprep.subr.bf16.mxu0 %v2849_v23  ;;  %v2889_v53 = vpop.permute.xlu1 %2888 }
 0xa2a   : > { %v2892_v29 = vsel %vm442_vm3, %v2885_v27, %v2889_v53  ;;  %v2894_v7 = vsel %vm442_vm3, %v2889_v53, %v2885_v27  ;;  %3127 = vmatpush1.bf16.msra.mxu0 %v2848_v18 }
 0xa2b   : > { %v2880_v14 = vpack.c.bf16 %v2878_v60, %v2876_v42  ;;  %v2891_v10 = vpop.permute.xlu0 %2890  ;;  %v2881_v40 = vpack.c.bf16 %v2879_v52, %v2877_v58  ;;  %v2908_v61 = vmul.f32 %v2901_v51, %v2894_v7  ;;  %v2909_v6 = vmul.f32 %v2905_v56, %v2892_v29  ;;  %v3544_v60 = vld [vmem:[%s5645_s1 + $0xc] sm:$0x3] }
 0xa2c   : > { %v2893_v5 = vsel %vm442_vm3, %v2887_v38, %v2891_v10  ;;  %v2895_v28 = vsel %vm442_vm3, %v2891_v10, %v2887_v38  ;;  %v3005_v10 = vrot.slane %v3544_v60, %v3936_v13 }
 0xa2d   : > { %v2910_v39 = vmul.f32 %v2901_v51, %v2895_v28  ;;  %v2911_v41 = vmul.f32 %v2905_v56, %v2893_v5  ;;  %3128 = vmatprep.subr.bf16.mxu0 %v2881_v40  ;;  %v2921_v27 = vpop.permute.xlu1 %2920 }
 0xa2e   : > { %v2924_v17 = vsel %vm476_vm4, %v2917_v26, %v2921_v27  ;;  %v2926_v50 = vsel %vm476_vm4, %v2921_v27, %v2917_v26  ;;  %3129 = vmatpush1.bf16.msra.mxu0 %v2880_v14  ;;  %v3543_v26 = vld [vmem:[%s5645_s1 + $0xa] sm:$0x3]  ;;  %v3001_v14 = vrot.slane %v3544_v60, %v3934_v12  ;;  %v3037_v27 = vrot.slane %v3545_v2, %v3936_v13 }
 0xa2f   : > { %v2912_v3 = vpack.c.bf16 %v2910_v39, %v2908_v61  ;;  %v2923_v36 = vpop.permute.xlu0 %2922  ;;  %v2913_v38 = vpack.c.bf16 %v2911_v41, %v2909_v6  ;;  %v2940_v37 = vmul.f32 %v2933_v49, %v2926_v50  ;;  %v2941_v18 = vmul.f32 %v2937_v22, %v2924_v17 }
 0xa30   : > { %v2925_v24 = vsel %vm476_vm4, %v5387_v15, %v2923_v36  ;;  %v2927_v25 = vsel %vm476_vm4, %v2923_v36, %v5387_v15  ;;  %v2969_v42 = vrot.slane %v3543_v26, %v3934_v12  ;;  %v2973_v15 = vrot.slane %v3543_v26, %v3936_v13 }
 0xa31   : > { %v2942_v16 = vmul.f32 %v2933_v49, %v2927_v25  ;;  %v2943_v23 = vmul.f32 %v2937_v22, %v2925_v24  ;;  %3130 = vmatprep.subr.bf16.mxu0 %v2913_v38  ;;  %v3049_v63 = vpop.permute.xlu1 %3048  ;;  %v3033_v41 = vrot.slane %v3545_v2, %v3934_v12 }
 0xa32   : > { %3131 = vmatpush1.bf16.msra.mxu0 %v2912_v3 }
 0xa33   : > { %v2944_v1 = vpack.c.bf16 %v2942_v16, %v2940_v37  ;;  %v5458_v51 = vpop.permute.xlu0 %3050  ;;  %v2945_v56 = vpack.c.bf16 %v2943_v23, %v2941_v18 }
 0xa35   : > { %3132 = vmatprep.subr.bf16.mxu0 %v2945_v56  ;;  %v2957_v58 = vpop.permute.xlu1 %2956 }
 0xa36   : > { %v2960_v52 = vsel %vm514_vm5, %v5389_v33, %v2957_v58  ;;  %v2962_v53 = vsel %vm514_vm5, %v2957_v58, %v5389_v33  ;;  %3133 = vmatpush1.bf16.msra.mxu0 %v2944_v1 }
 0xa37   : > { %v2959_v47 = vpop.permute.xlu0 %2958  ;;  %3134 = vmatprep.subr.bf16.mxu0 %v2949_v19  ;;  %v2976_v40 = vmul.f32 %v2969_v42, %v2960_v52  ;;  %v2977_v33 = vmul.f32 %v2973_v15, %v2962_v53 }
 0xa38   : > { %v2961_v29 = vsel %vm514_vm5, %v5391_v48, %v2959_v47  ;;  %v2963_v7 = vsel %vm514_vm5, %v2959_v47, %v5391_v48 }
 0xa39   : > { %v2978_v5 = vmul.f32 %v2969_v42, %v2961_v29  ;;  %v2979_v28 = vmul.f32 %v2973_v15, %v2963_v7  ;;  %v2989_v49 = vpop.permute.xlu1 %2988 }
 0xa3a   : > { %v2992_v46 = vsel %vm548_vm6, %v5393_v9, %v2989_v49  ;;  %v2994_v19 = vsel %vm548_vm6, %v2989_v49, %v5393_v9  ;;  %3135 = vmatpush1.bf16.msra.mxu0 %v2948_v55  ;;  %v3546_v55 = vld [vmem:[%s5645_s1 + $0x10] sm:$0x3] }
 0xa3b   : > { %v2980_v48 = vpack.c.bf16 %v2978_v5, %v2976_v40  ;;  %v2991_v22 = vpop.permute.xlu0 %2990  ;;  %v2981_v61 = vpack.c.bf16 %v2979_v28, %v2977_v33  ;;  %v3008_v9 = vmul.f32 %v3001_v14, %v2992_v46  ;;  %v3009_v17 = vmul.f32 %v3005_v10, %v2994_v19 }
 0xa3c   : > { %v2993_v6 = vsel %vm548_vm6, %v5395_v20, %v2991_v22  ;;  %v2995_v39 = vsel %vm548_vm6, %v2991_v22, %v5395_v20  ;;  %v3065_v18 = vrot.slane %v3546_v55, %v3934_v12  ;;  %v3069_v16 = vrot.slane %v3546_v55, %v3936_v13 }
 0xa3d   : > { %v3010_v50 = vmul.f32 %v3001_v14, %v2993_v6  ;;  %v3011_v34 = vmul.f32 %v3005_v10, %v2995_v39  ;;  %v3021_v4 = vpop.permute.xlu1 %3020  ;;  %3136 = vmatprep.subr.bf16.mxu0 %v2981_v61  ;;  %v3641_v10 = vld [vmem:[%s5646_s2 + $0x60] ss:$8 sps:$4 sm:$0xff]  }
 0xa3e   : > { %v3024_v3 = vsel %vm582_vm7, %v5397_v62, %v3021_v4  ;;  %v3026_v20 = vsel %vm582_vm7, %v3021_v4, %v5397_v62  ;;  %3137 = vmatpush1.bf16.msra.mxu0 %v2980_v48 }
 0xa3f   : > { %v3012_v36 = vpack.c.bf16 %v3010_v50, %v3008_v9  ;;  %v3023_v38 = vpop.permute.xlu0 %3022  ;;  %v3013_v24 = vpack.c.bf16 %v3011_v34, %v3009_v17  ;;  %v3040_v23 = vmul.f32 %v3033_v41, %v3024_v3  ;;  %v3041_v26 = vmul.f32 %v3037_v27, %v3026_v20 }
 0xa40   : > { %v3025_v25 = vsel %vm582_vm7, %v5402_v8, %v3023_v38  ;;  %v3027_v37 = vsel %vm582_vm7, %v3023_v38, %v5402_v8 }
 0xa41   : > { %v3042_v1 = vmul.f32 %v3033_v41, %v3025_v25  ;;  %v3043_v62 = vmul.f32 %v3037_v27, %v3027_v37  ;;  %v3053_v56 = vpop.permute.xlu1 %3052  ;;  %3138 = vmatprep.subr.bf16.mxu0 %v3013_v24 }
 0xa42   : > { %v3056_v42 = vsel %vm616_vm8, %v3049_v63, %v3053_v56  ;;  %v3058_v15 = vsel %vm616_vm8, %v3053_v56, %v3049_v63  ;;  %3139 = vmatpush1.bf16.msra.mxu0 %v3012_v36 }
 0xa43   : > { %v3044_v58 = vpack.c.bf16 %v3042_v1, %v3040_v23  ;;  %v3055_v60 = vpop.permute.xlu0 %3054  ;;  %v3045_v8 = vpack.c.bf16 %v3043_v62, %v3041_v26  ;;  %v3072_v53 = vmul.f32 %v3065_v18, %v3056_v42  ;;  %v3073_v47 = vmul.f32 %v3069_v16, %v3058_v15 }
 0xa44   : > { %v3057_v13 = vsel %vm616_vm8, %v5458_v51, %v3055_v60  ;;  %v3059_v52 = vsel %vm616_vm8, %v3055_v60, %v5458_v51 }
 0xa45   : > { %v3074_v29 = vmul.f32 %v3065_v18, %v3057_v13  ;;  %v3075_v7 = vmul.f32 %v3069_v16, %v3059_v52  ;;  %3140 = vmatprep.subr.bf16.mxu0 %v3045_v8 }
 0xa46   : > { %3141 = vmatpush1.bf16.msra.mxu0 %v3044_v58 }
 0xa47   : > { %v3076_v14 = vpack.c.bf16 %v3074_v29, %v3072_v53  ;;  %v3077_v63 = vpack.c.bf16 %v3075_v7, %v3073_v47 }
 0xa49   : > { %3142 = vmatprep.subr.bf16.mxu0 %v3077_v63 }
 0xa4a   : > { %3143 = vmatpush1.bf16.msra.mxu0 %v3076_v14 }
 0xa4d   : > { %3159 = vmatmul.mubr.bf16.vlgmr.msra.gmra.mrb[12].mxu0 %v3641_v10 }
 0xa52   : > { %v755_v40 = vpop.permute.xlu1 %754 }
 0xa53   : > { %v805_v33 = vadd.f32 %v4299_v43, %v755_v40  ;;  %v807_v11 = vadd.f32 %v4301_v35, %v755_v40 }
 0xa54   : > { %v760_v51 = vpop.permute.xlu0 %759 }
 0xa55   : > { %vm813_vm1 = vcmp.ge.f32.partialorder %v805_v33, 0.0  ;;  %vm814_vm2 = vcmp.ge.f32.partialorder %v807_v11, 0.0  ;;  %v817_v5 = vmul.f32 0.05, %v805_v33  ;;  %v818_v28 = vmul.f32 0.05, %v807_v11 }
 0xa56   : > { %v809_v49 = vadd.f32 %v4303_v44, %v760_v51  ;;  %v811_v2 = vadd.f32 %v4305_v45, %v760_v51  ;;  %v1566_v46 = vpop.permute.xlu1 %1565 }
 0xa57   : > { %v1616_v19 = vadd.f32 %v4782_v21, %v1566_v46  ;;  %v1618_v48 = vadd.f32 %v4784_v57, %v1566_v46  ;;  %v821_v22 = vsel %vm813_vm1, %v805_v33, %v817_v5  ;;  %v822_v61 = vsel %vm814_vm2, %v807_v11, %v818_v28 }
 0xa58   : > { %vm815_vm3 = vcmp.ge.f32.partialorder %v809_v49, 0.0  ;;  %vm816_vm4 = vcmp.ge.f32.partialorder %v811_v2, 0.0  ;;  %v1571_v43 = vpop.permute.xlu0 %1570  ;;  %v819_v39 = vmul.f32 0.05, %v809_v49  ;;  %v820_v41 = vmul.f32 0.05, %v811_v2 }
 0xa59   : > { %vm1624_vm5 = vcmp.ge.f32.partialorder %v1616_v19, 0.0  ;;  %vm1625_vm6 = vcmp.ge.f32.partialorder %v1618_v48, 0.0  ;;  %v1628_v35 = vmul.f32 0.05, %v1616_v19  ;;  %v1629_v6 = vmul.f32 0.05, %v1618_v48 }
 0xa5a   : > { %v1620_v44 = vadd.f32 %v4786_v30, %v1571_v43  ;;  %v1622_v45 = vadd.f32 %v4788_v31, %v1571_v43  ;;  %v2381_v27 = vpop.permute.xlu1 %2380  ;;  %v823_v38 = vsel %vm815_vm3, %v809_v49, %v819_v39 }
 0xa5b   : > { %v1632_v9 = vsel %vm1624_vm5, %v1616_v19, %v1628_v35  ;;  %v1633_v21 = vsel %vm1625_vm6, %v1618_v48, %v1629_v6  ;;  %v2431_v57 = vadd.f32 %v5265_v32, %v2381_v27  ;;  %v2433_v17 = vadd.f32 %v5267_v0, %v2381_v27 }
 0xa5c   : > { %v1636_v50 = vadd.f32 %v1632_v9, %v821_v22  ;;  %v1637_v34 = vadd.f32 %v1633_v21, %v822_v61  ;;  %vm1626_vm7 = vcmp.ge.f32.partialorder %v1620_v44, 0.0  ;;  %vm1627_vm8 = vcmp.ge.f32.partialorder %v1622_v45, 0.0  ;;  %v2386_v4 = vpop.permute.xlu0 %2385  ;;  %v3642_v22 = vld [vmem:[%s5648_s4 + $0x18] sm:$0xff]  }
 0xa5d   : > { %v1630_v55 = vmul.f32 0.05, %v1620_v44  ;;  %v1631_v3 = vmul.f32 0.05, %v1622_v45  ;;  %vm2439_vm12 = vcmp.ge.f32.partialorder %v2431_v57, 0.0  ;;  %vm2440_vm13 = vcmp.ge.f32.partialorder %v2433_v17, 0.0 }
 0xa5e   : > { %v2443_v20 = vmul.f32 0.05, %v2431_v57  ;;  %v2444_v30 = vmul.f32 0.05, %v2433_v17  ;;  %v2435_v31 = vadd.f32 %v5269_v59, %v2386_v4  ;;  %v2437_v36 = vadd.f32 %v5271_v54, %v2386_v4  ;;  %v3107_v15 = vpop.permute.xlu1 %3106 }
 0xa5f   : > { %v824_v32 = vsel %vm816_vm4, %v811_v2, %v820_v41  ;;  %v1634_v0 = vsel %vm1626_vm7, %v1620_v44, %v1630_v55  ;;  %v1635_v24 = vsel %vm1627_vm8, %v1622_v45, %v1631_v3  ;;  %vm3298_vm5 = vcmask 7168  }
 0xa60   : > { %v1638_v25 = vadd.f32 %v1634_v0, %v823_v38  ;;  %v1639_v37 = vadd.f32 %v1635_v24, %v824_v32  ;;  %v2447_v18 = vsel %vm2439_vm12, %v2431_v57, %v2443_v20  ;;  %v2448_v16 = vsel %vm2440_vm13, %v2433_v17, %v2444_v30  ;;  %v3112_v13 = vpop.permute.xlu0 %3111 }
 0xa61   : > { %v2451_v23 = vadd.f32 %v2447_v18, %v1636_v50  ;;  %v2452_v26 = vadd.f32 %v2448_v16, %v1637_v34  ;;  %vm2441_vm14 = vcmp.ge.f32.partialorder %v2435_v31, 0.0  ;;  %vm2442_vm15 = vcmp.ge.f32.partialorder %v2437_v36, 0.0 }
 0xa62   : > { %v2445_v1 = vmul.f32 0.05, %v2435_v31  ;;  %v2446_v62 = vmul.f32 0.05, %v2437_v36  ;;  %v3196_v61 = vpop.permute.xlu1 %3195 }
 0xa64   : > { %v2449_v56 = vsel %vm2441_vm14, %v2435_v31, %v2445_v1  ;;  %v2450_v59 = vsel %vm2442_vm15, %v2437_v36, %v2446_v62  ;;  %v3201_v39 = vpop.permute.xlu0 %3200 }
 0xa65   : > { %v2453_v42 = vadd.f32 %v2449_v56, %v1638_v25  ;;  %v2454_v54 = vadd.f32 %v2450_v59, %v1639_v37 }
 0xb20   : > { %v3160_v58 = vpop.f32.mrb[12].mxu0 }
 0xb21   : > { %v3161_v60 = vadd.f32 %v3160_v58, %v3107_v15  ;;  %v3162_v8 = vpop.f32.mrb[13].mxu0 }
 0xb22   : > { %v3163_v52 = vadd.f32 %v3162_v8, %v3107_v15  ;;  %v3164_v53 = vpop.f32.mrb[14].mxu0  ;;  %v3295_v8 = vld [vmem:[%s5650_s6 + $0x8] sm:$0xff] }
 0xb23   : > { %vm3169_vm9 = vcmp.ge.f32.partialorder %v3161_v60, 0.0  ;;  %v3173_v47 = vmul.f32 0.05, %v3161_v60  ;;  %v3165_v29 = vadd.f32 %v3164_v53, %v3112_v13  ;;  %v3166_v7 = vpop.f32.mrb[15].mxu0 }
 0xb24   : > { %vm3170_vm10 = vcmp.ge.f32.partialorder %v3163_v52, 0.0  ;;  %v3174_v14 = vmul.f32 0.05, %v3163_v52  ;;  %v3167_v63 = vadd.f32 %v3166_v7, %v3112_v13 }
 0xb25   : > { %v3177_v10 = vsel %vm3169_vm9, %v3161_v60, %v3173_v47  ;;  %vm3171_vm11 = vcmp.ge.f32.partialorder %v3165_v29, 0.0  ;;  %v3175_v40 = vmul.f32 0.05, %v3165_v29 }
 0xb26   : > { %v3181_v33 = vadd.f32 %v3177_v10, %v2451_v23  ;;  %v3178_v11 = vsel %vm3170_vm10, %v3163_v52, %v3174_v14  ;;  %vm3172_vm1 = vcmp.ge.f32.partialorder %v3167_v63, 0.0  ;;  %v3176_v51 = vmul.f32 0.05, %v3167_v63 }
 0xb27   : > { %v3179_v5 = vsel %vm3171_vm11, %v3165_v29, %v3175_v40  ;;  %v3182_v28 = vadd.f32 %v3178_v11, %v2452_v26 }
 0xb28   : > { %v3183_v49 = vadd.f32 %v3179_v5, %v2453_v42  ;;  %v3180_v2 = vsel %vm3172_vm1, %v3167_v63, %v3176_v51  ;;  %v3308_v51 = vld [vmem:[#allocation3] sm:$0x1] }
 0xb29   : > { %v3184_v46 = vadd.f32 %v3180_v2, %v2454_v54  ;;  %v3294_v54 = vld [vmem:[%s5650_s6] sm:$0xff] }
 0xb2a   : > { %v3188_v19 = vpack.c.bf16 %v3183_v49, %v3181_v33  ;;  %v3311_v2 = vld [vmem:[%s5652_s8] sm:$0xff] }
 0xb2b   : > { %v3189_v48 = vpack.c.bf16 %v3184_v46, %v3182_v28  ;;  %v3312_v46 = vld [vmem:[%s5652_s8 + $0x8] sm:$0xff] }
 0xb2d   : > { %3211 = vmatprep.subr.bf16.mxu1 %v3189_v48  ;;  %v3321_v48 = vld [vmem:[%s5653_s9] sm:$0xff] }
 0xb2e   : > { %3212 = vmatpush1.bf16.msra.mxu1 %v3188_v19 }
 0xb31   : > { %3559 = vmatmul.mubr.msk.bf16.vlgmr.msra.gmra.mrb[24].mxu1 %vm683_vm0, %v3642_v22  ;;  %v3322_v22 = vld [vmem:[%s5653_s9 + $0x8] sm:$0xff] }
 0xc04   : > { %v3245_v43 = vpop.f32.mrb[24].mxu1 }
 0xc05   : > { %v5550_v35 = vadd.f32 %v3245_v43, %v3196_v61  ;;  %v3247_v6 = vpop.f32.mrb[25].mxu1 }
 0xc06   : > { %v5552_v41 = vadd.f32 %v3247_v6, %v3196_v61  ;;  %v3249_v44 = vpop.f32.mrb[26].mxu1 }
 0xc07   : > { %v5554_v45 = vadd.f32 %v3249_v44, %v3201_v39  ;;  %v3251_v27 = vpop.f32.mrb[27].mxu1 }
 0xc08   : > { %v5556_v9 = vadd.f32 %v3251_v27, %v3201_v39  ;;  %v3254_v21 = vadd.f32 %v5552_v41, %v5550_v35 }
 0xc0a   : > { %3255 = vadd.xlane.f32.xlu1 %v3254_v21  ;;  %v3257_v57 = vadd.f32 %v5556_v9, %v5554_v45 }
 0xc0c   : > { %3258 = vadd.xlane.f32.xlu0 %v3257_v57 }
 0xc97   : > { %v3256_v17 = vpop.xlane.xlu1 %3255 }
 0xc98   : > { %v3260_v50 = vmul.f32 0.00390625, %v3256_v17 }
 0xc99   : > { %v3259_v34 = vpop.xlane.xlu0 %3258 }
 0xc9a   : > { %v3262_v4 = vsub.f32 %v5550_v35, %v3260_v50  ;;  %v3263_v55 = vsub.f32 %v5552_v41, %v3260_v50  ;;  %v3261_v3 = vmul.f32 0.00390625, %v3259_v34 }
 0xc9c   : > { %v3266_v20 = vmul.f32 %v3262_v4, %v3262_v4  ;;  %v3267_v30 = vmul.f32 %v3263_v55, %v3263_v55  ;;  %v3264_v31 = vsub.f32 %v5554_v45, %v3261_v3  ;;  %v3265_v36 = vsub.f32 %v5556_v9, %v3261_v3 }
 0xc9e   : > { %v3268_v38 = vmul.f32 %v3264_v31, %v3264_v31  ;;  %v3269_v32 = vmul.f32 %v3265_v36, %v3265_v36  ;;  %v3270_v0 = vadd.f32 %v3267_v30, %v3266_v20  ;;  %v3352_v20 = vld [vmem:[%s3841_s30 + $0x8] sm:$0xff]  ;;  %v3353_v31 = vld [vmem:[%s3841_s30 + $0x10] sm:$0xff]  ;;  %v3354_v36 = vld [vmem:[%s3841_s30 + $0x18] sm:$0xff] }
 0xca0   : > { %3271 = vadd.xlane.f32.xlu0 %v3270_v0  ;;  %v3273_v24 = vadd.f32 %v3269_v32, %v3268_v38 }
 0xca2   : > { %3274 = vadd.xlane.f32.xlu1 %v3273_v24 }
 0xd2d   : > { %v3272_v25 = vpop.xlane.xlu0 %3271 }
 0xd2e   : > { %v3276_v37 = vmul.f32 0.00390625, %v3272_v25 }
 0xd2f   : > { %v3275_v18 = vpop.xlane.xlu1 %3274 }
 0xd30   : > { %3643 = vrsqrt.f32 %v3276_v37  ;;  %v3277_v16 = vmul.f32 0.00390625, %v3275_v18  ;;  %vm3280_vm0 = vcmp.eq.f32.partialorder %v3276_v37, inf  ;;  %v3283_v1 = vand.u32 2147483648, %v3276_v37 }
 0xd31   : > { %vm3282_vm2 = vcmp.eq.f32.partialorder %v3276_v37, 0.0 }
 0xd32   : > { %3645 = vrsqrt.f32 %v3277_v16  ;;  %vm3287_vm3 = vcmp.eq.f32.partialorder %v3277_v16, inf  ;;  %v3290_v58 = vand.u32 2147483648, %v3277_v16  ;;  %vm3289_vm4 = vcmp.eq.f32.partialorder %v3277_v16, 0.0 }
 0xd3a   : > { %v3644_v23 = vpop.eup %3643 }
 0xd3b   : > { %v3279_v26 = vmul.f32 %v3644_v23, %v3276_v37 }
 0xd3c   : > { %v3646_v62 = vpop.eup %3645 }
 0xd3d   : > { %v3281_v56 = vsel %vm3280_vm0, %v3276_v37, %v3279_v26  ;;  %v3286_v42 = vmul.f32 %v3646_v62, %v3277_v16 }
 0xd3e   : > { %v3284_v59 = vsel %vm3282_vm2, %v3283_v1, %v3281_v56 }
 0xd3f   : > { %v3292_v15 = vadd.f32 %v3284_v59, %v3260_v50  ;;  %v3288_v60 = vsel %vm3287_vm3, %v3277_v16, %v3286_v42 }
 0xd40   : > { %v3291_v13 = vsel %vm3289_vm4, %v3290_v58, %v3288_v60 }
 0xd41   : > { %v3296_v52 = vmul.f32 %v3294_v54, %v3292_v15  ;;  %v3293_v53 = vadd.f32 %v3291_v13, %v3261_v3  ;;  %v3351_v3 = vld [vmem:[%s3841_s30] sm:$0xff] }
 0xd43   : > { %v3297_v47 = vmul.f32 %v3295_v8, %v3293_v53  ;;  %v3299_v29 = vsel %vm3298_vm5, %v3296_v52, 0.0 }
 0xd45   : > { %v3300_v7 = vsel %vm3298_vm5, %v3297_v47, 0.0 }
 0xd46   : > { %v3301_v14 = vadd.f32 %v3300_v7, %v3299_v29 }
 0xd48   : > { %v3302_v63 = vrot.slane %v3301_v14, 4 }
 0xd4a   : > { %v3303_v10 = vadd.f32 %v3302_v63, %v3301_v14 }
 0xd4c   : > { %v3304_v40 = vrot.slane %v3303_v10, 2 }
 0xd4e   : > { %v3305_v33 = vadd.f32 %v3304_v40, %v3303_v10 }
 0xd50   : > { %v3306_v11 = vrot.slane %v3305_v33, 1 }
 0xd52   : > { %v3307_v5 = vadd.f32 %v3306_v11, %v3305_v33 }
 0xd54   : > { %v3309_v28 = vadd.f32 %v3308_v51, %v3307_v5 }
 0xd56   : > { %v3310_v49 = vmax.f32 %v3309_v28, 0.0 }
 0xd58   : > { %v3316_v19 = vrot.slane %v3310_v49, %v3934_v12 }
 0xd5a   : > { %v3317_v61 = vmul.f32 %v3316_v19, %v3311_v2  ;;  %v3318_v43 = vmul.f32 %v3316_v19, %v3312_v46 }
 0xd5c   : > { %v3323_v6 = vadd.f32 %v3321_v48, %v3317_v61  ;;  %v3324_v39 = vadd.f32 %v3322_v22, %v3318_v43 }
 0xd5e   : > { %v3325_v44 = vsub.f32 0.0, %v3323_v6  ;;  %v3326_v27 = vsub.f32 0.0, %v3324_v39 }
 0xd60   : > { %v3327_v21 = vmul.f32 1.442695, %v3325_v44  ;;  %v3329_v57 = vmul.f32 1.442695, %v3326_v27 }
 0xd62   : > { %3647 = vpow2.f32 %v3327_v21 }
 0xd63   : > { %3649 = vpow2.f32 %v3329_v57 }
 0xd6c   : > { %v3648_v12 = vpop.eup %3647 }
 0xd6d   : > { %v3650_v17 = vpop.eup %3649  ;;  %v3331_v50 = vadd.f32 1.0, %v3648_v12 }
 0xd6e   : > { %v3332_v34 = vadd.f32 1.0, %v3650_v17 }
 0xd6f   : > { %3651 = vrcp.f32 %v3331_v50 }
 0xd70   : > { %3653 = vrcp.f32 %v3332_v34 }
 0xd79   : > { %v3652_v4 = vpop.eup %3651 }
 0xd7a   : > { %v3654_v55 = vpop.eup %3653  ;;  %3339 = vperm.xlu0 %3616, %v3652_v4  }
 0xd7b   : > { %3344 = vperm.xlu1 %3617, %v3654_v55  }
 0xdf9   : > { %v3340_v30 = vpop.permute.xlu0 %3339 }
 0xdfa   : > { %v3345_v38 = vpop.permute.xlu1 %3344  ;;  %v3347_v32 = vmul.f32 %v3340_v30, %v5550_v35  ;;  %v3348_v0 = vmul.f32 %v3340_v30, %v5552_v41 }
 0xdfb   : > { %v3349_v24 = vmul.f32 %v3345_v38, %v5554_v45  ;;  %v3350_v25 = vmul.f32 %v3345_v38, %v5556_v9 }
 0xdfc   : > { %v3355_v37 = vadd.f32 %v3351_v3, %v3347_v32  ;;  %v3356_v18 = vadd.f32 %v3352_v20, %v3348_v0 }
 0xdfd   : > { %v3357_v16 = vadd.f32 %v3353_v31, %v3349_v24  ;;  %v3358_v23 = vadd.f32 %v3354_v36, %v3350_v25 }
 0xdfe   : > { %3359 = vst [vmem:[%s354_s12] sm:$0xff] %v3355_v37  ;;  %3360 = vst [vmem:[%s354_s12 + $0x8] sm:$0xff] %v3356_v18 }
 0xdff   : > { %3361 = vst [vmem:[%s354_s12 + $0x10] sm:$0xff] %v3357_v16  ;;  %3362 = vst [vmem:[%s354_s12 + $0x18] sm:$0xff] %v3358_v23 }
 0xe00   : > { %3668 = shalt.err (!%p3665_p3)
}
 0xe01   : > { %s3669_s21 = scalar_lea.hbm %s5600_s26, 512  ;;  %s3673_s30 = scalar_lea.hbm %s5654_s10, 1024 }
 0xe02   : > { %p3670_p4 = scmp.ne.s32.totalorder %s5600_s26, %s3669_s21  ;;  %p3674_p9 = scmp.lt.u32.totalorder %s5600_s26, %s5654_s10 }
 0xe03   : > { %p3675_p10 = scmp.lt.u32.totalorder %s3673_s30, %s3669_s21  ;;  %p3677_p12 = scmp.lt.u32.totalorder %s3669_s21, %s5600_s26 }
 0xe04   : > { %p3671_p7 = pnand %p3670_p4, %p3826_p5 }
 0xe05   : > { %p3676_p11 = por %p3675_p10, %p3674_p9 }
 0xe06   : > { %p3672_p8 = pneg %p3671_p7 }
 0xe07   : > { %p3678_p13 = por %p3677_p12, %p3676_p11 }
 0xe09   : > { %p3679_p0 = pnand %p3678_p13, %p3672_p8 }
 0xe0b   : > { %3682 = shalt.err (!%p3679_p0)
}
 0xe0c   : > { %s3729_s29 = smov 256  }
 0xe0d   : > { %3567 = dma.vmem_to_hbm [thread:$0]  (%p3826_p5), %s5595_s14, 512, %s5600_s26, %s5602_s7, %s3729_s29, %s3729_s29, %s5679_s19  }
 0xe0e PF: > { %p3573_p1 = scmp.ge.s32.totalorder %s3717_s18, 2  ;;  %s3392_s13 = sand.u32 1, %s3705_s15  }
 0xe0f   : > { %s3393_s11 = scalar_lea.sflag [#allocation5], %s3392_s13 }
 0xe10   : > { %p3570_p2 = pnand %p3573_p1, %p3830_p6 }
 0xe12   : > { %3700 = dma.done.wait (!%p3570_p2), %s3393_s11, 512  }
 0xe13   : > { %3702 = vsyncadd (!%p3570_p2), %s3393_s11, 4294966784  ;;  %p22_p3 = scmp.ge.s32.totalorder %s3813_s20, 4   ;;  %s5681_s15 = smov %s3709_s16 }
 0xe14   : > { %s5682_s16 = smov %s3713_s17  ;;  %s5683_s17 = smov %s3824_s23 }
 0xe15   : > { %s5684_s18 = smov %s3813_s20  ;;  %24 = sbr.rel (!%p22_p3) target bundleno = 6 (0x6), region = 120 }
 0xe1c   :  { %3398 = vsyncpa [#allocation5], 1 }
 0xe1d   :  { %3400 = vsyncpa [#allocation5 + $0x1], 1 }

</bundles_post_ra>
